<compile_context>
chip_gen: v6e
topology: v6e:2x2x1
jax: 0.10.0
libtpu: 0.0.40
codegen_flags: <defaults>
</compile_context>

<pallas_src>
import numpy as np

import jax
import jax.numpy as jnp
from jax import lax
from jax.experimental import pallas as pl
from jax.experimental.pallas import tpu as pltpu

KSIZE = 5  # every layer of the module uses a 5x5 kernel

# (kind, weight name, bias name, stride, padding, output_padding)
# All layers except the last are followed by ReLU (as in the PyTorch module).
_LAYERS = (
    ("conv",  "c1_w", "c1_b", 2, 2, 0),
    ("conv",  "c2_w", "c2_b", 2, 2, 0),
    ("conv",  "c3_w", "c3_b", 2, 2, 0),
    ("tconv", "d1_w", "d1_b", 2, 2, 0),
    ("tconv", "d2_w", "d2_b", 2, 2, 1),
    ("tconv", "d3_w", "d3_b", 2, 2, 1),
)


# ----------------------------------------------------------------------------
# Fused Pallas kernel: the whole decoder for one image per grid step.
# ----------------------------------------------------------------------------
def _decoder_kernel(x_ref, *refs):
    """refs = (A_1, B_1, bias_1, ..., A_L, B_L, bias_L, out_ref).

    x_ref:    (1, H, W*Cin)   bf16 activation of the current image
    A_l:      (5, Ho, Hi)     bf16 0/1 row-selection per kh tap
    B_l:      (5, Wi*Cin, Wo*Cout) bf16 column-selection + channel mix per tap
    bias_l:   (1, Wo*Cout)    f32
    out_ref:  (1, Ho_L, Wo_L*Cout_L) f32
    """
    o_ref = refs[-1]
    layer_refs = refs[:-1]
    n_layers = len(layer_refs) // 3

    h = x_ref[0]                                     # (H, W*Cin), bf16
    for li in range(n_layers):
        a_ref, b_ref, bias_ref = layer_refs[3 * li: 3 * li + 3]
        acc = None
        for t in range(a_ref.shape[0]):              # unrolled over the 5 kh taps
            # Row selection (exact 0/1) then column/channel matmul, f32 accumulate.
            rows = jnp.dot(a_ref[t], h, preferred_element_type=jnp.float32)
            part = jnp.dot(rows.astype(jnp.bfloat16), b_ref[t],
                           preferred_element_type=jnp.float32)
            acc = part if acc is None else acc + part
        acc = acc + bias_ref[...]
        if li < n_layers - 1:
            h = jnp.maximum(acc, 0.0).astype(jnp.bfloat16)   # ReLU, bf16 for MXU
        else:
            o_ref[0] = acc.astype(o_ref.dtype)               # final layer: no ReLU


# ----------------------------------------------------------------------------
# Wrapper-side construction of the per-layer A / B / bias operands.
# ----------------------------------------------------------------------------
def _out_size(kind, n, k, s, p, op):
    if kind == "conv":
        return (n + 2 * p - k) // s + 1
    return (n - 1) * s - 2 * p + k + op


def _build_layer_operands(kind, w, b, Hi, Wi, k, s, p, op):
    """Build (A, B, bias_row) so that  y = sum_kh A[kh] @ x @ B[kh] + bias_row
    reproduces the PyTorch Conv2d / ConvTranspose2d, with x laid out (Hi, Wi*Cin)
    and y laid out (Ho, Wo*Cout)."""
    if kind == "conv":
        Cout, Cin = int(w.shape[0]), int(w.shape[1])       # (Cout, Cin, k, k)
    else:
        Cin, Cout = int(w.shape[0]), int(w.shape[1])       # (Cin, Cout, k, k)
    Ho = _out_size(kind, Hi, k, s, p, op)
    Wo = _out_size(kind, Wi, k, s, p, op)

    # --- A[kh]: (Ho, Hi) 0/1 selection encoding H-stride, H-padding, upsample.
    A = np.zeros((k, Ho, Hi), np.float32)
    for kh in range(k):
        for ho in range(Ho):
            if kind == "conv":
                hi = s * ho + kh - p                       # hi = s*ho + kh - p
            else:
                num = ho + p - kh                          # kh = ho + p - s*hi
                if num % s != 0:
                    continue
                hi = num // s
            if 0 <= hi < Hi:
                A[kh, ho, hi] = 1.0

    # --- B[kh]: (Wi*Cin, Wo*Cout) = kw taps + W-stride/padding + channel mixing.
    wi = np.arange(Wi)[:, None]
    wo = np.arange(Wo)[None, :]
    if kind == "conv":
        kw = wi - s * wo + p                               # wi = s*wo + kw - p
    else:
        kw = wo + p - s * wi                               # kw = wo + p - s*wi
    valid = ((kw >= 0) & (kw < k)).astype(np.float32)      # (Wi, Wo)
    kw_c = np.clip(kw, 0, k - 1)

    if kind == "conv":
        wt = jnp.transpose(w, (2, 0, 1, 3))                # (kh, Cout, Cin, kw)
        g = wt[:, :, :, kw_c] * valid[None, None, None]    # (k, Cout, Cin, Wi, Wo)
        B = jnp.transpose(g, (0, 3, 2, 4, 1))              # (k, Wi, Cin, Wo, Cout)
    else:
        wt = jnp.transpose(w, (2, 0, 1, 3))                # (kh, Cin, Cout, kw)
        g = wt[:, :, :, kw_c] * valid[None, None, None]    # (k, Cin, Cout, Wi, Wo)
        B = jnp.transpose(g, (0, 3, 1, 4, 2))              # (k, Wi, Cin, Wo, Cout)
    B = B.reshape(k, Wi * Cin, Wo * Cout)

    bias_row = jnp.tile(b, (Wo,)).reshape(1, Wo * Cout)    # index = wo*Cout + co

    return (jnp.asarray(A, jnp.bfloat16),
            B.astype(jnp.bfloat16),
            bias_row.astype(jnp.float32),
            Ho, Wo, Cout)


# ----------------------------------------------------------------------------
# Module forward: NCHW in -> NCHW out, single fused pallas_call.
# ----------------------------------------------------------------------------
@jax.jit
def conv_decoder_mask_mnist_forward(x_nchw, params):
    N, Cin, H, W = x_nchw.shape
    # NCHW -> (N, H, W*Cin); row-major (w, c) interleave matches B's layout.
    x2d = jnp.transpose(x_nchw, (0, 2, 3, 1)).reshape(N, H, W * Cin)
    x2d = x2d.astype(jnp.bfloat16)

    operands = [x2d]
    in_specs = [pl.BlockSpec((1, H, W * Cin), lambda n: (n, 0, 0))]

    Hi, Wi = H, W
    Ho = Wo = Cout = None
    for kind, wname, bname, s, p, op in _LAYERS:
        A, B, brow, Ho, Wo, Cout = _build_layer_operands(
            kind, params[wname], params[bname], Hi, Wi, KSIZE, s, p, op)
        operands += [A, B, brow]
        in_specs += [
            pl.BlockSpec(A.shape, lambda n: (0, 0, 0)),      # broadcast over batch
            pl.BlockSpec(B.shape, lambda n: (0, 0, 0)),
            pl.BlockSpec(brow.shape, lambda n: (0, 0)),
        ]
        Hi, Wi = Ho, Wo

    out2d = pl.pallas_call(
        _decoder_kernel,
        out_shape=jax.ShapeDtypeStruct((N, Ho, Wo * Cout), jnp.float32),
        grid=(N,),
        in_specs=in_specs,
        out_specs=pl.BlockSpec((1, Ho, Wo * Cout), lambda n: (n, 0, 0)),
        compiler_params=pltpu.CompilerParams(
            dimension_semantics=("parallel",)),               # 2 TCs on v7x for N>=2
    )(*operands)

    # (N, Ho, Wo*Cout) -> NCHW (Cout == 1 so this is a pure reshape for MNIST).
    return jnp.transpose(out2d.reshape(N, Ho, Wo, Cout), (0, 3, 1, 2))


# ----------------------------------------------------------------------------
# Deterministic parameter init (PyTorch layouts: Conv (Cout,Cin,k,k), ConvT (Cin,Cout,k,k)).
# ----------------------------------------------------------------------------
def init_params(key, input_channel=1, out_channel=1):
    ks = jax.random.split(key, 12)

    def wmat(k, shape):
        return jax.random.normal(k, shape, jnp.float32) * 0.1

    def bvec(k, n):
        return jax.random.normal(k, (n,), jnp.float32) * 0.01

    return dict(
        c1_w=wmat(ks[0], (16, input_channel, 5, 5)), c1_b=bvec(ks[1], 16),
        c2_w=wmat(ks[2], (32, 16, 5, 5)),            c2_b=bvec(ks[3], 32),
        c3_w=wmat(ks[4], (32, 32, 5, 5)),            c3_b=bvec(ks[5], 32),
        d1_w=wmat(ks[6], (32, 32, 5, 5)),            d1_b=bvec(ks[7], 32),
        d2_w=wmat(ks[8], (32, 16, 5, 5)),            d2_b=bvec(ks[9], 16),
        d3_w=wmat(ks[10], (16, out_channel, 5, 5)),  d3_b=bvec(ks[11], out_channel),
    )


# ----------------------------------------------------------------------------
# Pure-XLA reference of the exact PyTorch graph (for a runtime sanity check).
# ----------------------------------------------------------------------------
def _ref_forward(x_nchw, params):
    dn = ("NCHW", "OIHW", "NCHW")
    prec = lax.Precision.HIGHEST

    def conv(x, w, b, s, p):
        y = lax.conv_general_dilated(x, w, (s, s), ((p, p), (p, p)),
                                     dimension_numbers=dn, precision=prec)
        return y + b.reshape(1, -1, 1, 1)

    def tconv(x, w, b, s, p, op):
        w_fwd = jnp.transpose(w[:, :, ::-1, ::-1], (1, 0, 2, 3))
        pad = (KSIZE - 1 - p, KSIZE - 1 - p + op)
        y = lax.conv_general_dilated(x, w_fwd, (1, 1), (pad, pad),
                                     lhs_dilation=(s, s),
                                     dimension_numbers=dn, precision=prec)
        return y + b.reshape(1, -1, 1, 1)

    x = x_nchw.astype(jnp.float32)
    x = jax.nn.relu(conv(x, params["c1_w"], params["c1_b"], 2, 2))     # 28 -> 14
    x = jax.nn.relu(conv(x, params["c2_w"], params["c2_b"], 2, 2))     # 14 -> 7
    x = jax.nn.relu(conv(x, params["c3_w"], params["c3_b"], 2, 2))     # 7  -> 4
    x = jax.nn.relu(tconv(x, params["d1_w"], params["d1_b"], 2, 2, 0))  # 4  -> 7
    x = jax.nn.relu(tconv(x, params["d2_w"], params["d2_b"], 2, 2, 1))  # 7  -> 14
    x = tconv(x, params["d3_w"], params["d3_b"], 2, 2, 1)               # 14 -> 28
    return x


if __name__ == "__main__":
    key = jax.random.PRNGKey(0)
    k_param, k_x = jax.random.split(key)
    params = init_params(k_param, input_channel=1, out_channel=1)

    # MNIST-sized input implied by the module: (N, 1, 28, 28)
    x = jax.random.normal(k_x, (2, 1, 28, 28), jnp.float32)

    out = conv_decoder_mask_mnist_forward(x, params)
    out = jax.block_until_ready(out)

    assert out.shape == (2, 1, 28, 28), out.shape
    assert out.dtype == jnp.float32
    assert bool(jnp.all(jnp.isfinite(out)))

    # Sanity check against the exact XLA reference (bf16 MXU operands -> loose tol).
    ref = _ref_forward(x, params)
    max_err = float(jnp.max(jnp.abs(out - ref)))
    assert max_err < 1e-1, f"max abs error vs reference: {max_err}"

    print("KERNEL_OK")
</pallas_src>

<mosaic_0001>
module attributes {stable_mosaic.version = 11 : i64} {
  func.func @_decoder_kernel(%arg0: i32, %arg1: memref<1x28x28xbf16, #tpu.memory_space<vmem>>, %arg2: memref<5x14x28xbf16, #tpu.memory_space<vmem>>, %arg3: memref<5x28x224xbf16, #tpu.memory_space<vmem>>, %arg4: memref<1x224xf32, #tpu.memory_space<vmem>>, %arg5: memref<5x7x14xbf16, #tpu.memory_space<vmem>>, %arg6: memref<5x224x224xbf16, #tpu.memory_space<vmem>>, %arg7: memref<1x224xf32, #tpu.memory_space<vmem>>, %arg8: memref<5x4x7xbf16, #tpu.memory_space<vmem>>, %arg9: memref<5x224x128xbf16, #tpu.memory_space<vmem>>, %arg10: memref<1x128xf32, #tpu.memory_space<vmem>>, %arg11: memref<5x7x4xbf16, #tpu.memory_space<vmem>>, %arg12: memref<5x128x224xbf16, #tpu.memory_space<vmem>>, %arg13: memref<1x224xf32, #tpu.memory_space<vmem>>, %arg14: memref<5x14x7xbf16, #tpu.memory_space<vmem>>, %arg15: memref<5x224x224xbf16, #tpu.memory_space<vmem>>, %arg16: memref<1x224xf32, #tpu.memory_space<vmem>>, %arg17: memref<5x28x14xbf16, #tpu.memory_space<vmem>>, %arg18: memref<5x224x28xbf16, #tpu.memory_space<vmem>>, %arg19: memref<1x28xf32, #tpu.memory_space<vmem>>, %arg20: memref<1x28x28xf32, #tpu.memory_space<vmem>>) attributes {dimension_semantics = [#tpu.dimension_semantics<parallel>], iteration_bounds = array<i64: 2>, scalar_prefetch = 0 : i64, scratch_operands = 0 : i64, tpu.core_type = #tpu.core_type<tc>, window_params = [{transform_indices = @transform_0, window_bounds = array<i64: 1, 28, 28>}, {pipeline_mode = #tpu.pipeline_mode<synchronous>, transform_indices = @transform_1, window_bounds = array<i64: 5, 14, 28>}, {pipeline_mode = #tpu.pipeline_mode<synchronous>, transform_indices = @transform_2, window_bounds = array<i64: 5, 28, 224>}, {pipeline_mode = #tpu.pipeline_mode<synchronous>, transform_indices = @transform_3, window_bounds = array<i64: 1, 224>}, {pipeline_mode = #tpu.pipeline_mode<synchronous>, transform_indices = @transform_4, window_bounds = array<i64: 5, 7, 14>}, {pipeline_mode = #tpu.pipeline_mode<synchronous>, transform_indices = @transform_5, window_bounds = array<i64: 5, 224, 224>}, {pipeline_mode = #tpu.pipeline_mode<synchronous>, transform_indices = @transform_6, window_bounds = array<i64: 1, 224>}, {pipeline_mode = #tpu.pipeline_mode<synchronous>, transform_indices = @transform_7, window_bounds = array<i64: 5, 4, 7>}, {pipeline_mode = #tpu.pipeline_mode<synchronous>, transform_indices = @transform_8, window_bounds = array<i64: 5, 224, 128>}, {pipeline_mode = #tpu.pipeline_mode<synchronous>, transform_indices = @transform_9, window_bounds = array<i64: 1, 128>}, {pipeline_mode = #tpu.pipeline_mode<synchronous>, transform_indices = @transform_10, window_bounds = array<i64: 5, 7, 4>}, {pipeline_mode = #tpu.pipeline_mode<synchronous>, transform_indices = @transform_11, window_bounds = array<i64: 5, 128, 224>}, {pipeline_mode = #tpu.pipeline_mode<synchronous>, transform_indices = @transform_12, window_bounds = array<i64: 1, 224>}, {pipeline_mode = #tpu.pipeline_mode<synchronous>, transform_indices = @transform_13, window_bounds = array<i64: 5, 14, 7>}, {pipeline_mode = #tpu.pipeline_mode<synchronous>, transform_indices = @transform_14, window_bounds = array<i64: 5, 224, 224>}, {pipeline_mode = #tpu.pipeline_mode<synchronous>, transform_indices = @transform_15, window_bounds = array<i64: 1, 224>}, {pipeline_mode = #tpu.pipeline_mode<synchronous>, transform_indices = @transform_16, window_bounds = array<i64: 5, 28, 14>}, {pipeline_mode = #tpu.pipeline_mode<synchronous>, transform_indices = @transform_17, window_bounds = array<i64: 5, 224, 28>}, {pipeline_mode = #tpu.pipeline_mode<synchronous>, transform_indices = @transform_18, window_bounds = array<i64: 1, 28>}, {transform_indices = @transform_19, window_bounds = array<i64: 1, 28, 28>}]} {
    %c0 = arith.constant 0 : index
    %c0_0 = arith.constant 0 : index
    %c0_1 = arith.constant 0 : index
    %0 = vector.load %arg1[%c0, %c0_0, %c0_1] : memref<1x28x28xbf16, #tpu.memory_space<vmem>>, vector<1x28x28xbf16>
    %1 = vector.shape_cast %0 : vector<1x28x28xbf16> to vector<28x28xbf16>
    %c0_2 = arith.constant 0 : index
    %c0_3 = arith.constant 0 : index
    %c0_4 = arith.constant 0 : index
    %2 = vector.load %arg2[%c0_2, %c0_3, %c0_4] : memref<5x14x28xbf16, #tpu.memory_space<vmem>>, vector<1x14x28xbf16>
    %3 = vector.shape_cast %2 : vector<1x14x28xbf16> to vector<14x28xbf16>
    %cst = arith.constant dense<0.000000e+00> : vector<14x28xf32>
    %4 = tpu.matmul %3, %1, %cst {dimension_numbers = #tpu.dot_dimension_numbers<[1], [0], [0], [1], [0, 0, 1, 1], [], []>} : vector<14x28xbf16>, vector<28x28xbf16>, vector<14x28xf32> -> vector<14x28xf32>
    %5 = arith.truncf %4 : vector<14x28xf32> to vector<14x28xbf16>
    %c0_5 = arith.constant 0 : index
    %c0_6 = arith.constant 0 : index
    %c0_7 = arith.constant 0 : index
    %6 = vector.load %arg3[%c0_5, %c0_6, %c0_7] : memref<5x28x224xbf16, #tpu.memory_space<vmem>>, vector<1x28x224xbf16>
    %7 = vector.shape_cast %6 : vector<1x28x224xbf16> to vector<28x224xbf16>
    %cst_8 = arith.constant dense<0.000000e+00> : vector<14x224xf32>
    %8 = tpu.matmul %5, %7, %cst_8 {dimension_numbers = #tpu.dot_dimension_numbers<[1], [0], [0], [1], [0, 0, 1, 1], [], []>} : vector<14x28xbf16>, vector<28x224xbf16>, vector<14x224xf32> -> vector<14x224xf32>
    %c1 = arith.constant 1 : index
    %c0_9 = arith.constant 0 : index
    %c0_10 = arith.constant 0 : index
    %9 = vector.load %arg2[%c1, %c0_9, %c0_10] : memref<5x14x28xbf16, #tpu.memory_space<vmem>>, vector<1x14x28xbf16>
    %10 = vector.shape_cast %9 : vector<1x14x28xbf16> to vector<14x28xbf16>
    %cst_11 = arith.constant dense<0.000000e+00> : vector<14x28xf32>
    %11 = tpu.matmul %10, %1, %cst_11 {dimension_numbers = #tpu.dot_dimension_numbers<[1], [0], [0], [1], [0, 0, 1, 1], [], []>} : vector<14x28xbf16>, vector<28x28xbf16>, vector<14x28xf32> -> vector<14x28xf32>
    %12 = arith.truncf %11 : vector<14x28xf32> to vector<14x28xbf16>
    %c1_12 = arith.constant 1 : index
    %c0_13 = arith.constant 0 : index
    %c0_14 = arith.constant 0 : index
    %13 = vector.load %arg3[%c1_12, %c0_13, %c0_14] : memref<5x28x224xbf16, #tpu.memory_space<vmem>>, vector<1x28x224xbf16>
    %14 = vector.shape_cast %13 : vector<1x28x224xbf16> to vector<28x224xbf16>
    %cst_15 = arith.constant dense<0.000000e+00> : vector<14x224xf32>
    %15 = tpu.matmul %12, %14, %cst_15 {dimension_numbers = #tpu.dot_dimension_numbers<[1], [0], [0], [1], [0, 0, 1, 1], [], []>} : vector<14x28xbf16>, vector<28x224xbf16>, vector<14x224xf32> -> vector<14x224xf32>
    %16 = arith.addf %8, %15 : vector<14x224xf32>
    %c2 = arith.constant 2 : index
    %c0_16 = arith.constant 0 : index
    %c0_17 = arith.constant 0 : index
    %17 = vector.load %arg2[%c2, %c0_16, %c0_17] : memref<5x14x28xbf16, #tpu.memory_space<vmem>>, vector<1x14x28xbf16>
    %18 = vector.shape_cast %17 : vector<1x14x28xbf16> to vector<14x28xbf16>
    %cst_18 = arith.constant dense<0.000000e+00> : vector<14x28xf32>
    %19 = tpu.matmul %18, %1, %cst_18 {dimension_numbers = #tpu.dot_dimension_numbers<[1], [0], [0], [1], [0, 0, 1, 1], [], []>} : vector<14x28xbf16>, vector<28x28xbf16>, vector<14x28xf32> -> vector<14x28xf32>
    %20 = arith.truncf %19 : vector<14x28xf32> to vector<14x28xbf16>
    %c2_19 = arith.constant 2 : index
    %c0_20 = arith.constant 0 : index
    %c0_21 = arith.constant 0 : index
    %21 = vector.load %arg3[%c2_19, %c0_20, %c0_21] : memref<5x28x224xbf16, #tpu.memory_space<vmem>>, vector<1x28x224xbf16>
    %22 = vector.shape_cast %21 : vector<1x28x224xbf16> to vector<28x224xbf16>
    %cst_22 = arith.constant dense<0.000000e+00> : vector<14x224xf32>
    %23 = tpu.matmul %20, %22, %cst_22 {dimension_numbers = #tpu.dot_dimension_numbers<[1], [0], [0], [1], [0, 0, 1, 1], [], []>} : vector<14x28xbf16>, vector<28x224xbf16>, vector<14x224xf32> -> vector<14x224xf32>
    %24 = arith.addf %16, %23 : vector<14x224xf32>
    %c3 = arith.constant 3 : index
    %c0_23 = arith.constant 0 : index
    %c0_24 = arith.constant 0 : index
    %25 = vector.load %arg2[%c3, %c0_23, %c0_24] : memref<5x14x28xbf16, #tpu.memory_space<vmem>>, vector<1x14x28xbf16>
    %26 = vector.shape_cast %25 : vector<1x14x28xbf16> to vector<14x28xbf16>
    %cst_25 = arith.constant dense<0.000000e+00> : vector<14x28xf32>
    %27 = tpu.matmul %26, %1, %cst_25 {dimension_numbers = #tpu.dot_dimension_numbers<[1], [0], [0], [1], [0, 0, 1, 1], [], []>} : vector<14x28xbf16>, vector<28x28xbf16>, vector<14x28xf32> -> vector<14x28xf32>
    %28 = arith.truncf %27 : vector<14x28xf32> to vector<14x28xbf16>
    %c3_26 = arith.constant 3 : index
    %c0_27 = arith.constant 0 : index
    %c0_28 = arith.constant 0 : index
    %29 = vector.load %arg3[%c3_26, %c0_27, %c0_28] : memref<5x28x224xbf16, #tpu.memory_space<vmem>>, vector<1x28x224xbf16>
    %30 = vector.shape_cast %29 : vector<1x28x224xbf16> to vector<28x224xbf16>
    %cst_29 = arith.constant dense<0.000000e+00> : vector<14x224xf32>
    %31 = tpu.matmul %28, %30, %cst_29 {dimension_numbers = #tpu.dot_dimension_numbers<[1], [0], [0], [1], [0, 0, 1, 1], [], []>} : vector<14x28xbf16>, vector<28x224xbf16>, vector<14x224xf32> -> vector<14x224xf32>
    %32 = arith.addf %24, %31 : vector<14x224xf32>
    %c4 = arith.constant 4 : index
    %c0_30 = arith.constant 0 : index
    %c0_31 = arith.constant 0 : index
    %33 = vector.load %arg2[%c4, %c0_30, %c0_31] : memref<5x14x28xbf16, #tpu.memory_space<vmem>>, vector<1x14x28xbf16>
    %34 = vector.shape_cast %33 : vector<1x14x28xbf16> to vector<14x28xbf16>
    %cst_32 = arith.constant dense<0.000000e+00> : vector<14x28xf32>
    %35 = tpu.matmul %34, %1, %cst_32 {dimension_numbers = #tpu.dot_dimension_numbers<[1], [0], [0], [1], [0, 0, 1, 1], [], []>} : vector<14x28xbf16>, vector<28x28xbf16>, vector<14x28xf32> -> vector<14x28xf32>
    %36 = arith.truncf %35 : vector<14x28xf32> to vector<14x28xbf16>
    %c4_33 = arith.constant 4 : index
    %c0_34 = arith.constant 0 : index
    %c0_35 = arith.constant 0 : index
    %37 = vector.load %arg3[%c4_33, %c0_34, %c0_35] : memref<5x28x224xbf16, #tpu.memory_space<vmem>>, vector<1x28x224xbf16>
    %38 = vector.shape_cast %37 : vector<1x28x224xbf16> to vector<28x224xbf16>
    %cst_36 = arith.constant dense<0.000000e+00> : vector<14x224xf32>
    %39 = tpu.matmul %36, %38, %cst_36 {dimension_numbers = #tpu.dot_dimension_numbers<[1], [0], [0], [1], [0, 0, 1, 1], [], []>} : vector<14x28xbf16>, vector<28x224xbf16>, vector<14x224xf32> -> vector<14x224xf32>
    %40 = arith.addf %32, %39 : vector<14x224xf32>
    %c0_37 = arith.constant 0 : index
    %c0_38 = arith.constant 0 : index
    %41 = vector.load %arg4[%c0_37, %c0_38] : memref<1x224xf32, #tpu.memory_space<vmem>>, vector<1x224xf32>
    %42 = vector.broadcast %41 : vector<1x224xf32> to vector<14x224xf32>
    %43 = arith.addf %40, %42 : vector<14x224xf32>
    %cst_39 = arith.constant 0.000000e+00 : f32
    %44 = vector.broadcast %cst_39 : f32 to vector<14x224xf32>
    %45 = arith.maximumf %43, %44 : vector<14x224xf32>
    %46 = arith.truncf %45 : vector<14x224xf32> to vector<14x224xbf16>
    %c0_40 = arith.constant 0 : index
    %c0_41 = arith.constant 0 : index
    %c0_42 = arith.constant 0 : index
    %47 = vector.load %arg5[%c0_40, %c0_41, %c0_42] : memref<5x7x14xbf16, #tpu.memory_space<vmem>>, vector<1x7x14xbf16>
    %48 = vector.shape_cast %47 : vector<1x7x14xbf16> to vector<7x14xbf16>
    %cst_43 = arith.constant dense<0.000000e+00> : vector<7x224xf32>
    %49 = tpu.matmul %48, %46, %cst_43 {dimension_numbers = #tpu.dot_dimension_numbers<[1], [0], [0], [1], [0, 0, 1, 1], [], []>} : vector<7x14xbf16>, vector<14x224xbf16>, vector<7x224xf32> -> vector<7x224xf32>
    %50 = arith.truncf %49 : vector<7x224xf32> to vector<7x224xbf16>
    %c0_44 = arith.constant 0 : index
    %c0_45 = arith.constant 0 : index
    %c0_46 = arith.constant 0 : index
    %51 = vector.load %arg6[%c0_44, %c0_45, %c0_46] : memref<5x224x224xbf16, #tpu.memory_space<vmem>>, vector<1x224x224xbf16>
    %52 = vector.shape_cast %51 : vector<1x224x224xbf16> to vector<224x224xbf16>
    %cst_47 = arith.constant dense<0.000000e+00> : vector<7x224xf32>
    %53 = tpu.matmul %50, %52, %cst_47 {dimension_numbers = #tpu.dot_dimension_numbers<[1], [0], [0], [1], [0, 0, 1, 1], [], []>} : vector<7x224xbf16>, vector<224x224xbf16>, vector<7x224xf32> -> vector<7x224xf32>
    %c1_48 = arith.constant 1 : index
    %c0_49 = arith.constant 0 : index
    %c0_50 = arith.constant 0 : index
    %54 = vector.load %arg5[%c1_48, %c0_49, %c0_50] : memref<5x7x14xbf16, #tpu.memory_space<vmem>>, vector<1x7x14xbf16>
    %55 = vector.shape_cast %54 : vector<1x7x14xbf16> to vector<7x14xbf16>
    %cst_51 = arith.constant dense<0.000000e+00> : vector<7x224xf32>
    %56 = tpu.matmul %55, %46, %cst_51 {dimension_numbers = #tpu.dot_dimension_numbers<[1], [0], [0], [1], [0, 0, 1, 1], [], []>} : vector<7x14xbf16>, vector<14x224xbf16>, vector<7x224xf32> -> vector<7x224xf32>
    %57 = arith.truncf %56 : vector<7x224xf32> to vector<7x224xbf16>
    %c1_52 = arith.constant 1 : index
    %c0_53 = arith.constant 0 : index
    %c0_54 = arith.constant 0 : index
    %58 = vector.load %arg6[%c1_52, %c0_53, %c0_54] : memref<5x224x224xbf16, #tpu.memory_space<vmem>>, vector<1x224x224xbf16>
    %59 = vector.shape_cast %58 : vector<1x224x224xbf16> to vector<224x224xbf16>
    %cst_55 = arith.constant dense<0.000000e+00> : vector<7x224xf32>
    %60 = tpu.matmul %57, %59, %cst_55 {dimension_numbers = #tpu.dot_dimension_numbers<[1], [0], [0], [1], [0, 0, 1, 1], [], []>} : vector<7x224xbf16>, vector<224x224xbf16>, vector<7x224xf32> -> vector<7x224xf32>
    %61 = arith.addf %53, %60 : vector<7x224xf32>
    %c2_56 = arith.constant 2 : index
    %c0_57 = arith.constant 0 : index
    %c0_58 = arith.constant 0 : index
    %62 = vector.load %arg5[%c2_56, %c0_57, %c0_58] : memref<5x7x14xbf16, #tpu.memory_space<vmem>>, vector<1x7x14xbf16>
    %63 = vector.shape_cast %62 : vector<1x7x14xbf16> to vector<7x14xbf16>
    %cst_59 = arith.constant dense<0.000000e+00> : vector<7x224xf32>
    %64 = tpu.matmul %63, %46, %cst_59 {dimension_numbers = #tpu.dot_dimension_numbers<[1], [0], [0], [1], [0, 0, 1, 1], [], []>} : vector<7x14xbf16>, vector<14x224xbf16>, vector<7x224xf32> -> vector<7x224xf32>
    %65 = arith.truncf %64 : vector<7x224xf32> to vector<7x224xbf16>
    %c2_60 = arith.constant 2 : index
    %c0_61 = arith.constant 0 : index
    %c0_62 = arith.constant 0 : index
    %66 = vector.load %arg6[%c2_60, %c0_61, %c0_62] : memref<5x224x224xbf16, #tpu.memory_space<vmem>>, vector<1x224x224xbf16>
    %67 = vector.shape_cast %66 : vector<1x224x224xbf16> to vector<224x224xbf16>
    %cst_63 = arith.constant dense<0.000000e+00> : vector<7x224xf32>
    %68 = tpu.matmul %65, %67, %cst_63 {dimension_numbers = #tpu.dot_dimension_numbers<[1], [0], [0], [1], [0, 0, 1, 1], [], []>} : vector<7x224xbf16>, vector<224x224xbf16>, vector<7x224xf32> -> vector<7x224xf32>
    %69 = arith.addf %61, %68 : vector<7x224xf32>
    %c3_64 = arith.constant 3 : index
    %c0_65 = arith.constant 0 : index
    %c0_66 = arith.constant 0 : index
    %70 = vector.load %arg5[%c3_64, %c0_65, %c0_66] : memref<5x7x14xbf16, #tpu.memory_space<vmem>>, vector<1x7x14xbf16>
    %71 = vector.shape_cast %70 : vector<1x7x14xbf16> to vector<7x14xbf16>
    %cst_67 = arith.constant dense<0.000000e+00> : vector<7x224xf32>
    %72 = tpu.matmul %71, %46, %cst_67 {dimension_numbers = #tpu.dot_dimension_numbers<[1], [0], [0], [1], [0, 0, 1, 1], [], []>} : vector<7x14xbf16>, vector<14x224xbf16>, vector<7x224xf32> -> vector<7x224xf32>
    %73 = arith.truncf %72 : vector<7x224xf32> to vector<7x224xbf16>
    %c3_68 = arith.constant 3 : index
    %c0_69 = arith.constant 0 : index
    %c0_70 = arith.constant 0 : index
    %74 = vector.load %arg6[%c3_68, %c0_69, %c0_70] : memref<5x224x224xbf16, #tpu.memory_space<vmem>>, vector<1x224x224xbf16>
    %75 = vector.shape_cast %74 : vector<1x224x224xbf16> to vector<224x224xbf16>
    %cst_71 = arith.constant dense<0.000000e+00> : vector<7x224xf32>
    %76 = tpu.matmul %73, %75, %cst_71 {dimension_numbers = #tpu.dot_dimension_numbers<[1], [0], [0], [1], [0, 0, 1, 1], [], []>} : vector<7x224xbf16>, vector<224x224xbf16>, vector<7x224xf32> -> vector<7x224xf32>
    %77 = arith.addf %69, %76 : vector<7x224xf32>
    %c4_72 = arith.constant 4 : index
    %c0_73 = arith.constant 0 : index
    %c0_74 = arith.constant 0 : index
    %78 = vector.load %arg5[%c4_72, %c0_73, %c0_74] : memref<5x7x14xbf16, #tpu.memory_space<vmem>>, vector<1x7x14xbf16>
    %79 = vector.shape_cast %78 : vector<1x7x14xbf16> to vector<7x14xbf16>
    %cst_75 = arith.constant dense<0.000000e+00> : vector<7x224xf32>
    %80 = tpu.matmul %79, %46, %cst_75 {dimension_numbers = #tpu.dot_dimension_numbers<[1], [0], [0], [1], [0, 0, 1, 1], [], []>} : vector<7x14xbf16>, vector<14x224xbf16>, vector<7x224xf32> -> vector<7x224xf32>
    %81 = arith.truncf %80 : vector<7x224xf32> to vector<7x224xbf16>
    %c4_76 = arith.constant 4 : index
    %c0_77 = arith.constant 0 : index
    %c0_78 = arith.constant 0 : index
    %82 = vector.load %arg6[%c4_76, %c0_77, %c0_78] : memref<5x224x224xbf16, #tpu.memory_space<vmem>>, vector<1x224x224xbf16>
    %83 = vector.shape_cast %82 : vector<1x224x224xbf16> to vector<224x224xbf16>
    %cst_79 = arith.constant dense<0.000000e+00> : vector<7x224xf32>
    %84 = tpu.matmul %81, %83, %cst_79 {dimension_numbers = #tpu.dot_dimension_numbers<[1], [0], [0], [1], [0, 0, 1, 1], [], []>} : vector<7x224xbf16>, vector<224x224xbf16>, vector<7x224xf32> -> vector<7x224xf32>
    %85 = arith.addf %77, %84 : vector<7x224xf32>
    %c0_80 = arith.constant 0 : index
    %c0_81 = arith.constant 0 : index
    %86 = vector.load %arg7[%c0_80, %c0_81] : memref<1x224xf32, #tpu.memory_space<vmem>>, vector<1x224xf32>
    %87 = vector.broadcast %86 : vector<1x224xf32> to vector<7x224xf32>
    %88 = arith.addf %85, %87 : vector<7x224xf32>
    %cst_82 = arith.constant 0.000000e+00 : f32
    %89 = vector.broadcast %cst_82 : f32 to vector<7x224xf32>
    %90 = arith.maximumf %88, %89 : vector<7x224xf32>
    %91 = arith.truncf %90 : vector<7x224xf32> to vector<7x224xbf16>
    %c0_83 = arith.constant 0 : index
    %c0_84 = arith.constant 0 : index
    %c0_85 = arith.constant 0 : index
    %92 = vector.load %arg8[%c0_83, %c0_84, %c0_85] : memref<5x4x7xbf16, #tpu.memory_space<vmem>>, vector<1x4x7xbf16>
    %93 = vector.shape_cast %92 : vector<1x4x7xbf16> to vector<4x7xbf16>
    %cst_86 = arith.constant dense<0.000000e+00> : vector<4x224xf32>
    %94 = tpu.matmul %93, %91, %cst_86 {dimension_numbers = #tpu.dot_dimension_numbers<[1], [0], [0], [1], [0, 0, 1, 1], [], []>} : vector<4x7xbf16>, vector<7x224xbf16>, vector<4x224xf32> -> vector<4x224xf32>
    %95 = arith.truncf %94 : vector<4x224xf32> to vector<4x224xbf16>
    %c0_87 = arith.constant 0 : index
    %c0_88 = arith.constant 0 : index
    %c0_89 = arith.constant 0 : index
    %96 = vector.load %arg9[%c0_87, %c0_88, %c0_89] : memref<5x224x128xbf16, #tpu.memory_space<vmem>>, vector<1x224x128xbf16>
    %97 = vector.shape_cast %96 : vector<1x224x128xbf16> to vector<224x128xbf16>
    %cst_90 = arith.constant dense<0.000000e+00> : vector<4x128xf32>
    %98 = tpu.matmul %95, %97, %cst_90 {dimension_numbers = #tpu.dot_dimension_numbers<[1], [0], [0], [1], [0, 0, 1, 1], [], []>} : vector<4x224xbf16>, vector<224x128xbf16>, vector<4x128xf32> -> vector<4x128xf32>
    %c1_91 = arith.constant 1 : index
    %c0_92 = arith.constant 0 : index
    %c0_93 = arith.constant 0 : index
    %99 = vector.load %arg8[%c1_91, %c0_92, %c0_93] : memref<5x4x7xbf16, #tpu.memory_space<vmem>>, vector<1x4x7xbf16>
    %100 = vector.shape_cast %99 : vector<1x4x7xbf16> to vector<4x7xbf16>
    %cst_94 = arith.constant dense<0.000000e+00> : vector<4x224xf32>
    %101 = tpu.matmul %100, %91, %cst_94 {dimension_numbers = #tpu.dot_dimension_numbers<[1], [0], [0], [1], [0, 0, 1, 1], [], []>} : vector<4x7xbf16>, vector<7x224xbf16>, vector<4x224xf32> -> vector<4x224xf32>
    %102 = arith.truncf %101 : vector<4x224xf32> to vector<4x224xbf16>
    %c1_95 = arith.constant 1 : index
    %c0_96 = arith.constant 0 : index
    %c0_97 = arith.constant 0 : index
    %103 = vector.load %arg9[%c1_95, %c0_96, %c0_97] : memref<5x224x128xbf16, #tpu.memory_space<vmem>>, vector<1x224x128xbf16>
    %104 = vector.shape_cast %103 : vector<1x224x128xbf16> to vector<224x128xbf16>
    %cst_98 = arith.constant dense<0.000000e+00> : vector<4x128xf32>
    %105 = tpu.matmul %102, %104, %cst_98 {dimension_numbers = #tpu.dot_dimension_numbers<[1], [0], [0], [1], [0, 0, 1, 1], [], []>} : vector<4x224xbf16>, vector<224x128xbf16>, vector<4x128xf32> -> vector<4x128xf32>
    %106 = arith.addf %98, %105 : vector<4x128xf32>
    %c2_99 = arith.constant 2 : index
    %c0_100 = arith.constant 0 : index
    %c0_101 = arith.constant 0 : index
    %107 = vector.load %arg8[%c2_99, %c0_100, %c0_101] : memref<5x4x7xbf16, #tpu.memory_space<vmem>>, vector<1x4x7xbf16>
    %108 = vector.shape_cast %107 : vector<1x4x7xbf16> to vector<4x7xbf16>
    %cst_102 = arith.constant dense<0.000000e+00> : vector<4x224xf32>
    %109 = tpu.matmul %108, %91, %cst_102 {dimension_numbers = #tpu.dot_dimension_numbers<[1], [0], [0], [1], [0, 0, 1, 1], [], []>} : vector<4x7xbf16>, vector<7x224xbf16>, vector<4x224xf32> -> vector<4x224xf32>
    %110 = arith.truncf %109 : vector<4x224xf32> to vector<4x224xbf16>
    %c2_103 = arith.constant 2 : index
    %c0_104 = arith.constant 0 : index
    %c0_105 = arith.constant 0 : index
    %111 = vector.load %arg9[%c2_103, %c0_104, %c0_105] : memref<5x224x128xbf16, #tpu.memory_space<vmem>>, vector<1x224x128xbf16>
    %112 = vector.shape_cast %111 : vector<1x224x128xbf16> to vector<224x128xbf16>
    %cst_106 = arith.constant dense<0.000000e+00> : vector<4x128xf32>
    %113 = tpu.matmul %110, %112, %cst_106 {dimension_numbers = #tpu.dot_dimension_numbers<[1], [0], [0], [1], [0, 0, 1, 1], [], []>} : vector<4x224xbf16>, vector<224x128xbf16>, vector<4x128xf32> -> vector<4x128xf32>
    %114 = arith.addf %106, %113 : vector<4x128xf32>
    %c3_107 = arith.constant 3 : index
    %c0_108 = arith.constant 0 : index
    %c0_109 = arith.constant 0 : index
    %115 = vector.load %arg8[%c3_107, %c0_108, %c0_109] : memref<5x4x7xbf16, #tpu.memory_space<vmem>>, vector<1x4x7xbf16>
    %116 = vector.shape_cast %115 : vector<1x4x7xbf16> to vector<4x7xbf16>
    %cst_110 = arith.constant dense<0.000000e+00> : vector<4x224xf32>
    %117 = tpu.matmul %116, %91, %cst_110 {dimension_numbers = #tpu.dot_dimension_numbers<[1], [0], [0], [1], [0, 0, 1, 1], [], []>} : vector<4x7xbf16>, vector<7x224xbf16>, vector<4x224xf32> -> vector<4x224xf32>
    %118 = arith.truncf %117 : vector<4x224xf32> to vector<4x224xbf16>
    %c3_111 = arith.constant 3 : index
    %c0_112 = arith.constant 0 : index
    %c0_113 = arith.constant 0 : index
    %119 = vector.load %arg9[%c3_111, %c0_112, %c0_113] : memref<5x224x128xbf16, #tpu.memory_space<vmem>>, vector<1x224x128xbf16>
    %120 = vector.shape_cast %119 : vector<1x224x128xbf16> to vector<224x128xbf16>
    %cst_114 = arith.constant dense<0.000000e+00> : vector<4x128xf32>
    %121 = tpu.matmul %118, %120, %cst_114 {dimension_numbers = #tpu.dot_dimension_numbers<[1], [0], [0], [1], [0, 0, 1, 1], [], []>} : vector<4x224xbf16>, vector<224x128xbf16>, vector<4x128xf32> -> vector<4x128xf32>
    %122 = arith.addf %114, %121 : vector<4x128xf32>
    %c4_115 = arith.constant 4 : index
    %c0_116 = arith.constant 0 : index
    %c0_117 = arith.constant 0 : index
    %123 = vector.load %arg8[%c4_115, %c0_116, %c0_117] : memref<5x4x7xbf16, #tpu.memory_space<vmem>>, vector<1x4x7xbf16>
    %124 = vector.shape_cast %123 : vector<1x4x7xbf16> to vector<4x7xbf16>
    %cst_118 = arith.constant dense<0.000000e+00> : vector<4x224xf32>
    %125 = tpu.matmul %124, %91, %cst_118 {dimension_numbers = #tpu.dot_dimension_numbers<[1], [0], [0], [1], [0, 0, 1, 1], [], []>} : vector<4x7xbf16>, vector<7x224xbf16>, vector<4x224xf32> -> vector<4x224xf32>
    %126 = arith.truncf %125 : vector<4x224xf32> to vector<4x224xbf16>
    %c4_119 = arith.constant 4 : index
    %c0_120 = arith.constant 0 : index
    %c0_121 = arith.constant 0 : index
    %127 = vector.load %arg9[%c4_119, %c0_120, %c0_121] : memref<5x224x128xbf16, #tpu.memory_space<vmem>>, vector<1x224x128xbf16>
    %128 = vector.shape_cast %127 : vector<1x224x128xbf16> to vector<224x128xbf16>
    %cst_122 = arith.constant dense<0.000000e+00> : vector<4x128xf32>
    %129 = tpu.matmul %126, %128, %cst_122 {dimension_numbers = #tpu.dot_dimension_numbers<[1], [0], [0], [1], [0, 0, 1, 1], [], []>} : vector<4x224xbf16>, vector<224x128xbf16>, vector<4x128xf32> -> vector<4x128xf32>
    %130 = arith.addf %122, %129 : vector<4x128xf32>
    %c0_123 = arith.constant 0 : index
    %c0_124 = arith.constant 0 : index
    %131 = vector.load %arg10[%c0_123, %c0_124] : memref<1x128xf32, #tpu.memory_space<vmem>>, vector<1x128xf32>
    %132 = vector.broadcast %131 : vector<1x128xf32> to vector<4x128xf32>
    %133 = arith.addf %130, %132 : vector<4x128xf32>
    %cst_125 = arith.constant 0.000000e+00 : f32
    %134 = vector.broadcast %cst_125 : f32 to vector<4x128xf32>
    %135 = arith.maximumf %133, %134 : vector<4x128xf32>
    %136 = arith.truncf %135 : vector<4x128xf32> to vector<4x128xbf16>
    %c0_126 = arith.constant 0 : index
    %c0_127 = arith.constant 0 : index
    %c0_128 = arith.constant 0 : index
    %137 = vector.load %arg11[%c0_126, %c0_127, %c0_128] : memref<5x7x4xbf16, #tpu.memory_space<vmem>>, vector<1x7x4xbf16>
    %138 = vector.shape_cast %137 : vector<1x7x4xbf16> to vector<7x4xbf16>
    %cst_129 = arith.constant dense<0.000000e+00> : vector<7x128xf32>
    %139 = tpu.matmul %138, %136, %cst_129 {dimension_numbers = #tpu.dot_dimension_numbers<[1], [0], [0], [1], [0, 0, 1, 1], [], []>} : vector<7x4xbf16>, vector<4x128xbf16>, vector<7x128xf32> -> vector<7x128xf32>
    %140 = arith.truncf %139 : vector<7x128xf32> to vector<7x128xbf16>
    %c0_130 = arith.constant 0 : index
    %c0_131 = arith.constant 0 : index
    %c0_132 = arith.constant 0 : index
    %141 = vector.load %arg12[%c0_130, %c0_131, %c0_132] : memref<5x128x224xbf16, #tpu.memory_space<vmem>>, vector<1x128x224xbf16>
    %142 = vector.shape_cast %141 : vector<1x128x224xbf16> to vector<128x224xbf16>
    %cst_133 = arith.constant dense<0.000000e+00> : vector<7x224xf32>
    %143 = tpu.matmul %140, %142, %cst_133 {dimension_numbers = #tpu.dot_dimension_numbers<[1], [0], [0], [1], [0, 0, 1, 1], [], []>} : vector<7x128xbf16>, vector<128x224xbf16>, vector<7x224xf32> -> vector<7x224xf32>
    %c1_134 = arith.constant 1 : index
    %c0_135 = arith.constant 0 : index
    %c0_136 = arith.constant 0 : index
    %144 = vector.load %arg11[%c1_134, %c0_135, %c0_136] : memref<5x7x4xbf16, #tpu.memory_space<vmem>>, vector<1x7x4xbf16>
    %145 = vector.shape_cast %144 : vector<1x7x4xbf16> to vector<7x4xbf16>
    %cst_137 = arith.constant dense<0.000000e+00> : vector<7x128xf32>
    %146 = tpu.matmul %145, %136, %cst_137 {dimension_numbers = #tpu.dot_dimension_numbers<[1], [0], [0], [1], [0, 0, 1, 1], [], []>} : vector<7x4xbf16>, vector<4x128xbf16>, vector<7x128xf32> -> vector<7x128xf32>
    %147 = arith.truncf %146 : vector<7x128xf32> to vector<7x128xbf16>
    %c1_138 = arith.constant 1 : index
    %c0_139 = arith.constant 0 : index
    %c0_140 = arith.constant 0 : index
    %148 = vector.load %arg12[%c1_138, %c0_139, %c0_140] : memref<5x128x224xbf16, #tpu.memory_space<vmem>>, vector<1x128x224xbf16>
    %149 = vector.shape_cast %148 : vector<1x128x224xbf16> to vector<128x224xbf16>
    %cst_141 = arith.constant dense<0.000000e+00> : vector<7x224xf32>
    %150 = tpu.matmul %147, %149, %cst_141 {dimension_numbers = #tpu.dot_dimension_numbers<[1], [0], [0], [1], [0, 0, 1, 1], [], []>} : vector<7x128xbf16>, vector<128x224xbf16>, vector<7x224xf32> -> vector<7x224xf32>
    %151 = arith.addf %143, %150 : vector<7x224xf32>
    %c2_142 = arith.constant 2 : index
    %c0_143 = arith.constant 0 : index
    %c0_144 = arith.constant 0 : index
    %152 = vector.load %arg11[%c2_142, %c0_143, %c0_144] : memref<5x7x4xbf16, #tpu.memory_space<vmem>>, vector<1x7x4xbf16>
    %153 = vector.shape_cast %152 : vector<1x7x4xbf16> to vector<7x4xbf16>
    %cst_145 = arith.constant dense<0.000000e+00> : vector<7x128xf32>
    %154 = tpu.matmul %153, %136, %cst_145 {dimension_numbers = #tpu.dot_dimension_numbers<[1], [0], [0], [1], [0, 0, 1, 1], [], []>} : vector<7x4xbf16>, vector<4x128xbf16>, vector<7x128xf32> -> vector<7x128xf32>
    %155 = arith.truncf %154 : vector<7x128xf32> to vector<7x128xbf16>
    %c2_146 = arith.constant 2 : index
    %c0_147 = arith.constant 0 : index
    %c0_148 = arith.constant 0 : index
    %156 = vector.load %arg12[%c2_146, %c0_147, %c0_148] : memref<5x128x224xbf16, #tpu.memory_space<vmem>>, vector<1x128x224xbf16>
    %157 = vector.shape_cast %156 : vector<1x128x224xbf16> to vector<128x224xbf16>
    %cst_149 = arith.constant dense<0.000000e+00> : vector<7x224xf32>
    %158 = tpu.matmul %155, %157, %cst_149 {dimension_numbers = #tpu.dot_dimension_numbers<[1], [0], [0], [1], [0, 0, 1, 1], [], []>} : vector<7x128xbf16>, vector<128x224xbf16>, vector<7x224xf32> -> vector<7x224xf32>
    %159 = arith.addf %151, %158 : vector<7x224xf32>
    %c3_150 = arith.constant 3 : index
    %c0_151 = arith.constant 0 : index
    %c0_152 = arith.constant 0 : index
    %160 = vector.load %arg11[%c3_150, %c0_151, %c0_152] : memref<5x7x4xbf16, #tpu.memory_space<vmem>>, vector<1x7x4xbf16>
    %161 = vector.shape_cast %160 : vector<1x7x4xbf16> to vector<7x4xbf16>
    %cst_153 = arith.constant dense<0.000000e+00> : vector<7x128xf32>
    %162 = tpu.matmul %161, %136, %cst_153 {dimension_numbers = #tpu.dot_dimension_numbers<[1], [0], [0], [1], [0, 0, 1, 1], [], []>} : vector<7x4xbf16>, vector<4x128xbf16>, vector<7x128xf32> -> vector<7x128xf32>
    %163 = arith.truncf %162 : vector<7x128xf32> to vector<7x128xbf16>
    %c3_154 = arith.constant 3 : index
    %c0_155 = arith.constant 0 : index
    %c0_156 = arith.constant 0 : index
    %164 = vector.load %arg12[%c3_154, %c0_155, %c0_156] : memref<5x128x224xbf16, #tpu.memory_space<vmem>>, vector<1x128x224xbf16>
    %165 = vector.shape_cast %164 : vector<1x128x224xbf16> to vector<128x224xbf16>
    %cst_157 = arith.constant dense<0.000000e+00> : vector<7x224xf32>
    %166 = tpu.matmul %163, %165, %cst_157 {dimension_numbers = #tpu.dot_dimension_numbers<[1], [0], [0], [1], [0, 0, 1, 1], [], []>} : vector<7x128xbf16>, vector<128x224xbf16>, vector<7x224xf32> -> vector<7x224xf32>
    %167 = arith.addf %159, %166 : vector<7x224xf32>
    %c4_158 = arith.constant 4 : index
    %c0_159 = arith.constant 0 : index
    %c0_160 = arith.constant 0 : index
    %168 = vector.load %arg11[%c4_158, %c0_159, %c0_160] : memref<5x7x4xbf16, #tpu.memory_space<vmem>>, vector<1x7x4xbf16>
    %169 = vector.shape_cast %168 : vector<1x7x4xbf16> to vector<7x4xbf16>
    %cst_161 = arith.constant dense<0.000000e+00> : vector<7x128xf32>
    %170 = tpu.matmul %169, %136, %cst_161 {dimension_numbers = #tpu.dot_dimension_numbers<[1], [0], [0], [1], [0, 0, 1, 1], [], []>} : vector<7x4xbf16>, vector<4x128xbf16>, vector<7x128xf32> -> vector<7x128xf32>
    %171 = arith.truncf %170 : vector<7x128xf32> to vector<7x128xbf16>
    %c4_162 = arith.constant 4 : index
    %c0_163 = arith.constant 0 : index
    %c0_164 = arith.constant 0 : index
    %172 = vector.load %arg12[%c4_162, %c0_163, %c0_164] : memref<5x128x224xbf16, #tpu.memory_space<vmem>>, vector<1x128x224xbf16>
    %173 = vector.shape_cast %172 : vector<1x128x224xbf16> to vector<128x224xbf16>
    %cst_165 = arith.constant dense<0.000000e+00> : vector<7x224xf32>
    %174 = tpu.matmul %171, %173, %cst_165 {dimension_numbers = #tpu.dot_dimension_numbers<[1], [0], [0], [1], [0, 0, 1, 1], [], []>} : vector<7x128xbf16>, vector<128x224xbf16>, vector<7x224xf32> -> vector<7x224xf32>
    %175 = arith.addf %167, %174 : vector<7x224xf32>
    %c0_166 = arith.constant 0 : index
    %c0_167 = arith.constant 0 : index
    %176 = vector.load %arg13[%c0_166, %c0_167] : memref<1x224xf32, #tpu.memory_space<vmem>>, vector<1x224xf32>
    %177 = vector.broadcast %176 : vector<1x224xf32> to vector<7x224xf32>
    %178 = arith.addf %175, %177 : vector<7x224xf32>
    %cst_168 = arith.constant 0.000000e+00 : f32
    %179 = vector.broadcast %cst_168 : f32 to vector<7x224xf32>
    %180 = arith.maximumf %178, %179 : vector<7x224xf32>
    %181 = arith.truncf %180 : vector<7x224xf32> to vector<7x224xbf16>
    %c0_169 = arith.constant 0 : index
    %c0_170 = arith.constant 0 : index
    %c0_171 = arith.constant 0 : index
    %182 = vector.load %arg14[%c0_169, %c0_170, %c0_171] : memref<5x14x7xbf16, #tpu.memory_space<vmem>>, vector<1x14x7xbf16>
    %183 = vector.shape_cast %182 : vector<1x14x7xbf16> to vector<14x7xbf16>
    %cst_172 = arith.constant dense<0.000000e+00> : vector<14x224xf32>
    %184 = tpu.matmul %183, %181, %cst_172 {dimension_numbers = #tpu.dot_dimension_numbers<[1], [0], [0], [1], [0, 0, 1, 1], [], []>} : vector<14x7xbf16>, vector<7x224xbf16>, vector<14x224xf32> -> vector<14x224xf32>
    %185 = arith.truncf %184 : vector<14x224xf32> to vector<14x224xbf16>
    %c0_173 = arith.constant 0 : index
    %c0_174 = arith.constant 0 : index
    %c0_175 = arith.constant 0 : index
    %186 = vector.load %arg15[%c0_173, %c0_174, %c0_175] : memref<5x224x224xbf16, #tpu.memory_space<vmem>>, vector<1x224x224xbf16>
    %187 = vector.shape_cast %186 : vector<1x224x224xbf16> to vector<224x224xbf16>
    %cst_176 = arith.constant dense<0.000000e+00> : vector<14x224xf32>
    %188 = tpu.matmul %185, %187, %cst_176 {dimension_numbers = #tpu.dot_dimension_numbers<[1], [0], [0], [1], [0, 0, 1, 1], [], []>} : vector<14x224xbf16>, vector<224x224xbf16>, vector<14x224xf32> -> vector<14x224xf32>
    %c1_177 = arith.constant 1 : index
    %c0_178 = arith.constant 0 : index
    %c0_179 = arith.constant 0 : index
    %189 = vector.load %arg14[%c1_177, %c0_178, %c0_179] : memref<5x14x7xbf16, #tpu.memory_space<vmem>>, vector<1x14x7xbf16>
    %190 = vector.shape_cast %189 : vector<1x14x7xbf16> to vector<14x7xbf16>
    %cst_180 = arith.constant dense<0.000000e+00> : vector<14x224xf32>
    %191 = tpu.matmul %190, %181, %cst_180 {dimension_numbers = #tpu.dot_dimension_numbers<[1], [0], [0], [1], [0, 0, 1, 1], [], []>} : vector<14x7xbf16>, vector<7x224xbf16>, vector<14x224xf32> -> vector<14x224xf32>
    %192 = arith.truncf %191 : vector<14x224xf32> to vector<14x224xbf16>
    %c1_181 = arith.constant 1 : index
    %c0_182 = arith.constant 0 : index
    %c0_183 = arith.constant 0 : index
    %193 = vector.load %arg15[%c1_181, %c0_182, %c0_183] : memref<5x224x224xbf16, #tpu.memory_space<vmem>>, vector<1x224x224xbf16>
    %194 = vector.shape_cast %193 : vector<1x224x224xbf16> to vector<224x224xbf16>
    %cst_184 = arith.constant dense<0.000000e+00> : vector<14x224xf32>
    %195 = tpu.matmul %192, %194, %cst_184 {dimension_numbers = #tpu.dot_dimension_numbers<[1], [0], [0], [1], [0, 0, 1, 1], [], []>} : vector<14x224xbf16>, vector<224x224xbf16>, vector<14x224xf32> -> vector<14x224xf32>
    %196 = arith.addf %188, %195 : vector<14x224xf32>
    %c2_185 = arith.constant 2 : index
    %c0_186 = arith.constant 0 : index
    %c0_187 = arith.constant 0 : index
    %197 = vector.load %arg14[%c2_185, %c0_186, %c0_187] : memref<5x14x7xbf16, #tpu.memory_space<vmem>>, vector<1x14x7xbf16>
    %198 = vector.shape_cast %197 : vector<1x14x7xbf16> to vector<14x7xbf16>
    %cst_188 = arith.constant dense<0.000000e+00> : vector<14x224xf32>
    %199 = tpu.matmul %198, %181, %cst_188 {dimension_numbers = #tpu.dot_dimension_numbers<[1], [0], [0], [1], [0, 0, 1, 1], [], []>} : vector<14x7xbf16>, vector<7x224xbf16>, vector<14x224xf32> -> vector<14x224xf32>
    %200 = arith.truncf %199 : vector<14x224xf32> to vector<14x224xbf16>
    %c2_189 = arith.constant 2 : index
    %c0_190 = arith.constant 0 : index
    %c0_191 = arith.constant 0 : index
    %201 = vector.load %arg15[%c2_189, %c0_190, %c0_191] : memref<5x224x224xbf16, #tpu.memory_space<vmem>>, vector<1x224x224xbf16>
    %202 = vector.shape_cast %201 : vector<1x224x224xbf16> to vector<224x224xbf16>
    %cst_192 = arith.constant dense<0.000000e+00> : vector<14x224xf32>
    %203 = tpu.matmul %200, %202, %cst_192 {dimension_numbers = #tpu.dot_dimension_numbers<[1], [0], [0], [1], [0, 0, 1, 1], [], []>} : vector<14x224xbf16>, vector<224x224xbf16>, vector<14x224xf32> -> vector<14x224xf32>
    %204 = arith.addf %196, %203 : vector<14x224xf32>
    %c3_193 = arith.constant 3 : index
    %c0_194 = arith.constant 0 : index
    %c0_195 = arith.constant 0 : index
    %205 = vector.load %arg14[%c3_193, %c0_194, %c0_195] : memref<5x14x7xbf16, #tpu.memory_space<vmem>>, vector<1x14x7xbf16>
    %206 = vector.shape_cast %205 : vector<1x14x7xbf16> to vector<14x7xbf16>
    %cst_196 = arith.constant dense<0.000000e+00> : vector<14x224xf32>
    %207 = tpu.matmul %206, %181, %cst_196 {dimension_numbers = #tpu.dot_dimension_numbers<[1], [0], [0], [1], [0, 0, 1, 1], [], []>} : vector<14x7xbf16>, vector<7x224xbf16>, vector<14x224xf32> -> vector<14x224xf32>
    %208 = arith.truncf %207 : vector<14x224xf32> to vector<14x224xbf16>
    %c3_197 = arith.constant 3 : index
    %c0_198 = arith.constant 0 : index
    %c0_199 = arith.constant 0 : index
    %209 = vector.load %arg15[%c3_197, %c0_198, %c0_199] : memref<5x224x224xbf16, #tpu.memory_space<vmem>>, vector<1x224x224xbf16>
    %210 = vector.shape_cast %209 : vector<1x224x224xbf16> to vector<224x224xbf16>
    %cst_200 = arith.constant dense<0.000000e+00> : vector<14x224xf32>
    %211 = tpu.matmul %208, %210, %cst_200 {dimension_numbers = #tpu.dot_dimension_numbers<[1], [0], [0], [1], [0, 0, 1, 1], [], []>} : vector<14x224xbf16>, vector<224x224xbf16>, vector<14x224xf32> -> vector<14x224xf32>
    %212 = arith.addf %204, %211 : vector<14x224xf32>
    %c4_201 = arith.constant 4 : index
    %c0_202 = arith.constant 0 : index
    %c0_203 = arith.constant 0 : index
    %213 = vector.load %arg14[%c4_201, %c0_202, %c0_203] : memref<5x14x7xbf16, #tpu.memory_space<vmem>>, vector<1x14x7xbf16>
    %214 = vector.shape_cast %213 : vector<1x14x7xbf16> to vector<14x7xbf16>
    %cst_204 = arith.constant dense<0.000000e+00> : vector<14x224xf32>
    %215 = tpu.matmul %214, %181, %cst_204 {dimension_numbers = #tpu.dot_dimension_numbers<[1], [0], [0], [1], [0, 0, 1, 1], [], []>} : vector<14x7xbf16>, vector<7x224xbf16>, vector<14x224xf32> -> vector<14x224xf32>
    %216 = arith.truncf %215 : vector<14x224xf32> to vector<14x224xbf16>
    %c4_205 = arith.constant 4 : index
    %c0_206 = arith.constant 0 : index
    %c0_207 = arith.constant 0 : index
    %217 = vector.load %arg15[%c4_205, %c0_206, %c0_207] : memref<5x224x224xbf16, #tpu.memory_space<vmem>>, vector<1x224x224xbf16>
    %218 = vector.shape_cast %217 : vector<1x224x224xbf16> to vector<224x224xbf16>
    %cst_208 = arith.constant dense<0.000000e+00> : vector<14x224xf32>
    %219 = tpu.matmul %216, %218, %cst_208 {dimension_numbers = #tpu.dot_dimension_numbers<[1], [0], [0], [1], [0, 0, 1, 1], [], []>} : vector<14x224xbf16>, vector<224x224xbf16>, vector<14x224xf32> -> vector<14x224xf32>
    %220 = arith.addf %212, %219 : vector<14x224xf32>
    %c0_209 = arith.constant 0 : index
    %c0_210 = arith.constant 0 : index
    %221 = vector.load %arg16[%c0_209, %c0_210] : memref<1x224xf32, #tpu.memory_space<vmem>>, vector<1x224xf32>
    %222 = vector.broadcast %221 : vector<1x224xf32> to vector<14x224xf32>
    %223 = arith.addf %220, %222 : vector<14x224xf32>
    %cst_211 = arith.constant 0.000000e+00 : f32
    %224 = vector.broadcast %cst_211 : f32 to vector<14x224xf32>
    %225 = arith.maximumf %223, %224 : vector<14x224xf32>
    %226 = arith.truncf %225 : vector<14x224xf32> to vector<14x224xbf16>
    %c0_212 = arith.constant 0 : index
    %c0_213 = arith.constant 0 : index
    %c0_214 = arith.constant 0 : index
    %227 = vector.load %arg17[%c0_212, %c0_213, %c0_214] : memref<5x28x14xbf16, #tpu.memory_space<vmem>>, vector<1x28x14xbf16>
    %228 = vector.shape_cast %227 : vector<1x28x14xbf16> to vector<28x14xbf16>
    %cst_215 = arith.constant dense<0.000000e+00> : vector<28x224xf32>
    %229 = tpu.matmul %228, %226, %cst_215 {dimension_numbers = #tpu.dot_dimension_numbers<[1], [0], [0], [1], [0, 0, 1, 1], [], []>} : vector<28x14xbf16>, vector<14x224xbf16>, vector<28x224xf32> -> vector<28x224xf32>
    %230 = arith.truncf %229 : vector<28x224xf32> to vector<28x224xbf16>
    %c0_216 = arith.constant 0 : index
    %c0_217 = arith.constant 0 : index
    %c0_218 = arith.constant 0 : index
    %231 = vector.load %arg18[%c0_216, %c0_217, %c0_218] : memref<5x224x28xbf16, #tpu.memory_space<vmem>>, vector<1x224x28xbf16>
    %232 = vector.shape_cast %231 : vector<1x224x28xbf16> to vector<224x28xbf16>
    %cst_219 = arith.constant dense<0.000000e+00> : vector<28x28xf32>
    %233 = tpu.matmul %230, %232, %cst_219 {dimension_numbers = #tpu.dot_dimension_numbers<[1], [0], [0], [1], [0, 0, 1, 1], [], []>} : vector<28x224xbf16>, vector<224x28xbf16>, vector<28x28xf32> -> vector<28x28xf32>
    %c1_220 = arith.constant 1 : index
    %c0_221 = arith.constant 0 : index
    %c0_222 = arith.constant 0 : index
    %234 = vector.load %arg17[%c1_220, %c0_221, %c0_222] : memref<5x28x14xbf16, #tpu.memory_space<vmem>>, vector<1x28x14xbf16>
    %235 = vector.shape_cast %234 : vector<1x28x14xbf16> to vector<28x14xbf16>
    %cst_223 = arith.constant dense<0.000000e+00> : vector<28x224xf32>
    %236 = tpu.matmul %235, %226, %cst_223 {dimension_numbers = #tpu.dot_dimension_numbers<[1], [0], [0], [1], [0, 0, 1, 1], [], []>} : vector<28x14xbf16>, vector<14x224xbf16>, vector<28x224xf32> -> vector<28x224xf32>
    %237 = arith.truncf %236 : vector<28x224xf32> to vector<28x224xbf16>
    %c1_224 = arith.constant 1 : index
    %c0_225 = arith.constant 0 : index
    %c0_226 = arith.constant 0 : index
    %238 = vector.load %arg18[%c1_224, %c0_225, %c0_226] : memref<5x224x28xbf16, #tpu.memory_space<vmem>>, vector<1x224x28xbf16>
    %239 = vector.shape_cast %238 : vector<1x224x28xbf16> to vector<224x28xbf16>
    %cst_227 = arith.constant dense<0.000000e+00> : vector<28x28xf32>
    %240 = tpu.matmul %237, %239, %cst_227 {dimension_numbers = #tpu.dot_dimension_numbers<[1], [0], [0], [1], [0, 0, 1, 1], [], []>} : vector<28x224xbf16>, vector<224x28xbf16>, vector<28x28xf32> -> vector<28x28xf32>
    %241 = arith.addf %233, %240 : vector<28x28xf32>
    %c2_228 = arith.constant 2 : index
    %c0_229 = arith.constant 0 : index
    %c0_230 = arith.constant 0 : index
    %242 = vector.load %arg17[%c2_228, %c0_229, %c0_230] : memref<5x28x14xbf16, #tpu.memory_space<vmem>>, vector<1x28x14xbf16>
    %243 = vector.shape_cast %242 : vector<1x28x14xbf16> to vector<28x14xbf16>
    %cst_231 = arith.constant dense<0.000000e+00> : vector<28x224xf32>
    %244 = tpu.matmul %243, %226, %cst_231 {dimension_numbers = #tpu.dot_dimension_numbers<[1], [0], [0], [1], [0, 0, 1, 1], [], []>} : vector<28x14xbf16>, vector<14x224xbf16>, vector<28x224xf32> -> vector<28x224xf32>
    %245 = arith.truncf %244 : vector<28x224xf32> to vector<28x224xbf16>
    %c2_232 = arith.constant 2 : index
    %c0_233 = arith.constant 0 : index
    %c0_234 = arith.constant 0 : index
    %246 = vector.load %arg18[%c2_232, %c0_233, %c0_234] : memref<5x224x28xbf16, #tpu.memory_space<vmem>>, vector<1x224x28xbf16>
    %247 = vector.shape_cast %246 : vector<1x224x28xbf16> to vector<224x28xbf16>
    %cst_235 = arith.constant dense<0.000000e+00> : vector<28x28xf32>
    %248 = tpu.matmul %245, %247, %cst_235 {dimension_numbers = #tpu.dot_dimension_numbers<[1], [0], [0], [1], [0, 0, 1, 1], [], []>} : vector<28x224xbf16>, vector<224x28xbf16>, vector<28x28xf32> -> vector<28x28xf32>
    %249 = arith.addf %241, %248 : vector<28x28xf32>
    %c3_236 = arith.constant 3 : index
    %c0_237 = arith.constant 0 : index
    %c0_238 = arith.constant 0 : index
    %250 = vector.load %arg17[%c3_236, %c0_237, %c0_238] : memref<5x28x14xbf16, #tpu.memory_space<vmem>>, vector<1x28x14xbf16>
    %251 = vector.shape_cast %250 : vector<1x28x14xbf16> to vector<28x14xbf16>
    %cst_239 = arith.constant dense<0.000000e+00> : vector<28x224xf32>
    %252 = tpu.matmul %251, %226, %cst_239 {dimension_numbers = #tpu.dot_dimension_numbers<[1], [0], [0], [1], [0, 0, 1, 1], [], []>} : vector<28x14xbf16>, vector<14x224xbf16>, vector<28x224xf32> -> vector<28x224xf32>
    %253 = arith.truncf %252 : vector<28x224xf32> to vector<28x224xbf16>
    %c3_240 = arith.constant 3 : index
    %c0_241 = arith.constant 0 : index
    %c0_242 = arith.constant 0 : index
    %254 = vector.load %arg18[%c3_240, %c0_241, %c0_242] : memref<5x224x28xbf16, #tpu.memory_space<vmem>>, vector<1x224x28xbf16>
    %255 = vector.shape_cast %254 : vector<1x224x28xbf16> to vector<224x28xbf16>
    %cst_243 = arith.constant dense<0.000000e+00> : vector<28x28xf32>
    %256 = tpu.matmul %253, %255, %cst_243 {dimension_numbers = #tpu.dot_dimension_numbers<[1], [0], [0], [1], [0, 0, 1, 1], [], []>} : vector<28x224xbf16>, vector<224x28xbf16>, vector<28x28xf32> -> vector<28x28xf32>
    %257 = arith.addf %249, %256 : vector<28x28xf32>
    %c4_244 = arith.constant 4 : index
    %c0_245 = arith.constant 0 : index
    %c0_246 = arith.constant 0 : index
    %258 = vector.load %arg17[%c4_244, %c0_245, %c0_246] : memref<5x28x14xbf16, #tpu.memory_space<vmem>>, vector<1x28x14xbf16>
    %259 = vector.shape_cast %258 : vector<1x28x14xbf16> to vector<28x14xbf16>
    %cst_247 = arith.constant dense<0.000000e+00> : vector<28x224xf32>
    %260 = tpu.matmul %259, %226, %cst_247 {dimension_numbers = #tpu.dot_dimension_numbers<[1], [0], [0], [1], [0, 0, 1, 1], [], []>} : vector<28x14xbf16>, vector<14x224xbf16>, vector<28x224xf32> -> vector<28x224xf32>
    %261 = arith.truncf %260 : vector<28x224xf32> to vector<28x224xbf16>
    %c4_248 = arith.constant 4 : index
    %c0_249 = arith.constant 0 : index
    %c0_250 = arith.constant 0 : index
    %262 = vector.load %arg18[%c4_248, %c0_249, %c0_250] : memref<5x224x28xbf16, #tpu.memory_space<vmem>>, vector<1x224x28xbf16>
    %263 = vector.shape_cast %262 : vector<1x224x28xbf16> to vector<224x28xbf16>
    %cst_251 = arith.constant dense<0.000000e+00> : vector<28x28xf32>
    %264 = tpu.matmul %261, %263, %cst_251 {dimension_numbers = #tpu.dot_dimension_numbers<[1], [0], [0], [1], [0, 0, 1, 1], [], []>} : vector<28x224xbf16>, vector<224x28xbf16>, vector<28x28xf32> -> vector<28x28xf32>
    %265 = arith.addf %257, %264 : vector<28x28xf32>
    %c0_252 = arith.constant 0 : index
    %c0_253 = arith.constant 0 : index
    %266 = vector.load %arg19[%c0_252, %c0_253] : memref<1x28xf32, #tpu.memory_space<vmem>>, vector<1x28xf32>
    %267 = vector.broadcast %266 : vector<1x28xf32> to vector<28x28xf32>
    %268 = arith.addf %265, %267 : vector<28x28xf32>
    %c0_254 = arith.constant 0 : index
    %c0_255 = arith.constant 0 : index
    %c0_256 = arith.constant 0 : index
    %269 = vector.load %arg20[%c0_254, %c0_255, %c0_256] : memref<1x28x28xf32, #tpu.memory_space<vmem>>, vector<1x28x28xf32>
    %270 = vector.shape_cast %269 : vector<1x28x28xf32> to vector<28x28xf32>
    %271 = vector.shape_cast %268 : vector<28x28xf32> to vector<1x28x28xf32>
    tpu.vector_store %arg20[%c0_254, %c0_255, %c0_256], %271 {strides = array<i32>} : memref<1x28x28xf32, #tpu.memory_space<vmem>>, vector<1x28x28xf32>,
    return
  }
  func.func @transform_0(%arg0: i32) -> (i32, i32, i32) {
    %c0_i32 = arith.constant 0 : i32
    %c0_i32_0 = arith.constant 0 : i32
    %c0_i32_1 = arith.constant 0 : i32
    return %arg0, %c0_i32, %c0_i32_0 : i32, i32, i32
  }
  func.func @transform_1(%arg0: i32) -> (i32, i32, i32) {
    %c0_i32 = arith.constant 0 : i32
    %c0_i32_0 = arith.constant 0 : i32
    %c0_i32_1 = arith.constant 0 : i32
    %c0_i32_2 = arith.constant 0 : i32
    return %c0_i32, %c0_i32_0, %c0_i32_1 : i32, i32, i32
  }
  func.func @transform_2(%arg0: i32) -> (i32, i32, i32) {
    %c0_i32 = arith.constant 0 : i32
    %c0_i32_0 = arith.constant 0 : i32
    %c0_i32_1 = arith.constant 0 : i32
    %c0_i32_2 = arith.constant 0 : i32
    return %c0_i32, %c0_i32_0, %c0_i32_1 : i32, i32, i32
  }
  func.func @transform_3(%arg0: i32) -> (i32, i32) {
    %c0_i32 = arith.constant 0 : i32
    %c0_i32_0 = arith.constant 0 : i32
    %c0_i32_1 = arith.constant 0 : i32
    return %c0_i32, %c0_i32_0 : i32, i32
  }
  func.func @transform_4(%arg0: i32) -> (i32, i32, i32) {
    %c0_i32 = arith.constant 0 : i32
    %c0_i32_0 = arith.constant 0 : i32
    %c0_i32_1 = arith.constant 0 : i32
    %c0_i32_2 = arith.constant 0 : i32
    return %c0_i32, %c0_i32_0, %c0_i32_1 : i32, i32, i32
  }
  func.func @transform_5(%arg0: i32) -> (i32, i32, i32) {
    %c0_i32 = arith.constant 0 : i32
    %c0_i32_0 = arith.constant 0 : i32
    %c0_i32_1 = arith.constant 0 : i32
    %c0_i32_2 = arith.constant 0 : i32
    return %c0_i32, %c0_i32_0, %c0_i32_1 : i32, i32, i32
  }
  func.func @transform_6(%arg0: i32) -> (i32, i32) {
    %c0_i32 = arith.constant 0 : i32
    %c0_i32_0 = arith.constant 0 : i32
    %c0_i32_1 = arith.constant 0 : i32
    return %c0_i32, %c0_i32_0 : i32, i32
  }
  func.func @transform_7(%arg0: i32) -> (i32, i32, i32) {
    %c0_i32 = arith.constant 0 : i32
    %c0_i32_0 = arith.constant 0 : i32
    %c0_i32_1 = arith.constant 0 : i32
    %c0_i32_2 = arith.constant 0 : i32
    return %c0_i32, %c0_i32_0, %c0_i32_1 : i32, i32, i32
  }
  func.func @transform_8(%arg0: i32) -> (i32, i32, i32) {
    %c0_i32 = arith.constant 0 : i32
    %c0_i32_0 = arith.constant 0 : i32
    %c0_i32_1 = arith.constant 0 : i32
    %c0_i32_2 = arith.constant 0 : i32
    return %c0_i32, %c0_i32_0, %c0_i32_1 : i32, i32, i32
  }
  func.func @transform_9(%arg0: i32) -> (i32, i32) {
    %c0_i32 = arith.constant 0 : i32
    %c0_i32_0 = arith.constant 0 : i32
    %c0_i32_1 = arith.constant 0 : i32
    return %c0_i32, %c0_i32_0 : i32, i32
  }
  func.func @transform_10(%arg0: i32) -> (i32, i32, i32) {
    %c0_i32 = arith.constant 0 : i32
    %c0_i32_0 = arith.constant 0 : i32
    %c0_i32_1 = arith.constant 0 : i32
    %c0_i32_2 = arith.constant 0 : i32
    return %c0_i32, %c0_i32_0, %c0_i32_1 : i32, i32, i32
  }
  func.func @transform_11(%arg0: i32) -> (i32, i32, i32) {
    %c0_i32 = arith.constant 0 : i32
    %c0_i32_0 = arith.constant 0 : i32
    %c0_i32_1 = arith.constant 0 : i32
    %c0_i32_2 = arith.constant 0 : i32
    return %c0_i32, %c0_i32_0, %c0_i32_1 : i32, i32, i32
  }
  func.func @transform_12(%arg0: i32) -> (i32, i32) {
    %c0_i32 = arith.constant 0 : i32
    %c0_i32_0 = arith.constant 0 : i32
    %c0_i32_1 = arith.constant 0 : i32
    return %c0_i32, %c0_i32_0 : i32, i32
  }
  func.func @transform_13(%arg0: i32) -> (i32, i32, i32) {
    %c0_i32 = arith.constant 0 : i32
    %c0_i32_0 = arith.constant 0 : i32
    %c0_i32_1 = arith.constant 0 : i32
    %c0_i32_2 = arith.constant 0 : i32
    return %c0_i32, %c0_i32_0, %c0_i32_1 : i32, i32, i32
  }
  func.func @transform_14(%arg0: i32) -> (i32, i32, i32) {
    %c0_i32 = arith.constant 0 : i32
    %c0_i32_0 = arith.constant 0 : i32
    %c0_i32_1 = arith.constant 0 : i32
    %c0_i32_2 = arith.constant 0 : i32
    return %c0_i32, %c0_i32_0, %c0_i32_1 : i32, i32, i32
  }
  func.func @transform_15(%arg0: i32) -> (i32, i32) {
    %c0_i32 = arith.constant 0 : i32
    %c0_i32_0 = arith.constant 0 : i32
    %c0_i32_1 = arith.constant 0 : i32
    return %c0_i32, %c0_i32_0 : i32, i32
  }
  func.func @transform_16(%arg0: i32) -> (i32, i32, i32) {
    %c0_i32 = arith.constant 0 : i32
    %c0_i32_0 = arith.constant 0 : i32
    %c0_i32_1 = arith.constant 0 : i32
    %c0_i32_2 = arith.constant 0 : i32
    return %c0_i32, %c0_i32_0, %c0_i32_1 : i32, i32, i32
  }
  func.func @transform_17(%arg0: i32) -> (i32, i32, i32) {
    %c0_i32 = arith.constant 0 : i32
    %c0_i32_0 = arith.constant 0 : i32
    %c0_i32_1 = arith.constant 0 : i32
    %c0_i32_2 = arith.constant 0 : i32
    return %c0_i32, %c0_i32_0, %c0_i32_1 : i32, i32, i32
  }
  func.func @transform_18(%arg0: i32) -> (i32, i32) {
    %c0_i32 = arith.constant 0 : i32
    %c0_i32_0 = arith.constant 0 : i32
    %c0_i32_1 = arith.constant 0 : i32
    return %c0_i32, %c0_i32_0 : i32, i32
  }
  func.func @transform_19(%arg0: i32) -> (i32, i32, i32) {
    %c0_i32 = arith.constant 0 : i32
    %c0_i32_0 = arith.constant 0 : i32
    %c0_i32_1 = arith.constant 0 : i32
    return %arg0, %c0_i32, %c0_i32_0 : i32, i32, i32
  }
}

</mosaic_0001>

<bundles_post_ra>
// kernel: tile.33
= control target key start
LH: loop header
LB: loop body
LE: loop exit
PB: predicated region body
PF: predicated region fallthrough
CT: control target
= control target key end

     0   :  { %s28_s0 = inlined_call_operand.vmem [shape: f32[16], index: 0, kind: input, shape index: {}]   ;;  %s29_s1 = inlined_call_operand.vmem [shape: f32[14,16], index: 1, kind: output, shape index: {}]  }
   0x1   :  { %v4_v0 = vld [vmem:[%s28_s0] ss:$0 sm:$0xff] }
   0x2   :  { %5 = vst [vmem:[%s29_s1] sm:$0xff] %v4_v0  ;;  %8 = vst [vmem:[%s29_s1 + $0x8] sm:$0xff] %v4_v0 }

// kernel: tile.34
= control target key start
LH: loop header
LB: loop body
LE: loop exit
PB: predicated region body
PF: predicated region fallthrough
CT: control target
= control target key end

     0   :  { %s19_s8 = smov 3  ;;  %s82_s9 = smov 112   ;;  %vm4_vm0 = vcmask 130048   ;;  %vm10_vm1 = vcmask 1048448   ;;  %vm16_vm2 = vcmask 917248   ;;  %vm23_vm3 = vcmask 786048   ;;  %s129_s0 = inlined_call_operand.vmem [shape: f32[14,16], index: 0, kind: input, shape index: {}]   ;;  %s130_s1 = inlined_call_operand.vmem [shape: f32[1,224], index: 1, kind: output, shape index: {}]  }
   0x1   :  { %v67_v0 = vld [vmem:[%s129_s0 + $0x7] sm:$0x1]   ;;  %v69_v1 = vld [vmem:[%s129_s0 + $0x5] ss:$8 sm:%s19_s8]   ;;  %s83_s12 = smov 80   ;;  %s26_s15 = smov 3 }
   0x2   :  { %8 = vrot.lane.b32.xlu0 %v67_v0, %s82_s9  ;;  %21 = vrot.lane.b32.xlu1 %v69_v1, %s83_s12  ;;  %v68_v2 = vld [vmem:[%s129_s0 + $0x6] sm:$0x1]   ;;  %s33_s18 = smov 3  ;;  %s40_s19 = smov 3  ;;  %vm30_vm4 = vcmask 654848   ;;  %vm37_vm5 = vcmask 523648  }
   0x3   :  { %v70_v3 = vld [vmem:[%s129_s0 + $0x4] ss:$8 sm:%s26_s15]   ;;  %s84_s20 = smov 96   ;;  %s85_s21 = smov 64   ;;  %v71_v4 = vld [vmem:[%s129_s0 + $0x3] ss:$8 sm:%s33_s18]  }
   0x4   :  { %s2_s24 = smov 3  ;;  %v72_v5 = vld [vmem:[%s129_s0 + $0x2] ss:$8 sm:%s40_s19]   ;;  %s47_s27 = smov 3  ;;  %vm44_vm6 = vcmask 392448   ;;  %vm51_vm7 = vcmask 261248  }
   0x5   :  { %v3_v6 = vld [vmem:[%s129_s0] ss:$8 sm:%s2_s24]   ;;  %s86_s30 = smov 48   ;;  %s87_s2 = smov 32   ;;  %v73_v7 = vld [vmem:[%s129_s0 + $0x1] ss:$8 sm:%s47_s27]  }
   0x6   :  { %14 = vrot.lane.b32.xlu0 %v68_v2, %s84_s20  ;;  %28 = vrot.lane.b32.xlu1 %v70_v3, %s85_s21  ;;  %5 = vst.msk [vmem:[#allocation0] ss:$8 sm:$0x3] %vm4_vm0, %v3_v6   ;;  %s88_s0 = smov 16  }
   0xa   :  { %35 = vrot.lane.b32.xlu0 %v71_v4, %s86_s30  ;;  %42 = vrot.lane.b32.xlu1 %v72_v5, %s87_s2 }
   0xe   :  { %49 = vrot.lane.b32.xlu0 %v73_v7, %s88_s0 }
  0x74   :  { %v9_v8 = vpop.permute.xlu0 %8   ;;  %v22_v9 = vpop.permute.xlu1 %21  }
  0x75   :  { %11 = vst.msk [vmem:[#allocation0] sm:$0x1] %vm10_vm1, %v9_v8  }
  0x78   :  { %v15_v10 = vpop.permute.xlu0 %14   ;;  %v29_v11 = vpop.permute.xlu1 %28  }
  0x79   :  { %17 = vst.msk [vmem:[#allocation0] sm:$0x1] %vm16_vm2, %v15_v10  }
  0x7a   :  { %24 = vst.msk [vmem:[#allocation0] ss:$8 sm:$0x3] %vm23_vm3, %v22_v9  }
  0x7b   :  { %31 = vst.msk [vmem:[#allocation0] ss:$8 sm:$0x3] %vm30_vm4, %v29_v11  }
  0x7c   :  { %v36_v12 = vpop.permute.xlu0 %35   ;;  %v43_v13 = vpop.permute.xlu1 %42  }
  0x7d   :  { %38 = vst.msk [vmem:[#allocation0] ss:$8 sm:$0x3] %vm37_vm5, %v36_v12  }
  0x7e   :  { %45 = vst.msk [vmem:[#allocation0] ss:$8 sm:$0x3] %vm44_vm6, %v43_v13  }
  0x80   :  { %v50_v14 = vpop.permute.xlu0 %49  }
  0x81   :  { %52 = vst.msk [vmem:[#allocation0] ss:$8 sm:$0x3] %vm51_vm7, %v50_v14  }
  0x88   :  { %v57_v15 = vld [vmem:[#allocation0] sm:$0x1]  ;;  %v62_v16 = vld [vmem:[#allocation0 + $0x8] sm:$0x1] }
  0x89   :  { %60 = vst [vmem:[%s130_s1] sm:$0x1] %v57_v15  ;;  %74 = vst [vmem:[%s130_s1 + $0x1] sm:$0x1] %v62_v16 }

// kernel: tile.38
= control target key start
LH: loop header
LB: loop body
LE: loop exit
PB: predicated region body
PF: predicated region fallthrough
CT: control target
= control target key end

     0   :  { %s22_s0 = inlined_call_operand.vmem [shape: f32[32], index: 0, kind: input, shape index: {}]   ;;  %s23_s1 = inlined_call_operand.vmem [shape: f32[7,32], index: 1, kind: output, shape index: {}]  }
   0x1   :  { %v4_v0 = vld [vmem:[%s22_s0] ss:$0 sm:$0xff] }
   0x2   :  { %5 = vst [vmem:[%s23_s1] sm:$0xff] %v4_v0 }

// kernel: tile.39
= control target key start
LH: loop header
LB: loop body
LE: loop exit
PB: predicated region body
PF: predicated region fallthrough
CT: control target
= control target key end

     0   :  { %s13_s8 = smov 3  ;;  %s47_s9 = smov 96   ;;  %vm4_vm0 = vcmask 261120   ;;  %vm10_vm1 = vcmask 1048320   ;;  %vm17_vm2 = vcmask 785920   ;;  %vm24_vm3 = vcmask 523520   ;;  %s78_s0 = inlined_call_operand.vmem [shape: f32[7,32], index: 0, kind: input, shape index: {}]   ;;  %s79_s1 = inlined_call_operand.vmem [shape: f32[1,224], index: 1, kind: output, shape index: {}]  }
   0x1   :  { %v40_v0 = vld [vmem:[%s78_s0 + $0x3] sm:$0x1]   ;;  %s20_s10 = smov 3  ;;  %v41_v1 = vld [vmem:[%s78_s0 + $0x2] ss:$4 sm:%s13_s8]   ;;  %s2_s15 = smov 3 }
   0x2   :  { %8 = vrot.lane.b32.xlu0 %v40_v0, %s47_s9  ;;  %v42_v2 = vld [vmem:[%s78_s0 + $0x1] ss:$4 sm:%s20_s10]   ;;  %s48_s16 = smov 32  }
   0x3   :  { %22 = vrot.lane.b32.xlu1 %v42_v2, %s48_s16  ;;  %v3_v3 = vld [vmem:[%s78_s0] ss:$4 sm:%s2_s15]   ;;  %s49_s0 = smov 64  }
   0x4   :  { %5 = vst.msk [vmem:[#allocation0] ss:$8 sm:$0x3] %vm4_vm0, %v3_v3  }
   0x6   :  { %15 = vrot.lane.b32.xlu0 %v41_v1, %s49_s0 }
  0x74   :  { %v9_v4 = vpop.permute.xlu0 %8  }
  0x75   :  { %11 = vst.msk [vmem:[#allocation0] sm:$0x1] %vm10_vm1, %v9_v4   ;;  %v23_v5 = vpop.permute.xlu1 %22  }
  0x78   :  { %v16_v6 = vpop.permute.xlu0 %15  }
  0x79   :  { %18 = vst.msk [vmem:[#allocation0] ss:$8 sm:$0x3] %vm17_vm2, %v16_v6  }
  0x7a   :  { %25 = vst.msk [vmem:[#allocation0] ss:$8 sm:$0x3] %vm24_vm3, %v23_v5  }
  0x81   :  { %v30_v7 = vld [vmem:[#allocation0] sm:$0x1]  ;;  %v35_v8 = vld [vmem:[#allocation0 + $0x8] sm:$0x1] }
  0x82   :  { %33 = vst [vmem:[%s79_s1] sm:$0x1] %v30_v7  ;;  %43 = vst [vmem:[%s79_s1 + $0x1] sm:$0x1] %v35_v8 }

// kernel: tile.43
= control target key start
LH: loop header
LB: loop body
LE: loop exit
PB: predicated region body
PF: predicated region fallthrough
CT: control target
= control target key end

     0   :  { %s22_s0 = inlined_call_operand.vmem [shape: f32[32], index: 0, kind: input, shape index: {}]   ;;  %s23_s1 = inlined_call_operand.vmem [shape: f32[4,32], index: 1, kind: output, shape index: {}]  }
   0x1   :  { %v4_v0 = vld [vmem:[%s22_s0] ss:$0 sm:$0xff] }
   0x2   :  { %5 = vst [vmem:[%s23_s1] sm:$0xf] %v4_v0 }

// kernel: tile.44
= control target key start
LH: loop header
LB: loop body
LE: loop exit
PB: predicated region body
PF: predicated region fallthrough
CT: control target
= control target key end

     0   :  { %vm8_vm0 = vcmask 261120   ;;  %s40_s8 = smov 32   ;;  %s41_s9 = smov 64   ;;  %vm14_vm1 = vcmask 1048320   ;;  %vm20_vm2 = vcmask 785920   ;;  %vm26_vm3 = vcmask 523520   ;;  %s58_s0 = inlined_call_operand.vmem [shape: f32[4,32], index: 0, kind: input, shape index: {}]   ;;  %s59_s1 = inlined_call_operand.vmem [shape: f32[1,128], index: 1, kind: output, shape index: {}]  }
   0x1   :  { %v5_v0 = vld [vmem:[%s58_s0] sm:$0xf]  ;;  %s39_s0 = smov 96  }
   0x2   :  { %6 = vst [vmem:[#allocation1] sm:$0xf] %v5_v0 }
   0x9   :  { %v11_v1 = vld [vmem:[#allocation1 + $0x3] sm:$0x1]   ;;  %v23_v2 = vld [vmem:[#allocation1 + $0x1] sm:$0x1]   ;;  %v7_v3 = vld [vmem:[#allocation1] sm:$0x1]  }
   0xa   :  { %12 = vrot.lane.b32.xlu0 %v11_v1, %s39_s0  ;;  %24 = vrot.lane.b32.xlu1 %v23_v2, %s40_s8  ;;  %v17_v4 = vld [vmem:[#allocation1 + $0x2] sm:$0x1]   ;;  %9 = vst.msk [vmem:[#allocation0] sm:$0x1] %vm8_vm0, %v7_v3  }
   0xe   :  { %18 = vrot.lane.b32.xlu0 %v17_v4, %s41_s9 }
  0x7c   :  { %v13_v5 = vpop.permute.xlu0 %12   ;;  %v25_v6 = vpop.permute.xlu1 %24  }
  0x7d   :  { %15 = vst.msk [vmem:[#allocation0] sm:$0x1] %vm14_vm1, %v13_v5  }
  0x80   :  { %v19_v7 = vpop.permute.xlu0 %18  }
  0x81   :  { %21 = vst.msk [vmem:[#allocation0] sm:$0x1] %vm20_vm2, %v19_v7  }
  0x82   :  { %27 = vst.msk [vmem:[#allocation0] sm:$0x1] %vm26_vm3, %v25_v6  }
  0x89   :  { %v32_v8 = vld [vmem:[#allocation0] sm:$0x1] }
  0x8a   :  { %35 = vst [vmem:[%s59_s1] sm:$0x1] %v32_v8 }

// kernel: conv_decoder_mask_mnist_forward.1
= control target key start
LH: loop header
LB: loop body
LE: loop exit
PB: predicated region body
PF: predicated region fallthrough
CT: control target
= control target key end

     0   :  { %s11622_s0 = inlined_call_operand.vmem [shape: bf16[2,28,28], index: 0, kind: input, shape index: {}]   ;;  %s11623_s1 = inlined_call_operand.vmem [shape: bf16[5,14,28], index: 1, kind: input, shape index: {}]   ;;  %s11624_s2 = inlined_call_operand.vmem [shape: bf16[5,28,224], index: 2, kind: input, shape index: {}]   ;;  %s11625_s3 = inlined_call_operand.vmem [shape: f32[1,224], index: 3, kind: input, shape index: {}]   ;;  %s11626_s4 = inlined_call_operand.vmem [shape: bf16[5,7,14], index: 4, kind: input, shape index: {}]   ;;  %s11627_s5 = inlined_call_operand.vmem [shape: bf16[5,224,224], index: 5, kind: input, shape index: {}]   ;;  %s11628_s6 = inlined_call_operand.vmem [shape: f32[1,224], index: 6, kind: input, shape index: {}]   ;;  %s11629_s7 = inlined_call_operand.vmem [shape: bf16[5,4,7], index: 7, kind: input, shape index: {}]   ;;  %s11630_s8 = inlined_call_operand.vmem [shape: bf16[5,224,128], index: 8, kind: input, shape index: {}]   ;;  %s11631_s9 = inlined_call_operand.vmem [shape: f32[1,128], index: 9, kind: input, shape index: {}]   ;;  %s11632_s10 = inlined_call_operand.vmem [shape: bf16[5,7,4], index: 10, kind: input, shape index: {}]   ;;  %s11633_s11 = inlined_call_operand.vmem [shape: bf16[5,128,224], index: 11, kind: input, shape index: {}]   ;;  %s11634_s12 = inlined_call_operand.vmem [shape: f32[1,224], index: 12, kind: input, shape index: {}]   ;;  %s11635_s13 = inlined_call_operand.vmem [shape: bf16[5,14,7], index: 13, kind: input, shape index: {}]   ;;  %s11636_s14 = inlined_call_operand.vmem [shape: bf16[5,224,224], index: 14, kind: input, shape index: {}]   ;;  %s11637_s15 = inlined_call_operand.vmem [shape: f32[1,224], index: 15, kind: input, shape index: {}]   ;;  %s11638_s16 = inlined_call_operand.vmem [shape: bf16[5,28,14], index: 16, kind: input, shape index: {}]   ;;  %s11639_s17 = inlined_call_operand.vmem [shape: bf16[5,224,28], index: 17, kind: input, shape index: {}]   ;;  %s11640_s18 = inlined_call_operand.vmem [shape: f32[1,28], index: 18, kind: input, shape index: {}]   ;;  %s11641_s19 = inlined_call_operand.vmem [shape: f32[2,28,28], index: 19, kind: output, shape index: {}]  }
   0x1   :  { %11644 = sst [smem:[#allocation2_spill]] %s11622_s0  ;;  %s9492_s0 = smov 0  }
   0x2   :  { %11645 = sst [smem:[#allocation3_spill]] %s11623_s1 }
   0x3   :  { %11646 = sst [smem:[#allocation4_spill]] %s11624_s2 }
   0x4   :  { %11647 = sst [smem:[#allocation5_spill]] %s11625_s3 }
   0x5 LB: > { %s7331_s30 = sadd.s32 4294967295, %s9386_s0   ;;  %p7335_p0 = scmp.ge.s32.totalorder %s9386_s0, 1  ;;  %s9386_s0 = sphi %s9492_s0, %s29_s0  }
   0x6   : > { %p537_p1 = scmp.lt.s32.totalorder %s9386_s0, 3 }
   0x8   : > { %p538_p2 = pnand %p7335_p0, %p537_p1 }
   0x9   : > { %p593_p3 = scmp.lt.s32.totalorder (!%p538_p2), %s7331_s30, 1  ;;  %s11648_s22 = sld [smem:[#allocation4_spill]] (!%p538_p2) }
   0xa   : > { %541 = sbr.rel (%p538_p2) target bundleno = 4817 (0x12d1), region = 96  ;;  %s11649_s24 = sld [smem:[#allocation2_spill]] (!%p538_p2) }
   0xb   : > { %s11650_s27 = sld [smem:[#allocation3_spill]] (!%p538_p2) }
   0xc   : > { %s11651_s2 = sld [smem:[#allocation5_spill]] (!%p538_p2) }
   0xf   : > { %v9388_v0 = vmov 0.0   ;;  %vm9389_vm0 = vmmov 0   ;;  %s11653_s30 = smov (!%p593_p3, %s7331_s30), 1  ;;  %v8651_v1 = vld [vmem:[%s11648_s22 + $0x14] ss:$8 sps:$4 sm:$0x3f]  }
  0x10   : > { %8565 = vmatprep.subr.bf16.mxu0 %v9388_v0  ;;  %8569 = vmatprep.mubr.msk.bf16.mxu0 %vm9389_vm0, %v9388_v0  ;;  %s8538_s20 = sshll.u32 %s11653_s30, 4  ;;  %vm630_vm1 = vcmask 1045504   ;;  %vm626_vm2 = vcmask 228352   ;;  %v8653_v7 = vld [vmem:[%s11648_s22 + $0x10] ss:$8 sps:$4 sm:$0x3f]  }
  0x11   : > { %s9512_s25 = scalar_lea.vmem %s11649_s24, %s8538_s20  ;;  %7362 = vmatprep.subr.msk.bf16.mxu1 %vm630_vm1, %v8651_v1  ;;  %v8649_v5 = vld [vmem:[%s11650_s27] sm:$0x7f]   ;;  %v8650_v6 = vld [vmem:[%s11650_s27 + $0x8] sm:$0x7f]   ;;  %v830_v8 = vsel %vm630_vm1, %v8653_v7, 0  ;;  %v9390_v12 = vmov 0  }
  0x12   : > { %v8647_v2 = vld [vmem:[%s9512_s25 + $0x8] sm:$0x3f]   ;;  %v8648_v3 = vld [vmem:[%s9512_s25] sm:$0xff]   ;;  %848 = vmatpush1.bf16.msra.mxu1 %v830_v8  ;;  %v8657_v11 = vld [vmem:[%s11648_s22 + $0x34] ss:$8 sps:$4 sm:$0x3f]   ;;  %867 = vmatprep.mubr.bf16.mxu1 %v9390_v12 }
  0x13   : > { %v632_v4 = vsel %vm630_vm1, %v8647_v2, 0  ;;  %v8654_v9 = vld [vmem:[%s11648_s22 + $0x4] ss:$8 sps:$4 sm:$0xff]   ;;  %v8656_v10 = vld [vmem:[%s11648_s22] ss:$8 sps:$4 sm:$0xff]   ;;  %vm1301_vm3 = vcmask 1046528  }
  0x14   : > { %8566 = vmatpush3.bf16.msra.mxu0 %v632_v4  ;;  %849 = vmatprep.subr.bf16.mxu1 %v8654_v9  ;;  %v8659_v13 = vld [vmem:[%s11648_s22 + $0x30] ss:$8 sps:$4 sm:$0x3f]   ;;  %v8662_v15 = vld [vmem:[%s11648_s22 + $0x24] ss:$8 sps:$4 sm:$0xff]   ;;  %v1276_v9 = vlaneseq  ;;  %vm1297_vm4 = vcmask 113664  }
  0x15   : > { %8567 = vmatprep.subr.bf16.mxu0 %v9388_v0  ;;  %v760_v14 = vsel %vm630_vm1, %v8659_v13, 0  ;;  %v8660_v16 = vld [vmem:[%s11648_s22 + $0x20] ss:$8 sps:$4 sm:$0xff]   ;;  %v8663_v27 = vld [vmem:[%s11650_s27 + $0x10] sm:$0x7f]   ;;  %vm1596_vm5 = vcmask 785408  }
  0x16   : > { %850 = vmatpush1.bf16.msra.mxu1 %v8656_v10  ;;  %v9379_v28 = vld [vmem:[%s9512_s25] sm:$0xff]   ;;  %v8664_v29 = vld [vmem:[%s11650_s27 + $0x18] sm:$0x7f]   ;;  %v1277_v13 = vshrl.u32 %v1276_v9, 7  ;;  %vm2637_vm6 = vcmask 1042432   ;;  %vm2638_vm7 = vcmask 1043456  }
  0x17   : > { %v8665_v30 = vld [vmem:[%s11650_s27 + $0x20] sm:$0x7f]   ;;  %v8666_v31 = vld [vmem:[%s11648_s22 + $0x54] ss:$8 sps:$4 sm:$0x3f]   ;;  %vm2633_vm8 = vcmask 56320  }
  0x18   : > { %8568 = vmatpush3.bf16.msra.mxu0 %v8648_v3  ;;  %v8668_v32 = vld [vmem:[%s11648_s22 + $0x50] ss:$8 sps:$4 sm:$0x3f]   ;;  %7376 = vmatprep.subr.msk.bf16.mxu1 %vm630_vm1, %v8666_v31  ;;  %v8671_v34 = vld [vmem:[%s11648_s22 + $0x44] ss:$8 sps:$4 sm:$0xff]   ;;  %vm3679_vm9 = vcmask 1041408  }
  0x19   : > { %8573 = vmatprep.subr.bf16.mxu0 %v9388_v0  ;;  %v958_v33 = vsel %vm630_vm1, %v8668_v32, 0  ;;  %v8669_v35 = vld [vmem:[%s11648_s22 + $0x40] ss:$8 sps:$4 sm:$0xff]   ;;  %v8672_v36 = vld [vmem:[%s11648_s22 + $0x74] ss:$8 sps:$4 sm:$0x3f]  }
  0x1a   : > { %v8674_v42 = vld [vmem:[%s11648_s22 + $0x70] ss:$8 sps:$4 sm:$0x3f]   ;;  %v8677_v47 = vld [vmem:[%s11648_s22 + $0x64] ss:$8 sps:$4 sm:$0xff]   ;;  %vm3675_vm10 = vcmask 31744  }
  0x1b   : > { %8570 = vmatmul.mubr.msk.bf16.vlgmr.msra.gmra.mxu0 %vm626_vm2, %v8649_v5  ;;  %v1090_v46 = vsel %vm630_vm1, %v8674_v42, 0  ;;  %v8675_v50 = vld [vmem:[%s11648_s22 + $0x60] ss:$8 sps:$4 sm:$0xff]   ;;  %v8678_v51 = vld [vmem:[%s11648_s22 + $0x94] ss:$8 sps:$4 sm:$0x3f]  }
  0x1c   : > { %8574 = vmatpush3.bf16.msra.mxu0 %v632_v4  ;;  %8577 = vmatprep.mubr.msk.bf16.mxu0 %vm9389_vm0, %v9388_v0  ;;  %v8680_v52 = vld [vmem:[%s11648_s22 + $0x90] ss:$8 sps:$4 sm:$0x3f]   ;;  %v8683_v57 = vld [vmem:[%s11648_s22 + $0x84] ss:$8 sps:$4 sm:$0xff]   ;;  %s8539_s24 = sshll.u32 %s11653_s30, 5 }
  0x1d   : > { %8575 = vmatprep.subr.bf16.mxu0 %v9388_v0  ;;  %v1222_v56 = vsel %vm630_vm1, %v8680_v52, 0  ;;  %v8681_v60 = vld [vmem:[%s11648_s22 + $0x80] ss:$8 sps:$4 sm:$0xff]   ;;  %v8686_v52 = vld [vmem:[%s11627_s5 + $0x154] ss:$8 sps:$4 sm:$0xff]   ;;  %s602_s29 = scalar_lea.vmem %s11641_s19, %s8539_s24  ;;  %vm7274_vm11 = vcmask 224256  }
  0x1e   : > { %v8740_v9 = vld [vmem:[%s11627_s5 + $0x34] ss:$8 sps:$4 sm:$0xff]  }
  0x20   : > { %8576 = vmatpush3.bf16.msra.mxu0 %v8648_v3 }
  0x21   : > { %7356 = vmatprep.subr.msk.bf16.mxu0 %vm630_vm1, %v8657_v11 }
  0x23   : > { %8578 = vmatmul.mubr.msk.bf16.vlgmr.msra.gmra.mxu0 %vm626_vm2, %v8650_v6 }
  0x24   : > { %797 = vmatprep.mubr.bf16.mxu0 %v9390_v12  ;;  %778 = vmatpush1.bf16.msra.mxu0 %v760_v14 }
  0x25   : > { %779 = vmatprep.subr.bf16.mxu0 %v8662_v15 }
  0x28   : > { %780 = vmatpush1.bf16.msra.mxu0 %v8660_v16 }
  0x29   : > { %8581 = vmatprep.subr.bf16.mxu0 %v9388_v0 }
  0xdb   : > { %v668_v17 = vpop.f32.mrf.mxu0 }
  0xdd   : > { %v8571_v18 = vpop.f32.mrf.mxu0 }
  0xdf   : > { %v671_v19 = vpop.f32.mrf.mxu0 }
  0xe0   : > { %v675_v20 = vpack.c.bf16 %v671_v19, %v668_v17  ;;  %v9634_v19 = vsub.s32 0, %v1277_v13 }
  0xe1   : > { %v8572_v21 = vpop.f32.mrf.mxu0 }
  0xe2   : > { %7363 = vmatmul.mubr.msk.bf16.vlgmr.msra.gmra.mxu1 %vm626_vm2, %v675_v20  ;;  %v1274_v21 = vld [vmem:[%s11651_s2] sm:$0x3] }
  0xe3   : > { %v725_v22 = vpop.f32.mrf.mxu0  ;;  %995 = vmatprep.mubr.bf16.mxu1 %v9390_v12  ;;  %976 = vmatpush1.bf16.msra.mxu1 %v958_v33  ;;  %v1279_v31 = vrot.slane %v1274_v21, %v9634_v19 }
  0xe4   : > { %977 = vmatprep.subr.bf16.mxu1 %v8671_v34 }
  0xe5   : > { %v8579_v23 = vpop.f32.mrf.mxu0 }
  0xe7   : > { %v728_v24 = vpop.f32.mrf.mxu0  ;;  %978 = vmatpush1.bf16.msra.mxu1 %v8669_v35 }
  0xe8   : > { %v732_v25 = vpack.c.bf16 %v728_v24, %v725_v22  ;;  %7390 = vmatprep.subr.msk.bf16.mxu1 %vm630_vm1, %v8672_v36 }
  0xe9   : > { %v8580_v26 = vpop.f32.mrf.mxu0 }
  0xea   : > { %7357 = vmatmul.mubr.msk.bf16.vlgmr.msra.gmra.mxu0 %vm626_vm2, %v732_v25  ;;  %v9639_v25 = vsub.s32 1, %v1277_v13  ;;  %v8701_v13 = vld [vmem:[%s11627_s5 + $0x104] ss:$8 sps:$4 sm:$0xff]  }
  0xeb   : > { %8582 = vmatpush3.bf16.msra.mxu0 %v632_v4  ;;  %8585 = vmatprep.mubr.msk.bf16.mxu0 %vm9389_vm0, %v9388_v0 }
  0xec   : > { %8583 = vmatprep.subr.bf16.mxu0 %v9388_v0  ;;  %v1283_v36 = vrot.slane %v1274_v21, %v9639_v25  ;;  %v8744_v21 = vld [vmem:[%s11627_s5 + $0x10] ss:$8 sps:$4 sm:$0xff]  }
  0xef   : > { %8584 = vmatpush3.bf16.msra.mxu0 %v9379_v28 }
  0xf0   : > { %8589 = vmatprep.subr.bf16.mxu0 %v9388_v0 }
  0xf2   : > { %8586 = vmatmul.mubr.msk.bf16.vlgmr.msra.gmra.mxu0 %vm626_vm2, %v8663_v27 }
  0xf3   : > { %8590 = vmatpush3.bf16.msra.mxu0 %v632_v4  ;;  %8593 = vmatprep.mubr.msk.bf16.mxu0 %vm9389_vm0, %v9388_v0 }
  0xf4   : > { %8591 = vmatprep.subr.bf16.mxu0 %v9388_v0 }
  0xf7   : > { %8592 = vmatpush3.bf16.msra.mxu0 %v9379_v28 }
  0xf8   : > { %8597 = vmatprep.subr.bf16.mxu0 %v9388_v0 }
  0xfa   : > { %8594 = vmatmul.mubr.msk.bf16.vlgmr.msra.gmra.mxu0 %vm626_vm2, %v8664_v29 }
  0xfb   : > { %8598 = vmatpush3.bf16.msra.mxu0 %v632_v4  ;;  %8601 = vmatprep.mubr.msk.bf16.mxu0 %vm9389_vm0, %v9388_v0 }
  0xfc   : > { %8599 = vmatprep.subr.bf16.mxu0 %v9388_v0 }
  0xff   : > { %8600 = vmatpush3.bf16.msra.mxu0 %v9379_v28 }
 0x102   : > { %8602 = vmatmul.mubr.msk.bf16.vlgmr.msra.gmra.mxu0 %vm626_vm2, %v8665_v30 }
 0x103   : > { %1340 = vmatprep.mubr.bf16.mxu0 %v9390_v12 }
 0x1a2   : > { %v869_v2 = vpop.f32.mrf.mxu1 }
 0x1a4   : > { %v871_v3 = vpop.f32.mrf.mxu1 }
 0x1a6   : > { %v873_v4 = vpop.f32.mrf.mxu1 }
 0x1a8   : > { %v875_v5 = vpop.f32.mrf.mxu1 }
 0x1aa   : > { %v799_v37 = vpop.f32.mrf.mxu0 }
 0x1ab   : > { %v870_v15 = vadd.f32 %v869_v2, %v799_v37  ;;  %v8690_v2 = vld [vmem:[%s11627_s5 + $0x130] ss:$8 sps:$4 sm:$0xff]  }
 0x1ac   : > { %v801_v38 = vpop.f32.mrf.mxu0 }
 0x1ad   : > { %v872_v17 = vadd.f32 %v871_v3, %v801_v38  ;;  %v8732_v3 = vld [vmem:[%s11627_s5 + $0x50] ss:$8 sps:$4 sm:$0xff]  }
 0x1ae   : > { %v803_v39 = vpop.f32.mrf.mxu0 }
 0x1af   : > { %v874_v22 = vadd.f32 %v873_v4, %v803_v39  ;;  %v8695_v4 = vld [vmem:[%s11627_s5 + $0x124] ss:$8 sps:$4 sm:$0xff]  }
 0x1b0   : > { %v805_v40 = vpop.f32.mrf.mxu0 }
 0x1b1   : > { %v876_v26 = vadd.f32 %v875_v5, %v805_v40  ;;  %v8737_v5 = vld [vmem:[%s11627_s5 + $0x44] ss:$8 sps:$4 sm:$0xff]  }
 0x1b2   : > { %v923_v41 = vpop.f32.mrf.mxu0 }
 0x1b4   : > { %v8587_v43 = vpop.f32.mrf.mxu0 }
 0x1b6   : > { %v926_v44 = vpop.f32.mrf.mxu0 }
 0x1b7   : > { %v930_v45 = vpack.c.bf16 %v926_v44, %v923_v41 }
 0x1b8   : > { %v8588_v48 = vpop.f32.mrf.mxu0 }
 0x1b9   : > { %7377 = vmatmul.mubr.msk.bf16.vlgmr.msra.gmra.mxu1 %vm626_vm2, %v930_v45 }
 0x1ba   : > { %v1055_v49 = vpop.f32.mrf.mxu0  ;;  %1108 = vmatpush1.bf16.msra.mxu1 %v1090_v46  ;;  %1127 = vmatprep.mubr.bf16.mxu1 %v9390_v12 }
 0x1bb   : > { %1109 = vmatprep.subr.bf16.mxu1 %v8677_v47 }
 0x1bc   : > { %v8595_v53 = vpop.f32.mrf.mxu0 }
 0x1bd   : > { %v8728_v53 = vld [vmem:[%s11627_s5 + $0x74] ss:$8 sps:$4 sm:$0xff]  }
 0x1be   : > { %v1058_v54 = vpop.f32.mrf.mxu0  ;;  %1110 = vmatpush1.bf16.msra.mxu1 %v8675_v50 }
 0x1bf   : > { %v1062_v55 = vpack.c.bf16 %v1058_v54, %v1055_v49  ;;  %7404 = vmatprep.subr.msk.bf16.mxu1 %vm630_vm1, %v8678_v51 }
 0x1c0   : > { %v8596_v58 = vpop.f32.mrf.mxu0 }
 0x1c1   : > { %7391 = vmatmul.mubr.msk.bf16.vlgmr.msra.gmra.mxu1 %vm626_vm2, %v1062_v55  ;;  %v1296_v55 = vld [vmem:[%s11626_s4] sm:$0xf]  ;;  %v8726_v58 = vld [vmem:[%s11627_s5 + $0x70] ss:$8 sps:$4 sm:$0xff]  }
 0x1c2   : > { %v1187_v59 = vpop.f32.mrf.mxu0  ;;  %1240 = vmatpush1.bf16.msra.mxu1 %v1222_v56  ;;  %1259 = vmatprep.mubr.bf16.mxu1 %v9390_v12  ;;  %v7408_v56 = vld [vmem:[%s11626_s4 + $0x4] sm:$0xf] }
 0x1c3   : > { %1241 = vmatprep.subr.bf16.mxu1 %v8683_v57  ;;  %v8684_v57 = vld [vmem:[%s11627_s5 + $0x150] ss:$8 sps:$4 sm:$0xff]  }
 0x1c4   : > { %v8603_v61 = vpop.f32.mrf.mxu0 }
 0x1c5   : > { %v8687_v61 = vld [vmem:[%s11627_s5 + $0x140] ss:$8 sps:$4 sm:$0xff]  }
 0x1c6   : > { %v1190_v62 = vpop.f32.mrf.mxu0  ;;  %1242 = vmatpush1.bf16.msra.mxu1 %v8681_v60  ;;  %v8731_v60 = vld [vmem:[%s11627_s5 + $0x64] ss:$8 sps:$4 sm:$0xff]  }
 0x1c7   : > { %v1194_v63 = vpack.c.bf16 %v1190_v62, %v1187_v59  ;;  %v8689_v59 = vld [vmem:[%s11627_s5 + $0x144] ss:$8 sps:$4 sm:$0xff]   ;;  %v8729_v62 = vld [vmem:[%s11627_s5 + $0x60] ss:$8 sps:$4 sm:$0xff]  }
 0x1c8   : > { %v8604_v1 = vpop.f32.mrf.mxu0 }
 0x1c9   : > { %7405 = vmatmul.mubr.msk.bf16.vlgmr.msra.gmra.mxu1 %vm626_vm2, %v1194_v63  ;;  %v8692_v63 = vld [vmem:[%s11627_s5 + $0x134] ss:$8 sps:$4 sm:$0xff]  }
 0x1ca   : > { %1416 = vmatprep.mubr.bf16.mxu1 %v9390_v12  ;;  %v8734_v1 = vld [vmem:[%s11627_s5 + $0x54] ss:$8 sps:$4 sm:$0xff]  }
 0x279   : > { %v997_v6 = vpop.f32.mrf.mxu1 }
 0x27a   : > { %v1006_v18 = vadd.f32 %v997_v6, %v870_v15  ;;  %v8693_v6 = vld [vmem:[%s11627_s5 + $0x120] ss:$8 sps:$4 sm:$0xff]  }
 0x27b   : > { %v999_v7 = vpop.f32.mrf.mxu1  ;;  %v8699_v15 = vld [vmem:[%s11627_s5 + $0x100] ss:$8 sps:$4 sm:$0xff]  }
 0x27c   : > { %v1007_v23 = vadd.f32 %v999_v7, %v872_v17  ;;  %v8735_v7 = vld [vmem:[%s11627_s5 + $0x40] ss:$8 sps:$4 sm:$0xff]   ;;  %v8704_v17 = vld [vmem:[%s11627_s5 + $0xf4] ss:$8 sps:$4 sm:$0xff]  }
 0x27d   : > { %v1001_v8 = vpop.f32.mrf.mxu1 }
 0x27e   : > { %v1008_v28 = vadd.f32 %v1001_v8, %v874_v22  ;;  %v8698_v8 = vld [vmem:[%s11627_s5 + $0x114] ss:$8 sps:$4 sm:$0xff]   ;;  %v8707_v22 = vld [vmem:[%s11627_s5 + $0xe4] ss:$8 sps:$4 sm:$0xff]  }
 0x27f   : > { %v1003_v10 = vpop.f32.mrf.mxu1 }
 0x280   : > { %v1009_v33 = vadd.f32 %v1003_v10, %v876_v26  ;;  %v8696_v10 = vld [vmem:[%s11627_s5 + $0x110] ss:$8 sps:$4 sm:$0xff]   ;;  %v8747_v26 = vld [vmem:[%s11627_s5] ss:$8 sps:$4 sm:$0xff]  }
 0x281   : > { %v1129_v11 = vpop.f32.mrf.mxu1 }
 0x282   : > { %v1138_v24 = vadd.f32 %v1129_v11, %v1006_v18  ;;  %v8738_v11 = vld [vmem:[%s11627_s5 + $0x30] ss:$8 sps:$4 sm:$0xff]   ;;  %v8746_v18 = vld [vmem:[%s11627_s5 + $0x14] ss:$8 sps:$4 sm:$0xff]  }
 0x283   : > { %v1131_v14 = vpop.f32.mrf.mxu1 }
 0x284   : > { %v1139_v29 = vadd.f32 %v1131_v14, %v1007_v23  ;;  %v8743_v14 = vld [vmem:[%s11627_s5 + $0x24] ss:$8 sps:$4 sm:$0xff]  }
 0x285   : > { %v1133_v16 = vpop.f32.mrf.mxu1  ;;  %v8749_v23 = vld [vmem:[%s11627_s5 + $0x4] ss:$8 sps:$4 sm:$0xff]  }
 0x286   : > { %v1140_v34 = vadd.f32 %v1133_v16, %v1008_v28  ;;  %v8741_v16 = vld [vmem:[%s11627_s5 + $0x20] ss:$8 sps:$4 sm:$0xff]   ;;  %v8752_v28 = vld [vmem:[%s11627_s5 + $0xd4] ss:$8 sps:$4 sm:$0xff]  }
 0x287   : > { %v1135_v20 = vpop.f32.mrf.mxu1 }
 0x288   : > { %v1141_v38 = vadd.f32 %v1135_v20, %v1009_v33  ;;  %v8702_v20 = vld [vmem:[%s11627_s5 + $0xf0] ss:$8 sps:$4 sm:$0xff]   ;;  %v8711_v33 = vld [vmem:[%s11627_s5 + $0x1a0] ss:$8 sps:$4 sm:$0xff]  }
 0x289   : > { %v1261_v27 = vpop.f32.mrf.mxu1 }
 0x28a   : > { %v1270_v30 = vadd.f32 %v1261_v27, %v1138_v24  ;;  %v8705_v24 = vld [vmem:[%s11627_s5 + $0xe0] ss:$8 sps:$4 sm:$0xff]   ;;  %v8710_v27 = vld [vmem:[%s11627_s5 + $0x1b4] ss:$8 sps:$4 sm:$0xff]  }
 0x28b   : > { %v1263_v32 = vpop.f32.mrf.mxu1 }
 0x28c   : > { %v1271_v35 = vadd.f32 %v1263_v32, %v1139_v29  ;;  %v1286_v39 = vadd.f32 %v1279_v31, %v1270_v30  ;;  %v8708_v29 = vld [vmem:[%s11627_s5 + $0x1b0] ss:$8 sps:$4 sm:$0xff]   ;;  %v8755_v32 = vld [vmem:[%s11627_s5 + $0xc4] ss:$8 sps:$4 sm:$0xff]  }
 0x28d   : > { %v1265_v37 = vpop.f32.mrf.mxu1  ;;  %v8750_v30 = vld [vmem:[%s11627_s5 + $0xd0] ss:$8 sps:$4 sm:$0xff]  }
 0x28e   : > { %v1272_v41 = vadd.f32 %v1265_v37, %v1140_v34  ;;  %v1287_v43 = vadd.f32 %v1283_v36, %v1271_v35  ;;  %v1290_v45 = vmax.f32 %v1286_v39, 0.0  ;;  %v8753_v34 = vld [vmem:[%s11627_s5 + $0xc0] ss:$8 sps:$4 sm:$0xff]   ;;  %v8716_v35 = vld [vmem:[%s11627_s5 + $0x194] ss:$8 sps:$4 sm:$0xff]  }
 0x28f   : > { %v1267_v42 = vpop.f32.mrf.mxu1  ;;  %v8714_v37 = vld [vmem:[%s11627_s5 + $0x190] ss:$8 sps:$4 sm:$0xff]   ;;  %v8719_v39 = vld [vmem:[%s11627_s5 + $0x184] ss:$8 sps:$4 sm:$0xff]  }
 0x290   : > { %v1288_v44 = vadd.f32 %v1279_v31, %v1272_v41  ;;  %v1273_v40 = vadd.f32 %v1267_v42, %v1141_v38  ;;  %v1291_v48 = vmax.f32 %v1287_v43, 0.0  ;;  %v8713_v31 = vld [vmem:[%s11627_s5 + $0x1a4] ss:$8 sps:$4 sm:$0xff]   ;;  %v8756_v38 = vld [vmem:[%s11627_s5 + $0xb0] ss:$8 sps:$4 sm:$0xff]  }
 0x291   : > { %v8761_v41 = vld [vmem:[%s11627_s5 + $0xa4] ss:$8 sps:$4 sm:$0xff]   ;;  %v8717_v42 = vld [vmem:[%s11627_s5 + $0x180] ss:$8 sps:$4 sm:$0xff]  }
 0x292   : > { %v1292_v46 = vmax.f32 %v1288_v44, 0.0  ;;  %v1289_v47 = vadd.f32 %v1283_v36, %v1273_v40  ;;  %v8758_v36 = vld [vmem:[%s11627_s5 + $0xb4] ss:$8 sps:$4 sm:$0xff]   ;;  %v8759_v43 = vld [vmem:[%s11627_s5 + $0xa0] ss:$8 sps:$4 sm:$0xff]  }
 0x293   : > { %v8722_v44 = vld [vmem:[%s11627_s5 + $0x174] ss:$8 sps:$4 sm:$0xff]  }
 0x294   : > { %v1294_v49 = vpack.c.bf16 %v1292_v46, %v1290_v45  ;;  %v1293_v50 = vmax.f32 %v1289_v47, 0.0  ;;  %v8764_v40 = vld [vmem:[%s11627_s5 + $0x94] ss:$8 sps:$4 sm:$0xff]   ;;  %v8720_v45 = vld [vmem:[%s11627_s5 + $0x170] ss:$8 sps:$4 sm:$0xff]  }
 0x295   : > { %v8762_v46 = vld [vmem:[%s11627_s5 + $0x90] ss:$8 sps:$4 sm:$0xff]   ;;  %v8725_v47 = vld [vmem:[%s11627_s5 + $0x164] ss:$8 sps:$4 sm:$0xff]  }
 0x296   : > { %v9643_v51 = vpack.c.bf16 %v1293_v50, %v1291_v48  ;;  %v9656_v54 = vsel %vm1301_vm3, %v1294_v49, 0  ;;  %v8723_v48 = vld [vmem:[%s11627_s5 + $0x160] ss:$8 sps:$4 sm:$0xff]   ;;  %v8767_v49 = vld [vmem:[%s11627_s5 + $0x84] ss:$8 sps:$4 sm:$0xff]  }
 0x297   : > { %v8765_v50 = vld [vmem:[%s11627_s5 + $0x80] ss:$8 sps:$4 sm:$0xff]  }
 0x298   : > { %7406 = vmatprep.subr.msk.bf16.mxu0 %vm1301_vm3, %v9643_v51  ;;  %7409 = vmatprep.subr.msk.bf16.mxu1 %vm1301_vm3, %v9643_v51 }
 0x299   : > { %1323 = vmatpush1.bf16.msra.mxu0 %v9656_v54  ;;  %1399 = vmatpush1.bf16.msra.mxu1 %v9656_v54 }
 0x29a   : > { %1600 = vmatprep.subr.bf16.mxu0 %v8686_v52  ;;  %1784 = vmatprep.subr.bf16.mxu1 %v8728_v53  ;;  %v8770_v52 = vld [vmem:[%s11627_s5 + $0x234] ss:$8 sps:$4 sm:$0xff]  }
 0x29c   : > { %7407 = vmatmul.mubr.msk.bf16.vlgmr.msra.gmra.mxu0 %vm1297_vm4, %v1296_v55  ;;  %7410 = vmatmul.mubr.msk.bf16.vlgmr.msra.gmra.mxu1 %vm1297_vm4, %v7408_v56 }
 0x29d   : > { %1601 = vmatpush1.bf16.msra.mxu0 %v8684_v57  ;;  %1785 = vmatpush1.bf16.msra.mxu1 %v8726_v58 }
 0x29e   : > { %1602 = vmatprep.subr.bf16.mxu0 %v8689_v59  ;;  %1786 = vmatprep.subr.bf16.mxu1 %v8731_v60 }
 0x2a1   : > { %1603 = vmatpush1.bf16.msra.mxu0 %v8687_v61  ;;  %1787 = vmatpush1.bf16.msra.mxu1 %v8729_v62  ;;  %v8768_v61 = vld [vmem:[%s11627_s5 + $0x230] ss:$8 sps:$4 sm:$0xff]  }
 0x2a2   : > { %1604 = vmatprep.subr.bf16.mxu0 %v8692_v63  ;;  %1788 = vmatprep.subr.bf16.mxu1 %v8734_v1  ;;  %v8773_v1 = vld [vmem:[%s11627_s5 + $0x224] ss:$8 sps:$4 sm:$0xff]  }
 0x2a5   : > { %1605 = vmatpush1.bf16.msra.mxu0 %v8690_v2  ;;  %1789 = vmatpush1.bf16.msra.mxu1 %v8732_v3 }
 0x2a6   : > { %1606 = vmatprep.subr.bf16.mxu0 %v8695_v4  ;;  %1790 = vmatprep.subr.bf16.mxu1 %v8737_v5  ;;  %v8771_v5 = vld [vmem:[%s11627_s5 + $0x220] ss:$8 sps:$4 sm:$0xff]  }
 0x2a9   : > { %1607 = vmatpush1.bf16.msra.mxu0 %v8693_v6  ;;  %1791 = vmatpush1.bf16.msra.mxu1 %v8735_v7  ;;  %v8776_v6 = vld [vmem:[%s11627_s5 + $0x214] ss:$8 sps:$4 sm:$0xff]   ;;  %v8774_v7 = vld [vmem:[%s11627_s5 + $0x210] ss:$8 sps:$4 sm:$0xff]  }
 0x2aa   : > { %1608 = vmatprep.subr.bf16.mxu0 %v8698_v8  ;;  %1792 = vmatprep.subr.bf16.mxu1 %v8740_v9  ;;  %v7497_v8 = vld [vmem:[%s11626_s4 + $0x8] sm:$0xf]  ;;  %v8779_v9 = vld [vmem:[%s11627_s5 + $0x204] ss:$8 sps:$4 sm:$0xff]  }
 0x2ad   : > { %1609 = vmatpush1.bf16.msra.mxu0 %v8696_v10  ;;  %1793 = vmatpush1.bf16.msra.mxu1 %v8738_v11  ;;  %v8812_v10 = vld [vmem:[%s11627_s5 + $0x314] ss:$8 sps:$4 sm:$0xff]   ;;  %v8777_v11 = vld [vmem:[%s11627_s5 + $0x200] ss:$8 sps:$4 sm:$0xff]  }
 0x2ae   : > { %1610 = vmatprep.subr.bf16.mxu0 %v8701_v13  ;;  %1794 = vmatprep.subr.bf16.mxu1 %v8743_v14  ;;  %v8782_v13 = vld [vmem:[%s11627_s5 + $0x1f4] ss:$8 sps:$4 sm:$0xff]   ;;  %v8780_v14 = vld [vmem:[%s11627_s5 + $0x1f0] ss:$8 sps:$4 sm:$0xff]  }
 0x2b1   : > { %1611 = vmatpush1.bf16.msra.mxu0 %v8699_v15  ;;  %1795 = vmatpush1.bf16.msra.mxu1 %v8741_v16  ;;  %v7557_v15 = vld [vmem:[%s11626_s4 + $0xc] sm:$0xf]  ;;  %v8810_v16 = vld [vmem:[%s11627_s5 + $0x310] ss:$8 sps:$4 sm:$0xff]  }
 0x2b2   : > { %1612 = vmatprep.subr.bf16.mxu0 %v8704_v17  ;;  %1796 = vmatprep.subr.bf16.mxu1 %v8746_v18  ;;  %v8785_v17 = vld [vmem:[%s11627_s5 + $0x1e4] ss:$8 sps:$4 sm:$0xff]  }
 0x2b3   : > { %v8815_v18 = vld [vmem:[%s11627_s5 + $0x304] ss:$8 sps:$4 sm:$0xff]  }
 0x2b5   : > { %1613 = vmatpush1.bf16.msra.mxu0 %v8702_v20  ;;  %1797 = vmatpush1.bf16.msra.mxu1 %v8744_v21  ;;  %v8783_v20 = vld [vmem:[%s11627_s5 + $0x1e0] ss:$8 sps:$4 sm:$0xff]  }
 0x2b6   : > { %1614 = vmatprep.subr.bf16.mxu0 %v8707_v22  ;;  %1798 = vmatprep.subr.bf16.mxu1 %v8749_v23  ;;  %v8813_v21 = vld [vmem:[%s11627_s5 + $0x300] ss:$8 sps:$4 sm:$0xff]   ;;  %v8788_v22 = vld [vmem:[%s11627_s5 + $0x1d4] ss:$8 sps:$4 sm:$0xff]  }
 0x2b7   : > { %v8818_v23 = vld [vmem:[%s11627_s5 + $0x2f4] ss:$8 sps:$4 sm:$0xff]  }
 0x2b9   : > { %1615 = vmatpush1.bf16.msra.mxu0 %v8705_v24  ;;  %1799 = vmatpush1.bf16.msra.mxu1 %v8747_v26  ;;  %v8786_v24 = vld [vmem:[%s11627_s5 + $0x1d0] ss:$8 sps:$4 sm:$0xff]  }
 0x2ba   : > { %1620 = vmatprep.subr.bf16.mxu0 %v8710_v27  ;;  %1804 = vmatprep.subr.bf16.mxu1 %v8752_v28  ;;  %v8816_v26 = vld [vmem:[%s11627_s5 + $0x2f0] ss:$8 sps:$4 sm:$0xff]   ;;  %v8791_v27 = vld [vmem:[%s11627_s5 + $0x1c4] ss:$8 sps:$4 sm:$0xff]  }
 0x2bb   : > { %v8821_v28 = vld [vmem:[%s11627_s5 + $0x2e4] ss:$8 sps:$4 sm:$0xff]  }
 0x2bd   : > { %1621 = vmatpush2.bf16.msra.mxu0 %v8708_v29  ;;  %1805 = vmatpush2.bf16.msra.mxu1 %v8750_v30  ;;  %v8789_v29 = vld [vmem:[%s11627_s5 + $0x1c0] ss:$8 sps:$4 sm:$0xff]  }
 0x2be   : > { %1622 = vmatprep.subr.bf16.mxu0 %v8713_v31  ;;  %1806 = vmatprep.subr.bf16.mxu1 %v8755_v32  ;;  %v8819_v30 = vld [vmem:[%s11627_s5 + $0x2e0] ss:$8 sps:$4 sm:$0xff]   ;;  %v8794_v31 = vld [vmem:[%s11627_s5 + $0x294] ss:$8 sps:$4 sm:$0xff]  }
 0x2bf   : > { %v8824_v32 = vld [vmem:[%s11627_s5 + $0x2d4] ss:$8 sps:$4 sm:$0xff]  }
 0x2c1   : > { %1623 = vmatpush2.bf16.msra.mxu0 %v8711_v33  ;;  %1807 = vmatpush2.bf16.msra.mxu1 %v8753_v34  ;;  %v8792_v33 = vld [vmem:[%s11627_s5 + $0x290] ss:$8 sps:$4 sm:$0xff]  }
 0x2c2   : > { %1624 = vmatprep.subr.bf16.mxu0 %v8716_v35  ;;  %1808 = vmatprep.subr.bf16.mxu1 %v8758_v36  ;;  %v8822_v34 = vld [vmem:[%s11627_s5 + $0x2d0] ss:$8 sps:$4 sm:$0xff]   ;;  %v8797_v35 = vld [vmem:[%s11627_s5 + $0x284] ss:$8 sps:$4 sm:$0xff]  }
 0x2c3   : > { %v8827_v36 = vld [vmem:[%s11627_s5 + $0x2c4] ss:$8 sps:$4 sm:$0xff]  }
 0x2c5   : > { %1625 = vmatpush2.bf16.msra.mxu0 %v8714_v37  ;;  %1809 = vmatpush2.bf16.msra.mxu1 %v8756_v38  ;;  %v8795_v37 = vld [vmem:[%s11627_s5 + $0x280] ss:$8 sps:$4 sm:$0xff]  }
 0x2c6   : > { %1626 = vmatprep.subr.bf16.mxu0 %v8719_v39  ;;  %1810 = vmatprep.subr.bf16.mxu1 %v8761_v41  ;;  %v8825_v38 = vld [vmem:[%s11627_s5 + $0x2c0] ss:$8 sps:$4 sm:$0xff]   ;;  %v8800_v39 = vld [vmem:[%s11627_s5 + $0x274] ss:$8 sps:$4 sm:$0xff]  }
 0x2c7   : > { %v8830_v41 = vld [vmem:[%s11627_s5 + $0x2b4] ss:$8 sps:$4 sm:$0xff]  }
 0x2c9   : > { %1627 = vmatpush2.bf16.msra.mxu0 %v8717_v42  ;;  %1811 = vmatpush2.bf16.msra.mxu1 %v8759_v43  ;;  %v8798_v42 = vld [vmem:[%s11627_s5 + $0x270] ss:$8 sps:$4 sm:$0xff]  }
 0x2ca   : > { %1628 = vmatprep.subr.bf16.mxu0 %v8722_v44  ;;  %1812 = vmatprep.subr.bf16.mxu1 %v8764_v40  ;;  %v8828_v43 = vld [vmem:[%s11627_s5 + $0x2b0] ss:$8 sps:$4 sm:$0xff]   ;;  %v8803_v44 = vld [vmem:[%s11627_s5 + $0x264] ss:$8 sps:$4 sm:$0xff]  }
 0x2cb   : > { %v8833_v40 = vld [vmem:[%s11627_s5 + $0x2a4] ss:$8 sps:$4 sm:$0xff]  }
 0x2cd   : > { %1629 = vmatpush2.bf16.msra.mxu0 %v8720_v45  ;;  %1813 = vmatpush2.bf16.msra.mxu1 %v8762_v46  ;;  %v8801_v45 = vld [vmem:[%s11627_s5 + $0x260] ss:$8 sps:$4 sm:$0xff]  }
 0x2ce   : > { %1630 = vmatprep.subr.bf16.mxu0 %v8725_v47  ;;  %1814 = vmatprep.subr.bf16.mxu1 %v8767_v49  ;;  %v8831_v46 = vld [vmem:[%s11627_s5 + $0x2a0] ss:$8 sps:$4 sm:$0xff]   ;;  %v8806_v47 = vld [vmem:[%s11627_s5 + $0x254] ss:$8 sps:$4 sm:$0xff]   ;;  %v8804_v49 = vld [vmem:[%s11627_s5 + $0x250] ss:$8 sps:$4 sm:$0xff]  }
 0x2d1   : > { %1631 = vmatpush2.bf16.msra.mxu0 %v8723_v48  ;;  %1815 = vmatpush2.bf16.msra.mxu1 %v8765_v50  ;;  %v8836_v48 = vld [vmem:[%s11627_s5 + $0x374] ss:$8 sps:$4 sm:$0xff]   ;;  %v8834_v50 = vld [vmem:[%s11627_s5 + $0x370] ss:$8 sps:$4 sm:$0xff]  }
 0x2d2   : > { %7498 = vmatprep.subr.msk.bf16.mxu0 %vm1301_vm3, %v9643_v51  ;;  %2045 = vmatprep.subr.bf16.mxu1 %v8770_v52  ;;  %v8809_v52 = vld [vmem:[%s11627_s5 + $0x244] ss:$8 sps:$4 sm:$0xff]  }
 0x35c   : > { %v1342_v53 = vpop.f32.mrf.mxu0  ;;  %v1418_v55 = vpop.f32.mrf.mxu1 }
 0x35d   : > { %v1349_v56 = vpack.c.bf16 %v1342_v53, %v1342_v53  ;;  %v1425_v62 = vpack.c.bf16 %v1418_v55, %v1418_v55  ;;  %v8807_v53 = vld [vmem:[%s11627_s5 + $0x240] ss:$8 sps:$4 sm:$0xff]   ;;  %v8839_v55 = vld [vmem:[%s11627_s5 + $0x364] ss:$8 sps:$4 sm:$0xff]  }
 0x35e   : > { %v1344_v57 = vpop.f32.mrf.mxu0  ;;  %v1420_v58 = vpop.f32.mrf.mxu1 }
 0x35f   : > { %v1350_v59 = vpack.c.bf16 %v1344_v57, %v1344_v57  ;;  %v1426_v60 = vpack.c.bf16 %v1420_v58, %v1420_v58  ;;  %v8842_v57 = vld [vmem:[%s11627_s5 + $0x354] ss:$8 sps:$4 sm:$0xff]   ;;  %v8840_v58 = vld [vmem:[%s11627_s5 + $0x350] ss:$8 sps:$4 sm:$0xff]  }
 0x360   : > { %v1422_v63 = vpop.f32.mrf.mxu1  ;;  %v1346_v2 = vpop.f32.mrf.mxu0 }
 0x361   : > { %7467 = vmatprep.mubr.msk.bf16.mxu0 %vm1596_vm5, %v1426_v60  ;;  %7496 = vmatprep.mubr.msk.bf16.mxu1 %vm1596_vm5, %v1350_v59  ;;  %v8843_v59 = vld [vmem:[%s11627_s5 + $0x340] ss:$8 sps:$4 sm:$0xff]   ;;  %v8848_v60 = vld [vmem:[%s11627_s5 + $0x334] ss:$8 sps:$4 sm:$0xff]  }
 0x362   : > { %v1423_v3 = vpop.f32.mrf.mxu1  ;;  %1633 = vmatmul.mubr.bf16.vlgmr.msra.gmra.mxu0 %v1425_v62  ;;  %1817 = vmatmul.mubr.bf16.vlgmr.msra.gmra.mxu1 %v1349_v56  ;;  %v1347_v4 = vpop.f32.mrf.mxu0  ;;  %v8837_v56 = vld [vmem:[%s11627_s5 + $0x360] ss:$8 sps:$4 sm:$0xff]   ;;  %v8851_v62 = vld [vmem:[%s11627_s5 + $0x324] ss:$8 sps:$4 sm:$0xff]  }
 0x363   : > { %1845 = vmatpush1.bf16.msra.mxu0 %v9656_v54  ;;  %2046 = vmatpush1.bf16.msra.mxu1 %v8768_v61  ;;  %v8846_v61 = vld [vmem:[%s11627_s5 + $0x330] ss:$8 sps:$4 sm:$0xff]   ;;  %v8849_v63 = vld [vmem:[%s11627_s5 + $0x320] ss:$8 sps:$4 sm:$0xff]  }
 0x364   : > { %7558 = vmatprep.subr.msk.bf16.mxu0 %vm1301_vm3, %v9643_v51  ;;  %2047 = vmatprep.subr.bf16.mxu1 %v8773_v1 }
 0x365   : > { %1862 = vmatprep.mubr.bf16.mxu0 %v9390_v12 }
 0x367   : > { %2048 = vmatpush1.bf16.msra.mxu1 %v8771_v5 }
 0x368   : > { %2049 = vmatprep.subr.bf16.mxu1 %v8776_v6 }
 0x36a   : > { %7499 = vmatmul.mubr.msk.bf16.vlgmr.msra.gmra.mxu0 %vm1297_vm4, %v7497_v8 }
 0x36b   : > { %2050 = vmatpush1.bf16.msra.mxu1 %v8774_v7  ;;  %2108 = vmatpush1.bf16.msra.mxu0 %v9656_v54 }
 0x36c   : > { %2051 = vmatprep.subr.bf16.mxu1 %v8779_v9  ;;  %2125 = vmatprep.mubr.bf16.mxu0 %v9390_v12 }
 0x36d   : > { %2308 = vmatprep.subr.bf16.mxu0 %v8812_v10 }
 0x36f   : > { %2052 = vmatpush1.bf16.msra.mxu1 %v8777_v11 }
 0x370   : > { %2053 = vmatprep.subr.bf16.mxu1 %v8782_v13 }
 0x372   : > { %7559 = vmatmul.mubr.msk.bf16.vlgmr.msra.gmra.mxu0 %vm1297_vm4, %v7557_v15 }
 0x373   : > { %2054 = vmatpush1.bf16.msra.mxu1 %v8780_v14  ;;  %2309 = vmatpush1.bf16.msra.mxu0 %v8810_v16 }
 0x374   : > { %2055 = vmatprep.subr.bf16.mxu1 %v8785_v17  ;;  %2310 = vmatprep.subr.bf16.mxu0 %v8815_v18  ;;  %v8854_v17 = vld [vmem:[%s11627_s5 + $0x3f4] ss:$8 sps:$4 sm:$0xff]  }
 0x377   : > { %2056 = vmatpush1.bf16.msra.mxu1 %v8783_v20  ;;  %2311 = vmatpush1.bf16.msra.mxu0 %v8813_v21 }
 0x378   : > { %2057 = vmatprep.subr.bf16.mxu1 %v8788_v22  ;;  %2312 = vmatprep.subr.bf16.mxu0 %v8818_v23 }
 0x37b   : > { %2058 = vmatpush1.bf16.msra.mxu1 %v8786_v24  ;;  %2313 = vmatpush1.bf16.msra.mxu0 %v8816_v26  ;;  %v7617_v24 = vld [vmem:[%s11626_s4 + $0x10] sm:$0xf] }
 0x37c   : > { %2059 = vmatprep.subr.bf16.mxu1 %v8791_v27  ;;  %2314 = vmatprep.subr.bf16.mxu0 %v8821_v28  ;;  %v8852_v26 = vld [vmem:[%s11627_s5 + $0x3f0] ss:$8 sps:$4 sm:$0xff]   ;;  %v8857_v27 = vld [vmem:[%s11627_s5 + $0x3e4] ss:$8 sps:$4 sm:$0xff]  }
 0x37f   : > { %2060 = vmatpush1.bf16.msra.mxu1 %v8789_v29  ;;  %2315 = vmatpush1.bf16.msra.mxu0 %v8819_v30  ;;  %v8855_v29 = vld [vmem:[%s11627_s5 + $0x3e0] ss:$8 sps:$4 sm:$0xff]   ;;  %v8860_v30 = vld [vmem:[%s11627_s5 + $0x3d4] ss:$8 sps:$4 sm:$0xff]  }
 0x380   : > { %2065 = vmatprep.subr.bf16.mxu1 %v8794_v31  ;;  %2316 = vmatprep.subr.bf16.mxu0 %v8824_v32  ;;  %v8858_v31 = vld [vmem:[%s11627_s5 + $0x3d0] ss:$8 sps:$4 sm:$0xff]   ;;  %v8863_v32 = vld [vmem:[%s11627_s5 + $0x3c4] ss:$8 sps:$4 sm:$0xff]  }
 0x383   : > { %2066 = vmatpush2.bf16.msra.mxu1 %v8792_v33  ;;  %2317 = vmatpush1.bf16.msra.mxu0 %v8822_v34  ;;  %v8861_v33 = vld [vmem:[%s11627_s5 + $0x3c0] ss:$8 sps:$4 sm:$0xff]   ;;  %v8866_v34 = vld [vmem:[%s11627_s5 + $0x3b4] ss:$8 sps:$4 sm:$0xff]  }
 0x384   : > { %2067 = vmatprep.subr.bf16.mxu1 %v8797_v35  ;;  %2318 = vmatprep.subr.bf16.mxu0 %v8827_v36  ;;  %v8864_v35 = vld [vmem:[%s11627_s5 + $0x3b0] ss:$8 sps:$4 sm:$0xff]   ;;  %v8869_v36 = vld [vmem:[%s11627_s5 + $0x3a4] ss:$8 sps:$4 sm:$0xff]  }
 0x387   : > { %2068 = vmatpush2.bf16.msra.mxu1 %v8795_v37  ;;  %2319 = vmatpush1.bf16.msra.mxu0 %v8825_v38  ;;  %v8867_v37 = vld [vmem:[%s11627_s5 + $0x3a0] ss:$8 sps:$4 sm:$0xff]   ;;  %v8872_v38 = vld [vmem:[%s11627_s5 + $0x394] ss:$8 sps:$4 sm:$0xff]  }
 0x388   : > { %2069 = vmatprep.subr.bf16.mxu1 %v8800_v39  ;;  %2320 = vmatprep.subr.bf16.mxu0 %v8830_v41  ;;  %v8870_v39 = vld [vmem:[%s11627_s5 + $0x390] ss:$8 sps:$4 sm:$0xff]   ;;  %v8875_v41 = vld [vmem:[%s11627_s5 + $0x384] ss:$8 sps:$4 sm:$0xff]  }
 0x38b   : > { %2070 = vmatpush2.bf16.msra.mxu1 %v8798_v42  ;;  %2321 = vmatpush1.bf16.msra.mxu0 %v8828_v43  ;;  %v8873_v42 = vld [vmem:[%s11627_s5 + $0x380] ss:$8 sps:$4 sm:$0xff]   ;;  %v8878_v43 = vld [vmem:[%s11627_s5 + $0x454] ss:$8 sps:$4 sm:$0xff]  }
 0x38c   : > { %2071 = vmatprep.subr.bf16.mxu1 %v8803_v44  ;;  %2322 = vmatprep.subr.bf16.mxu0 %v8833_v40  ;;  %v8876_v44 = vld [vmem:[%s11627_s5 + $0x450] ss:$8 sps:$4 sm:$0xff]   ;;  %v8881_v40 = vld [vmem:[%s11627_s5 + $0x444] ss:$8 sps:$4 sm:$0xff]  }
 0x38f   : > { %2072 = vmatpush2.bf16.msra.mxu1 %v8801_v45  ;;  %2323 = vmatpush1.bf16.msra.mxu0 %v8831_v46  ;;  %v8879_v45 = vld [vmem:[%s11627_s5 + $0x440] ss:$8 sps:$4 sm:$0xff]   ;;  %v8884_v46 = vld [vmem:[%s11627_s5 + $0x434] ss:$8 sps:$4 sm:$0xff]  }
 0x390   : > { %2073 = vmatprep.subr.bf16.mxu1 %v8806_v47  ;;  %2328 = vmatprep.subr.bf16.mxu0 %v8836_v48  ;;  %v8882_v47 = vld [vmem:[%s11627_s5 + $0x430] ss:$8 sps:$4 sm:$0xff]   ;;  %v8887_v48 = vld [vmem:[%s11627_s5 + $0x424] ss:$8 sps:$4 sm:$0xff]  }
 0x393   : > { %2074 = vmatpush2.bf16.msra.mxu1 %v8804_v49  ;;  %2329 = vmatpush2.bf16.msra.mxu0 %v8834_v50  ;;  %v8885_v49 = vld [vmem:[%s11627_s5 + $0x420] ss:$8 sps:$4 sm:$0xff]   ;;  %v8890_v50 = vld [vmem:[%s11627_s5 + $0x414] ss:$8 sps:$4 sm:$0xff]  }
 0x394   : > { %2075 = vmatprep.subr.bf16.mxu1 %v8809_v52  ;;  %2330 = vmatprep.subr.bf16.mxu0 %v8839_v55  ;;  %v8888_v52 = vld [vmem:[%s11627_s5 + $0x410] ss:$8 sps:$4 sm:$0xff]   ;;  %v8891_v55 = vld [vmem:[%s11627_s5 + $0x400] ss:$8 sps:$4 sm:$0xff]  }
 0x397   : > { %2076 = vmatpush2.bf16.msra.mxu1 %v8807_v53  ;;  %2331 = vmatpush2.bf16.msra.mxu0 %v8837_v56  ;;  %v8893_v53 = vld [vmem:[%s11627_s5 + $0x404] ss:$8 sps:$4 sm:$0xff]  }
 0x398   : > { %7618 = vmatprep.subr.msk.bf16.mxu1 %vm1301_vm3, %v9643_v51  ;;  %2332 = vmatprep.subr.bf16.mxu0 %v8842_v57  ;;  %v8845_v51 = vld [vmem:[%s11627_s5 + $0x344] ss:$8 sps:$4 sm:$0xff]  }
 0x39b   : > { %2333 = vmatpush2.bf16.msra.mxu0 %v8840_v58 }
 0x39c   : > { %2334 = vmatprep.subr.bf16.mxu0 %v8845_v51 }
 0x39f   : > { %2335 = vmatpush2.bf16.msra.mxu0 %v8843_v59 }
 0x3a0   : > { %2336 = vmatprep.subr.bf16.mxu0 %v8848_v60 }
 0x3a3   : > { %2337 = vmatpush2.bf16.msra.mxu0 %v8846_v61 }
 0x3a4   : > { %2338 = vmatprep.subr.bf16.mxu0 %v8851_v62 }
 0x3a7   : > { %2339 = vmatpush2.bf16.msra.mxu0 %v8849_v63 }
 0x422   : > { %v1634_v1 = vpop.f32.mrf.mxu0  ;;  %v1818_v2 = vpop.f32.mrf.mxu1 }
 0x423   : > { %v10018_v3 = vadd.f32 %v1818_v2, %v1634_v1 }
 0x424   : > { %v1636_v4 = vpop.f32.mrf.mxu0  ;;  %v1820_v5 = vpop.f32.mrf.mxu1 }
 0x425   : > { %v10020_v6 = vadd.f32 %v1820_v5, %v1636_v4 }
 0x426   : > { %v1638_v7 = vpop.f32.mrf.mxu0  ;;  %v1822_v8 = vpop.f32.mrf.mxu1 }
 0x427   : > { %v8894_v7 = vld [vmem:[%s11630_s8 + $0x38] sm:$0xff]  }
 0x428   : > { %v1639_v9 = vpop.f32.mrf.mxu0  ;;  %v1823_v10 = vpop.f32.mrf.mxu1 }
 0x42a   : > { %v1864_v11 = vpop.f32.mrf.mxu0 }
 0x42b   : > { %v1871_v15 = vpack.c.bf16 %v1864_v11, %v1864_v11  ;;  %v8895_v11 = vld [vmem:[%s11630_s8 + $0x30] sm:$0xff]  }
 0x42c   : > { %v1866_v13 = vpop.f32.mrf.mxu0 }
 0x42d   : > { %v1872_v14 = vpack.c.bf16 %v1866_v13, %v1866_v13  ;;  %v8896_v13 = vld [vmem:[%s11630_s8 + $0x28] sm:$0xff]  }
 0x42e   : > { %v1868_v16 = vpop.f32.mrf.mxu0 }
 0x42f   : > { %7556 = vmatprep.mubr.msk.bf16.mxu1 %vm1596_vm5, %v1872_v14  ;;  %v8897_v14 = vld [vmem:[%s11630_s8 + $0x20] sm:$0xff]   ;;  %v8899_v16 = vld [vmem:[%s11630_s8 + $0x10] sm:$0xff]  }
 0x430   : > { %v1869_v18 = vpop.f32.mrf.mxu0  ;;  %2078 = vmatmul.mubr.bf16.vlgmr.msra.gmra.mxu1 %v1871_v15  ;;  %v8898_v15 = vld [vmem:[%s11630_s8 + $0x18] sm:$0xff]  }
 0x431   : > { %2371 = vmatpush1.bf16.msra.mxu1 %v9656_v54  ;;  %2388 = vmatprep.mubr.bf16.mxu1 %v9390_v12  ;;  %v8901_v18 = vld [vmem:[%s11630_s8] sm:$0xff]  }
 0x432   : > { %v2127_v20 = vpop.f32.mrf.mxu0  ;;  %2571 = vmatprep.subr.bf16.mxu1 %v8854_v17  ;;  %v8900_v17 = vld [vmem:[%s11630_s8 + $0x8] sm:$0xff]  }
 0x433   : > { %v2134_v21 = vpack.c.bf16 %v2127_v20, %v2127_v20  ;;  %v8902_v20 = vld [vmem:[%s11630_s8 + $0x68] sm:$0xff]  }
 0x434   : > { %v2129_v22 = vpop.f32.mrf.mxu0 }
 0x435   : > { %v2135_v23 = vpack.c.bf16 %v2129_v22, %v2129_v22  ;;  %v8904_v22 = vld [vmem:[%s11630_s8 + $0x58] sm:$0xff]  }
 0x436   : > { %v2131_v54 = vpop.f32.mrf.mxu0 }
 0x437   : > { %7616 = vmatprep.mubr.msk.bf16.mxu0 %vm1596_vm5, %v2135_v23  ;;  %v8905_v23 = vld [vmem:[%s11630_s8 + $0x50] sm:$0xff]  }
 0x438   : > { %2341 = vmatmul.mubr.bf16.vlgmr.msra.gmra.mxu0 %v2134_v21  ;;  %7619 = vmatmul.mubr.msk.bf16.vlgmr.msra.gmra.mxu1 %vm1297_vm4, %v7617_v24  ;;  %v2132_v28 = vpop.f32.mrf.mxu0  ;;  %v8903_v21 = vld [vmem:[%s11630_s8 + $0x60] sm:$0xff]   ;;  %v8906_v24 = vld [vmem:[%s11630_s8 + $0x48] sm:$0xff]  }
 0x439   : > { %2572 = vmatpush1.bf16.msra.mxu1 %v8852_v26  ;;  %2679 = vmatprep.mubr.bf16.mxu0 %v9390_v12  ;;  %v8907_v26 = vld [vmem:[%s11630_s8 + $0x40] sm:$0xff]  }
 0x43a   : > { %2573 = vmatprep.subr.bf16.mxu1 %v8857_v27  ;;  %v2614_v27 = vld [vmem:[%s11628_s6] sm:$0x3] }
 0x43b   : > { %v2619_v54 = vrot.slane %v2614_v27, %v9634_v19 }
 0x43d   : > { %2574 = vmatpush1.bf16.msra.mxu1 %v8855_v29 }
 0x43e   : > { %2575 = vmatprep.subr.bf16.mxu1 %v8860_v30  ;;  %v2623_v30 = vrot.slane %v2614_v27, %v9639_v25  ;;  %v8926_v27 = vld [vmem:[%s11630_s8 + $0xf8] sm:$0xff]  }
 0x441   : > { %2576 = vmatpush1.bf16.msra.mxu1 %v8858_v31 }
 0x442   : > { %2577 = vmatprep.subr.bf16.mxu1 %v8863_v32 }
 0x445   : > { %2578 = vmatpush1.bf16.msra.mxu1 %v8861_v33 }
 0x446   : > { %2579 = vmatprep.subr.bf16.mxu1 %v8866_v34 }
 0x449   : > { %2580 = vmatpush1.bf16.msra.mxu1 %v8864_v35 }
 0x44a   : > { %2581 = vmatprep.subr.bf16.mxu1 %v8869_v36 }
 0x44d   : > { %2582 = vmatpush1.bf16.msra.mxu1 %v8867_v37  ;;  %v9391_v37 = vmov 65535  }
 0x44e   : > { %2583 = vmatprep.subr.bf16.mxu1 %v8872_v38  ;;  %v2639_v38 = vsel %vm2637_vm6, 4294967295, %v9391_v37  ;;  %v8944_v37 = vld [vmem:[%s11630_s8 + $0x1b8] sm:$0xff]  }
 0x451   : > { %2584 = vmatpush1.bf16.msra.mxu1 %v8870_v39 }
 0x452   : > { %2585 = vmatprep.subr.bf16.mxu1 %v8875_v41 }
 0x455   : > { %2586 = vmatpush1.bf16.msra.mxu1 %v8873_v42 }
 0x456   : > { %2591 = vmatprep.subr.bf16.mxu1 %v8878_v43  ;;  %v10179_v43 = vsel %vm2638_vm7, %v2639_v38, 0  ;;  %v8935_v38 = vld [vmem:[%s11630_s8 + $0x120] sm:$0xff]  }
 0x459   : > { %2592 = vmatpush2.bf16.msra.mxu1 %v8876_v44 }
 0x45a   : > { %2593 = vmatprep.subr.bf16.mxu1 %v8881_v40 }
 0x45d   : > { %2594 = vmatpush2.bf16.msra.mxu1 %v8879_v45 }
 0x45e   : > { %2595 = vmatprep.subr.bf16.mxu1 %v8884_v46  ;;  %v2632_v46 = vld [vmem:[%s11629_s7] sm:$0x3] }
 0x461   : > { %2596 = vmatpush2.bf16.msra.mxu1 %v8882_v47  ;;  %v7678_v47 = vld [vmem:[%s11629_s7 + $0x2] sm:$0x3] }
 0x462   : > { %2597 = vmatprep.subr.bf16.mxu1 %v8887_v48  ;;  %v8908_v48 = vld [vmem:[%s11630_s8 + $0xa8] sm:$0xff]  }
 0x465   : > { %2598 = vmatpush2.bf16.msra.mxu1 %v8885_v49  ;;  %v8909_v49 = vld [vmem:[%s11630_s8 + $0xa0] sm:$0xff]  }
 0x466   : > { %2599 = vmatprep.subr.bf16.mxu1 %v8890_v50  ;;  %v8910_v50 = vld [vmem:[%s11630_s8 + $0x98] sm:$0xff]  }
 0x469   : > { %2600 = vmatpush2.bf16.msra.mxu1 %v8888_v52  ;;  %v8911_v52 = vld [vmem:[%s11630_s8 + $0x90] sm:$0xff]  }
 0x46a   : > { %2601 = vmatprep.subr.bf16.mxu1 %v8893_v53  ;;  %v8912_v53 = vld [vmem:[%s11630_s8 + $0x88] sm:$0xff]  }
 0x46d   : > { %2602 = vmatpush2.bf16.msra.mxu1 %v8891_v55  ;;  %v8913_v55 = vld [vmem:[%s11630_s8 + $0x80] sm:$0xff]  }
 0x46e   : > { %3009 = vmatprep.subr.bf16.mxu1 %v9390_v12 }
 0x4f0   : > { %v2079_v56 = vpop.f32.mrf.mxu1 }
 0x4f1   : > { %v2086_v57 = vadd.f32 %v2079_v56, %v10018_v3  ;;  %v8914_v56 = vld [vmem:[%s11630_s8 + $0x78] sm:$0xff]  }
 0x4f2   : > { %v2081_v58 = vpop.f32.mrf.mxu1 }
 0x4f3   : > { %v2087_v51 = vadd.f32 %v2081_v58, %v10020_v6  ;;  %v8916_v58 = vld [vmem:[%s11630_s8 + $0xd8] sm:$0xff]  }
 0x4f4   : > { %v2083_v59 = vpop.f32.mrf.mxu1 }
 0x4f5   : > { %v8918_v59 = vld [vmem:[%s11630_s8 + $0xc8] sm:$0xff]  }
 0x4f6   : > { %v2084_v60 = vpop.f32.mrf.mxu1 }
 0x4f7   : > { %v8919_v60 = vld [vmem:[%s11630_s8 + $0xc0] sm:$0xff]  }
 0x4f8   : > { %v2342_v61 = vpop.f32.mrf.mxu0  ;;  %v2390_v62 = vpop.f32.mrf.mxu1 }
 0x4f9   : > { %v2349_v63 = vadd.f32 %v2342_v61, %v2086_v57  ;;  %v2397_v8 = vpack.c.bf16 %v2390_v62, %v2390_v62  ;;  %v8915_v57 = vld [vmem:[%s11630_s8 + $0x70] sm:$0xff]   ;;  %v8920_v61 = vld [vmem:[%s11630_s8 + $0xb8] sm:$0xff]  }
 0x4fa   : > { %v2344_v1 = vpop.f32.mrf.mxu0  ;;  %v2392_v2 = vpop.f32.mrf.mxu1  ;;  %v8921_v62 = vld [vmem:[%s11630_s8 + $0xb0] sm:$0xff]  }
 0x4fb   : > { %v2350_v4 = vadd.f32 %v2344_v1, %v2087_v51  ;;  %v2398_v5 = vpack.c.bf16 %v2392_v2, %v2392_v2  ;;  %v8917_v51 = vld [vmem:[%s11630_s8 + $0xd0] sm:$0xff]  }
 0x4fc   : > { %v2394_v9 = vpop.f32.mrf.mxu1  ;;  %v2346_v10 = vpop.f32.mrf.mxu0 }
 0x4fd   : > { %7676 = vmatprep.mubr.msk.bf16.mxu1 %vm1596_vm5, %v2398_v5 }
 0x4fe   : > { %v2395_v3 = vpop.f32.mrf.mxu1  ;;  %2604 = vmatmul.mubr.bf16.vlgmr.msra.gmra.mxu1 %v2397_v8  ;;  %v2347_v6 = vpop.f32.mrf.mxu0 }
 0x4ff   : > { %3010 = vmatpush1.bf16.msra.mxu1 %v8894_v7  ;;  %v7783_v3 = vld [vmem:[%s11629_s7 + $0x6] sm:$0x3] }
 0x500   : > { %3011 = vmatprep.subr.bf16.mxu1 %v9390_v12 }
 0x503   : > { %3012 = vmatpush1.bf16.msra.mxu1 %v8895_v11 }
 0x504   : > { %3013 = vmatprep.subr.bf16.mxu1 %v9390_v12 }
 0x507   : > { %3014 = vmatpush1.bf16.msra.mxu1 %v8896_v13  ;;  %v8936_v13 = vld [vmem:[%s11630_s8 + $0x188] sm:$0xff]  }
 0x508   : > { %3015 = vmatprep.subr.bf16.mxu1 %v9390_v12 }
 0x50b   : > { %3016 = vmatpush1.bf16.msra.mxu1 %v8897_v14 }
 0x50c   : > { %3017 = vmatprep.subr.bf16.mxu1 %v9390_v12 }
 0x50f   : > { %3018 = vmatpush1.bf16.msra.mxu1 %v8898_v15  ;;  %v8937_v15 = vld [vmem:[%s11630_s8 + $0x180] sm:$0xff]  }
 0x510   : > { %3019 = vmatprep.subr.bf16.mxu1 %v9390_v12 }
 0x513   : > { %3020 = vmatpush1.bf16.msra.mxu1 %v8899_v16  ;;  %v7738_v16 = vld [vmem:[%s11629_s7 + $0x4] sm:$0x3] }
 0x514   : > { %3021 = vmatprep.subr.bf16.mxu1 %v9390_v12 }
 0x517   : > { %3022 = vmatpush1.bf16.msra.mxu1 %v8900_v17  ;;  %v8922_v17 = vld [vmem:[%s11630_s8 + $0x118] sm:$0xff]  }
 0x518   : > { %3023 = vmatprep.subr.bf16.mxu1 %v9390_v12 }
 0x51b   : > { %3024 = vmatpush1.bf16.msra.mxu1 %v8901_v18  ;;  %v8938_v18 = vld [vmem:[%s11630_s8 + $0x178] sm:$0xff]  }
 0x51c   : > { %3029 = vmatprep.subr.bf16.mxu1 %v9390_v12 }
 0x51f   : > { %3030 = vmatpush2.bf16.msra.mxu1 %v8902_v20  ;;  %v8923_v20 = vld [vmem:[%s11630_s8 + $0x110] sm:$0xff]  }
 0x520   : > { %3031 = vmatprep.subr.bf16.mxu1 %v9390_v12 }
 0x523   : > { %3032 = vmatpush2.bf16.msra.mxu1 %v8903_v21  ;;  %v8939_v21 = vld [vmem:[%s11630_s8 + $0x170] sm:$0xff]  }
 0x524   : > { %3033 = vmatprep.subr.bf16.mxu1 %v9390_v12 }
 0x527   : > { %3034 = vmatpush2.bf16.msra.mxu1 %v8904_v22  ;;  %v8924_v22 = vld [vmem:[%s11630_s8 + $0x108] sm:$0xff]  }
 0x528   : > { %3035 = vmatprep.subr.bf16.mxu1 %v9390_v12 }
 0x52b   : > { %3036 = vmatpush2.bf16.msra.mxu1 %v8905_v23  ;;  %v8940_v23 = vld [vmem:[%s11630_s8 + $0x168] sm:$0xff]  }
 0x52c   : > { %3037 = vmatprep.subr.bf16.mxu1 %v9390_v12 }
 0x52f   : > { %3038 = vmatpush2.bf16.msra.mxu1 %v8906_v24  ;;  %v8925_v24 = vld [vmem:[%s11630_s8 + $0x100] sm:$0xff]  }
 0x530   : > { %3039 = vmatprep.subr.bf16.mxu1 %v9390_v12 }
 0x533   : > { %3040 = vmatpush2.bf16.msra.mxu1 %v8907_v26  ;;  %v8941_v26 = vld [vmem:[%s11630_s8 + $0x160] sm:$0xff]  }
 0x5be   : > { %v2605_v28 = vpop.f32.mrf.mxu1 }
 0x5bf   : > { %v2612_v29 = vadd.f32 %v2605_v28, %v2349_v63  ;;  %v8927_v28 = vld [vmem:[%s11630_s8 + $0xf0] sm:$0xff]  }
 0x5c0   : > { %v2607_v31 = vpop.f32.mrf.mxu1 }
 0x5c1   : > { %v2626_v32 = vadd.f32 %v2619_v54, %v2612_v29  ;;  %v2613_v33 = vadd.f32 %v2607_v31, %v2350_v4  ;;  %v8942_v54 = vld [vmem:[%s11630_s8 + $0x158] sm:$0xff]   ;;  %v8943_v29 = vld [vmem:[%s11630_s8 + $0x150] sm:$0xff]   ;;  %v8929_v31 = vld [vmem:[%s11630_s8 + $0xe0] sm:$0xff]  }
 0x5c2   : > { %v2609_v34 = vpop.f32.mrf.mxu1 }
 0x5c3   : > { %v2628_v35 = vmax.f32 %v2626_v32, 0.0  ;;  %v2627_v36 = vadd.f32 %v2623_v30, %v2613_v33  ;;  %v8928_v30 = vld [vmem:[%s11630_s8 + $0xe8] sm:$0xff]   ;;  %v8931_v33 = vld [vmem:[%s11630_s8 + $0x140] sm:$0xff]   ;;  %v8932_v34 = vld [vmem:[%s11630_s8 + $0x138] sm:$0xff]  }
 0x5c4   : > { %v2610_v39 = vpop.f32.mrf.mxu1  ;;  %v8930_v32 = vld [vmem:[%s11630_s8 + $0x148] sm:$0xff]  }
 0x5c5   : > { %v2629_v41 = vmax.f32 %v2627_v36, 0.0  ;;  %v2630_v42 = vpack.c.bf16 %v2628_v35, %v2628_v35  ;;  %v8933_v35 = vld [vmem:[%s11630_s8 + $0x130] sm:$0xff]   ;;  %v8934_v36 = vld [vmem:[%s11630_s8 + $0x128] sm:$0xff]  }
 0x5c6   : > { %v8945_v39 = vld [vmem:[%s11630_s8 + $0x1b0] sm:$0xff]  }
 0x5c7   : > { %v2631_v44 = vpack.c.bf16 %v2629_v41, %v2629_v41  ;;  %v10185_v45 = vand.u32 %v10179_v43, %v2630_v42  ;;  %v8946_v41 = vld [vmem:[%s11630_s8 + $0x1a8] sm:$0xff]   ;;  %v8947_v42 = vld [vmem:[%s11630_s8 + $0x1a0] sm:$0xff]  }
 0x5c9   : > { %v10182_v40 = vand.u32 %v10179_v43, %v2631_v44  ;;  %v8948_v44 = vld [vmem:[%s11630_s8 + $0x198] sm:$0xff]  }
 0x5cb   : > { %2661 = vmatprep.subr.bf16.mxu0 %v10182_v40  ;;  %3273 = vmatprep.subr.bf16.mxu1 %v10182_v40 }
 0x5cc   : > { %2662 = vmatpush1.bf16.msra.mxu0 %v10185_v45 }
 0x5cd   : > { %2737 = vmatprep.subr.bf16.mxu0 %v10182_v40 }
 0x5cf   : > { %7677 = vmatmul.mubr.msk.bf16.vlgmr.msra.gmra.mxu0 %vm2633_vm8, %v2632_v46 }
 0x5d0   : > { %2738 = vmatpush1.bf16.msra.mxu0 %v10185_v45  ;;  %2755 = vmatprep.mubr.bf16.mxu0 %v9390_v12 }
 0x5d1   : > { %2882 = vmatprep.subr.bf16.mxu0 %v9390_v12 }
 0x5d7   : > { %7679 = vmatmul.mubr.msk.bf16.vlgmr.msra.gmra.mxu0 %vm2633_vm8, %v7678_v47 }
 0x5d8   : > { %2883 = vmatpush1.bf16.msra.mxu0 %v8908_v48 }
 0x5d9   : > { %2884 = vmatprep.subr.bf16.mxu0 %v9390_v12 }
 0x5dc   : > { %2885 = vmatpush1.bf16.msra.mxu0 %v8909_v49 }
 0x5dd   : > { %2886 = vmatprep.subr.bf16.mxu0 %v9390_v12 }
 0x5e0   : > { %2887 = vmatpush1.bf16.msra.mxu0 %v8910_v50 }
 0x5e1   : > { %2888 = vmatprep.subr.bf16.mxu0 %v9390_v12 }
 0x5e4   : > { %2889 = vmatpush1.bf16.msra.mxu0 %v8911_v52 }
 0x5e5   : > { %2890 = vmatprep.subr.bf16.mxu0 %v9390_v12 }
 0x5e8   : > { %2891 = vmatpush1.bf16.msra.mxu0 %v8912_v53 }
 0x5e9   : > { %2892 = vmatprep.subr.bf16.mxu0 %v9390_v12 }
 0x5ec   : > { %2893 = vmatpush1.bf16.msra.mxu0 %v8913_v55 }
 0x5ed   : > { %2894 = vmatprep.subr.bf16.mxu0 %v9390_v12 }
 0x5f0   : > { %2895 = vmatpush1.bf16.msra.mxu0 %v8914_v56 }
 0x5f1   : > { %2896 = vmatprep.subr.bf16.mxu0 %v9390_v12 }
 0x5f4   : > { %2897 = vmatpush1.bf16.msra.mxu0 %v8915_v57 }
 0x5f5   : > { %2902 = vmatprep.subr.bf16.mxu0 %v9390_v12 }
 0x5f8   : > { %2903 = vmatpush2.bf16.msra.mxu0 %v8916_v58 }
 0x5f9   : > { %2904 = vmatprep.subr.bf16.mxu0 %v9390_v12 }
 0x5fc   : > { %2905 = vmatpush2.bf16.msra.mxu0 %v8917_v51 }
 0x5fd   : > { %2906 = vmatprep.subr.bf16.mxu0 %v9390_v12 }
 0x600   : > { %2907 = vmatpush2.bf16.msra.mxu0 %v8918_v59 }
 0x601   : > { %2908 = vmatprep.subr.bf16.mxu0 %v9390_v12 }
 0x604   : > { %2909 = vmatpush2.bf16.msra.mxu0 %v8919_v60 }
 0x605   : > { %2910 = vmatprep.subr.bf16.mxu0 %v9390_v12 }
 0x608   : > { %2911 = vmatpush2.bf16.msra.mxu0 %v8920_v61 }
 0x609   : > { %2912 = vmatprep.subr.bf16.mxu0 %v9390_v12 }
 0x60c   : > { %2913 = vmatpush2.bf16.msra.mxu0 %v8921_v62 }
 0x60d   : > { %3068 = vmatprep.subr.bf16.mxu0 %v10182_v40 }
 0x68f   : > { %v2681_v63 = vpop.f32.mrf.mxu0 }
 0x690   : > { %v2688_v4 = vpack.c.bf16 %v2681_v63, %v2681_v63 }
 0x691   : > { %v2683_v1 = vpop.f32.mrf.mxu0 }
 0x692   : > { %v2689_v2 = vpack.c.bf16 %v2683_v1, %v2683_v1 }
 0x693   : > { %v2685_v5 = vpop.f32.mrf.mxu0 }
 0x694   : > { %7737 = vmatprep.mubr.msk.bf16.mxu1 %vm1596_vm5, %v2689_v2 }
 0x695   : > { %v2686_v7 = vpop.f32.mrf.mxu0  ;;  %3042 = vmatmul.mubr.bf16.vlgmr.msra.gmra.mxu1 %v2688_v4 }
 0x696   : > { %3274 = vmatpush1.bf16.msra.mxu1 %v10185_v45  ;;  %3291 = vmatprep.mubr.bf16.mxu1 %v9390_v12  ;;  %v7828_v7 = vld [vmem:[%s11629_s7 + $0x8] sm:$0x3] }
 0x697   : > { %v2757_v8 = vpop.f32.mrf.mxu0  ;;  %3418 = vmatprep.subr.bf16.mxu1 %v9390_v12 }
 0x698   : > { %v2764_v6 = vpack.c.bf16 %v2757_v8, %v2757_v8  ;;  %v8950_v8 = vld [vmem:[%s11630_s8 + $0x1f8] sm:$0xff]  }
 0x699   : > { %v2759_v9 = vpop.f32.mrf.mxu0 }
 0x69a   : > { %v2765_v10 = vpack.c.bf16 %v2759_v9, %v2759_v9  ;;  %v8951_v9 = vld [vmem:[%s11630_s8 + $0x1f0] sm:$0xff]  }
 0x69b   : > { %v2761_v11 = vpop.f32.mrf.mxu0 }
 0x69c   : > { %7722 = vmatprep.mubr.msk.bf16.mxu0 %vm1596_vm5, %v2765_v10  ;;  %v8953_v10 = vld [vmem:[%s11630_s8 + $0x1e0] sm:$0xff]   ;;  %v8956_v11 = vld [vmem:[%s11630_s8 + $0x1c8] sm:$0xff]  }
 0x69d   : > { %v2762_v14 = vpop.f32.mrf.mxu0  ;;  %2915 = vmatmul.mubr.bf16.vlgmr.msra.gmra.mxu0 %v2764_v6  ;;  %7784 = vmatmul.mubr.msk.bf16.vlgmr.msra.gmra.mxu1 %vm2633_vm8, %v7783_v3  ;;  %v8954_v3 = vld [vmem:[%s11630_s8 + $0x1d8] sm:$0xff]   ;;  %v8955_v6 = vld [vmem:[%s11630_s8 + $0x1d0] sm:$0xff]  }
 0x69e   : > { %3069 = vmatpush1.bf16.msra.mxu0 %v10185_v45  ;;  %3086 = vmatprep.mubr.bf16.mxu0 %v9390_v12  ;;  %v8958_v14 = vld [vmem:[%s11630_s8 + $0x228] sm:$0xff]  }
 0x69f   : > { %3213 = vmatprep.subr.bf16.mxu0 %v9390_v12  ;;  %3419 = vmatpush1.bf16.msra.mxu1 %v8936_v13  ;;  %v8957_v13 = vld [vmem:[%s11630_s8 + $0x1c0] sm:$0xff]  }
 0x6a0   : > { %3420 = vmatprep.subr.bf16.mxu1 %v9390_v12 }
 0x6a3   : > { %3421 = vmatpush1.bf16.msra.mxu1 %v8937_v15  ;;  %v8959_v15 = vld [vmem:[%s11630_s8 + $0x220] sm:$0xff]  }
 0x6a4   : > { %3422 = vmatprep.subr.bf16.mxu1 %v9390_v12 }
 0x6a5   : > { %7739 = vmatmul.mubr.msk.bf16.vlgmr.msra.gmra.mxu0 %vm2633_vm8, %v7738_v16  ;;  %v8960_v16 = vld [vmem:[%s11630_s8 + $0x218] sm:$0xff]  }
 0x6a6   : > { %3214 = vmatpush1.bf16.msra.mxu0 %v8922_v17  ;;  %v8961_v17 = vld [vmem:[%s11630_s8 + $0x210] sm:$0xff]  }
 0x6a7   : > { %3215 = vmatprep.subr.bf16.mxu0 %v9390_v12  ;;  %3423 = vmatpush1.bf16.msra.mxu1 %v8938_v18  ;;  %v8962_v18 = vld [vmem:[%s11630_s8 + $0x208] sm:$0xff]  }
 0x6a8   : > { %3424 = vmatprep.subr.bf16.mxu1 %v9390_v12 }
 0x6aa   : > { %3216 = vmatpush1.bf16.msra.mxu0 %v8923_v20  ;;  %v8963_v20 = vld [vmem:[%s11630_s8 + $0x200] sm:$0xff]  }
 0x6ab   : > { %3217 = vmatprep.subr.bf16.mxu0 %v9390_v12  ;;  %3425 = vmatpush1.bf16.msra.mxu1 %v8939_v21 }
 0x6ac   : > { %3426 = vmatprep.subr.bf16.mxu1 %v9390_v12 }
 0x6ae   : > { %3218 = vmatpush1.bf16.msra.mxu0 %v8924_v22 }
 0x6af   : > { %3219 = vmatprep.subr.bf16.mxu0 %v9390_v12  ;;  %3427 = vmatpush1.bf16.msra.mxu1 %v8940_v23 }
 0x6b0   : > { %3428 = vmatprep.subr.bf16.mxu1 %v9390_v12 }
 0x6b2   : > { %3220 = vmatpush1.bf16.msra.mxu0 %v8925_v24 }
 0x6b3   : > { %3221 = vmatprep.subr.bf16.mxu0 %v9390_v12  ;;  %3429 = vmatpush1.bf16.msra.mxu1 %v8941_v26 }
 0x6b4   : > { %3430 = vmatprep.subr.bf16.mxu1 %v9390_v12 }
 0x6b6   : > { %3222 = vmatpush1.bf16.msra.mxu0 %v8926_v27 }
 0x6b7   : > { %3223 = vmatprep.subr.bf16.mxu0 %v9390_v12  ;;  %3431 = vmatpush1.bf16.msra.mxu1 %v8942_v54 }
 0x6b8   : > { %3432 = vmatprep.subr.bf16.mxu1 %v9390_v12 }
 0x6ba   : > { %3224 = vmatpush1.bf16.msra.mxu0 %v8927_v28 }
 0x6bb   : > { %3225 = vmatprep.subr.bf16.mxu0 %v9390_v12  ;;  %3433 = vmatpush1.bf16.msra.mxu1 %v8943_v29 }
 0x6bc   : > { %3438 = vmatprep.subr.bf16.mxu1 %v9390_v12 }
 0x6be   : > { %3226 = vmatpush1.bf16.msra.mxu0 %v8928_v30 }
 0x6bf   : > { %3227 = vmatprep.subr.bf16.mxu0 %v9390_v12  ;;  %3439 = vmatpush2.bf16.msra.mxu1 %v8944_v37  ;;  %v8964_v37 = vld [vmem:[%s11633_s11 + $0x70] ss:$8 sps:$4 sm:$0xff]  }
 0x6c0   : > { %3440 = vmatprep.subr.bf16.mxu1 %v9390_v12 }
 0x6c2   : > { %3228 = vmatpush1.bf16.msra.mxu0 %v8929_v31 }
 0x6c3   : > { %3233 = vmatprep.subr.bf16.mxu0 %v9390_v12  ;;  %3441 = vmatpush2.bf16.msra.mxu1 %v8945_v39  ;;  %v8969_v39 = vld [vmem:[%s11633_s11 + $0x64] ss:$8 sps:$4 sm:$0xff]  }
 0x6c4   : > { %3442 = vmatprep.subr.bf16.mxu1 %v9390_v12 }
 0x6c6   : > { %3234 = vmatpush2.bf16.msra.mxu0 %v8930_v32 }
 0x6c7   : > { %3235 = vmatprep.subr.bf16.mxu0 %v9390_v12  ;;  %3443 = vmatpush2.bf16.msra.mxu1 %v8946_v41  ;;  %v8967_v41 = vld [vmem:[%s11633_s11 + $0x60] ss:$8 sps:$4 sm:$0xff]  }
 0x6c8   : > { %3444 = vmatprep.subr.bf16.mxu1 %v9390_v12 }
 0x6ca   : > { %3236 = vmatpush2.bf16.msra.mxu0 %v8931_v33 }
 0x6cb   : > { %3237 = vmatprep.subr.bf16.mxu0 %v9390_v12  ;;  %3445 = vmatpush2.bf16.msra.mxu1 %v8947_v42  ;;  %v8975_v42 = vld [vmem:[%s11633_s11 + $0x54] ss:$8 sps:$4 sm:$0xff]  }
 0x6cc   : > { %3446 = vmatprep.subr.bf16.mxu1 %v9390_v12 }
 0x6ce   : > { %3238 = vmatpush2.bf16.msra.mxu0 %v8932_v34 }
 0x6cf   : > { %3239 = vmatprep.subr.bf16.mxu0 %v9390_v12  ;;  %3447 = vmatpush2.bf16.msra.mxu1 %v8948_v44  ;;  %v8973_v44 = vld [vmem:[%s11633_s11 + $0x50] ss:$8 sps:$4 sm:$0xff]  }
 0x6d0   : > { %3448 = vmatprep.subr.bf16.mxu1 %v9390_v12 }
 0x6d2   : > { %3240 = vmatpush2.bf16.msra.mxu0 %v8933_v35 }
 0x6d3   : > { %3241 = vmatprep.subr.bf16.mxu0 %v9390_v12 }
 0x6d6   : > { %3242 = vmatpush2.bf16.msra.mxu0 %v8934_v36 }
 0x6d7   : > { %3243 = vmatprep.subr.bf16.mxu0 %v9390_v12 }
 0x6da   : > { %3244 = vmatpush2.bf16.msra.mxu0 %v8935_v38  ;;  %v8966_v38 = vld [vmem:[%s11633_s11 + $0x74] ss:$8 sps:$4 sm:$0xff]  }
 0x6db   : > { %3478 = vmatprep.subr.bf16.mxu0 %v10182_v40  ;;  %v8949_v40 = vld [vmem:[%s11630_s8 + $0x190] sm:$0xff]  }
 0x6dc   : > { %3449 = vmatpush2.bf16.msra.mxu1 %v8949_v40  ;;  %v8981_v40 = vld [vmem:[%s11633_s11 + $0x44] ss:$8 sps:$4 sm:$0xff]  }
 0x6dd   : > { %8605 = vmatprep.subr.bf16.mxu1 %v9388_v0 }
 0x755   : > { %v3043_v46 = vpop.f32.mrf.mxu1 }
 0x757   : > { %v3045_v47 = vpop.f32.mrf.mxu1 }
 0x758   : > { %v8987_v47 = vld [vmem:[%s11633_s11 + $0x34] ss:$8 sps:$4 sm:$0xff]  }
 0x759   : > { %v3046_v48 = vpop.f32.mrf.mxu1 }
 0x75a   : > { %v8985_v48 = vld [vmem:[%s11633_s11 + $0x30] ss:$8 sps:$4 sm:$0xff]  }
 0x75b   : > { %v3047_v49 = vpop.f32.mrf.mxu1 }
 0x75c   : > { %v8993_v49 = vld [vmem:[%s11633_s11 + $0x24] ss:$8 sps:$4 sm:$0xff]  }
 0x75d   : > { %v2916_v50 = vpop.f32.mrf.mxu0  ;;  %v3293_v52 = vpop.f32.mrf.mxu1 }
 0x75e   : > { %v10386_v53 = vadd.f32 %v3043_v46, %v2916_v50  ;;  %v3300_v56 = vpack.c.bf16 %v3293_v52, %v3293_v52  ;;  %v8979_v46 = vld [vmem:[%s11633_s11 + $0x40] ss:$8 sps:$4 sm:$0xff]   ;;  %v8999_v52 = vld [vmem:[%s11633_s11 + $0x14] ss:$8 sps:$4 sm:$0xff]  }
 0x75f   : > { %v2918_v55 = vpop.f32.mrf.mxu0  ;;  %v3295_v57 = vpop.f32.mrf.mxu1  ;;  %v8991_v50 = vld [vmem:[%s11633_s11 + $0x20] ss:$8 sps:$4 sm:$0xff]  }
 0x760   : > { %v3301_v58 = vpack.c.bf16 %v3295_v57, %v3295_v57  ;;  %v9005_v55 = vld [vmem:[%s11633_s11 + $0x4] ss:$8 sps:$4 sm:$0xff]  }
 0x761   : > { %v2919_v51 = vpop.f32.mrf.mxu0  ;;  %v3297_v59 = vpop.f32.mrf.mxu1 }
 0x762   : > { %7827 = vmatprep.mubr.msk.bf16.mxu1 %vm1596_vm5, %v3301_v58  ;;  %v7873_v58 = vld [vmem:[%s11631_s9] ss:$0 sm:$0xff] }
 0x763   : > { %v2920_v60 = vpop.f32.mrf.mxu0  ;;  %3451 = vmatmul.mubr.bf16.vlgmr.msra.gmra.mxu1 %v3300_v56  ;;  %v3298_v61 = vpop.f32.mrf.mxu1  ;;  %v9003_v56 = vld [vmem:[%s11633_s11] ss:$8 sps:$4 sm:$0xff]  }
 0x764   : > { %8607 = vmatprep.mubr.msk.bf16.mxu1 %vm9389_vm0, %v9388_v0 }
 0x765   : > { %v3088_v62 = vpop.f32.mrf.mxu0 }
 0x766   : > { %v3095_v2 = vpack.c.bf16 %v3088_v62, %v3088_v62 }
 0x767   : > { %v3090_v63 = vpop.f32.mrf.mxu0 }
 0x768   : > { %v3096_v1 = vpack.c.bf16 %v3090_v63, %v3090_v63 }
 0x769   : > { %v3092_v4 = vpop.f32.mrf.mxu0 }
 0x76a   : > { %7782 = vmatprep.mubr.msk.bf16.mxu0 %vm1596_vm5, %v3096_v1  ;;  %v3674_v4 = vld [vmem:[%s11632_s10] sm:$0xf] }
 0x76b   : > { %v3093_v5 = vpop.f32.mrf.mxu0  ;;  %3246 = vmatmul.mubr.bf16.vlgmr.msra.gmra.mxu0 %v3095_v2 }
 0x76c   : > { %3479 = vmatpush1.bf16.msra.mxu0 %v10185_v45  ;;  %3496 = vmatprep.mubr.bf16.mxu0 %v9390_v12  ;;  %v8952_v45 = vld [vmem:[%s11630_s8 + $0x1e8] sm:$0xff]   ;;  %v8972_v5 = vld [vmem:[%s11633_s11 + $0xf4] ss:$8 sps:$4 sm:$0xff]  }
 0x76d   : > { %3623 = vmatprep.subr.bf16.mxu0 %v9390_v12 }
 0x773   : > { %7829 = vmatmul.mubr.msk.bf16.vlgmr.msra.gmra.mxu0 %vm2633_vm8, %v7828_v7  ;;  %v7875_v7 = vld [vmem:[%s11632_s10 + $0x4] sm:$0xf] }
 0x774   : > { %3624 = vmatpush1.bf16.msra.mxu0 %v8950_v8  ;;  %v8970_v8 = vld [vmem:[%s11633_s11 + $0xf0] ss:$8 sps:$4 sm:$0xff]  }
 0x775   : > { %3625 = vmatprep.subr.bf16.mxu0 %v9390_v12 }
 0x778   : > { %3626 = vmatpush1.bf16.msra.mxu0 %v8951_v9  ;;  %v8978_v9 = vld [vmem:[%s11633_s11 + $0xe4] ss:$8 sps:$4 sm:$0xff]  }
 0x779   : > { %3627 = vmatprep.subr.bf16.mxu0 %v9390_v12 }
 0x77c   : > { %3628 = vmatpush1.bf16.msra.mxu0 %v8952_v45  ;;  %v8976_v45 = vld [vmem:[%s11633_s11 + $0xe0] ss:$8 sps:$4 sm:$0xff]  }
 0x77d   : > { %3629 = vmatprep.subr.bf16.mxu0 %v9390_v12 }
 0x780   : > { %3630 = vmatpush1.bf16.msra.mxu0 %v8953_v10  ;;  %v8984_v10 = vld [vmem:[%s11633_s11 + $0xd4] ss:$8 sps:$4 sm:$0xff]  }
 0x781   : > { %3631 = vmatprep.subr.bf16.mxu0 %v9390_v12 }
 0x784   : > { %3632 = vmatpush1.bf16.msra.mxu0 %v8954_v3  ;;  %v8982_v3 = vld [vmem:[%s11633_s11 + $0xd0] ss:$8 sps:$4 sm:$0xff]  }
 0x785   : > { %3633 = vmatprep.subr.bf16.mxu0 %v9390_v12 }
 0x788   : > { %3634 = vmatpush1.bf16.msra.mxu0 %v8955_v6  ;;  %v8990_v6 = vld [vmem:[%s11633_s11 + $0xc4] ss:$8 sps:$4 sm:$0xff]  }
 0x789   : > { %3635 = vmatprep.subr.bf16.mxu0 %v9390_v12 }
 0x78c   : > { %3636 = vmatpush1.bf16.msra.mxu0 %v8956_v11  ;;  %v8988_v11 = vld [vmem:[%s11633_s11 + $0xc0] ss:$8 sps:$4 sm:$0xff]  }
 0x78d   : > { %3637 = vmatprep.subr.bf16.mxu0 %v9390_v12 }
 0x790   : > { %3638 = vmatpush1.bf16.msra.mxu0 %v8957_v13  ;;  %v8996_v13 = vld [vmem:[%s11633_s11 + $0xb4] ss:$8 sps:$4 sm:$0xff]  }
 0x791   : > { %3643 = vmatprep.subr.bf16.mxu0 %v9390_v12 }
 0x794   : > { %3644 = vmatpush2.bf16.msra.mxu0 %v8958_v14  ;;  %v8994_v14 = vld [vmem:[%s11633_s11 + $0xb0] ss:$8 sps:$4 sm:$0xff]  }
 0x795   : > { %3645 = vmatprep.subr.bf16.mxu0 %v9390_v12 }
 0x798   : > { %3646 = vmatpush2.bf16.msra.mxu0 %v8959_v15  ;;  %v9002_v15 = vld [vmem:[%s11633_s11 + $0xa4] ss:$8 sps:$4 sm:$0xff]  }
 0x799   : > { %3647 = vmatprep.subr.bf16.mxu0 %v9390_v12 }
 0x79c   : > { %3648 = vmatpush2.bf16.msra.mxu0 %v8960_v16  ;;  %v9000_v16 = vld [vmem:[%s11633_s11 + $0xa0] ss:$8 sps:$4 sm:$0xff]  }
 0x79d   : > { %3649 = vmatprep.subr.bf16.mxu0 %v9390_v12 }
 0x7a0   : > { %3650 = vmatpush2.bf16.msra.mxu0 %v8961_v17  ;;  %v9008_v17 = vld [vmem:[%s11633_s11 + $0x94] ss:$8 sps:$4 sm:$0xff]  }
 0x7a1   : > { %3651 = vmatprep.subr.bf16.mxu0 %v9390_v12 }
 0x7a4   : > { %3652 = vmatpush2.bf16.msra.mxu0 %v8962_v18  ;;  %v9006_v18 = vld [vmem:[%s11633_s11 + $0x90] ss:$8 sps:$4 sm:$0xff]  }
 0x7a5   : > { %3653 = vmatprep.subr.bf16.mxu0 %v9390_v12 }
 0x7a8   : > { %3654 = vmatpush2.bf16.msra.mxu0 %v8963_v20  ;;  %v9011_v20 = vld [vmem:[%s11633_s11 + $0x84] ss:$8 sps:$4 sm:$0xff]  }
 0x7a9   : > { %4004 = vmatprep.subr.bf16.mxu0 %v8966_v38  ;;  %v9029_v38 = vld [vmem:[%s11633_s11 + $0x1d4] ss:$8 sps:$4 sm:$0xff]  }
 0x823   : > { %v3452_v21 = vpop.f32.mrf.mxu1 }
 0x825   : > { %v3454_v22 = vpop.f32.mrf.mxu1 }
 0x827   : > { %v3455_v23 = vpop.f32.mrf.mxu1 }
 0x829   : > { %v3456_v24 = vpop.f32.mrf.mxu1 }
 0x82a   : > { %v9017_v24 = vld [vmem:[%s11633_s11 + $0x1f4] ss:$8 sps:$4 sm:$0xff]  }
 0x82b   : > { %v3247_v26 = vpop.f32.mrf.mxu0 }
 0x82c   : > { %v3253_v27 = vadd.f32 %v3247_v26, %v10386_v53  ;;  %v8997_v53 = vld [vmem:[%s11633_s11 + $0x10] ss:$8 sps:$4 sm:$0xff]  }
 0x82d   : > { %v3249_v54 = vpop.f32.mrf.mxu0 }
 0x82e   : > { %v3458_v28 = vadd.f32 %v3452_v21, %v3253_v27  ;;  %v9009_v21 = vld [vmem:[%s11633_s11 + $0x80] ss:$8 sps:$4 sm:$0xff]  }
 0x82f   : > { %v3250_v29 = vpop.f32.mrf.mxu0 }
 0x830   : > { %v7959_v29 = vld [vmem:[%s11632_s10 + $0xc] sm:$0xf] }
 0x831   : > { %v3251_v30 = vpop.f32.mrf.mxu0 }
 0x833   : > { %v3498_v31 = vpop.f32.mrf.mxu0 }
 0x834   : > { %v3505_v34 = vpack.c.bf16 %v3498_v31, %v3498_v31  ;;  %v9014_v31 = vld [vmem:[%s11633_s11 + $0x174] ss:$8 sps:$4 sm:$0xff]  }
 0x835   : > { %v3500_v32 = vpop.f32.mrf.mxu0 }
 0x836   : > { %v3506_v33 = vpack.c.bf16 %v3500_v32, %v3500_v32  ;;  %v9015_v32 = vld [vmem:[%s11633_s11 + $0x1f0] ss:$8 sps:$4 sm:$0xff]  }
 0x837   : > { %v3502_v35 = vpop.f32.mrf.mxu0 }
 0x838   : > { %7872 = vmatprep.mubr.msk.bf16.mxu0 %vm1596_vm5, %v3506_v33 }
 0x839   : > { %v3503_v36 = vpop.f32.mrf.mxu0  ;;  %3656 = vmatmul.mubr.bf16.vlgmr.msra.gmra.mxu0 %v3505_v34  ;;  %v9023_v34 = vld [vmem:[%s11633_s11 + $0x1e4] ss:$8 sps:$4 sm:$0xff]  }
 0x83a   : > { %4036 = vmatprep.mubr.bf16.mxu0 %v9390_v12  ;;  %4005 = vmatpush1.bf16.msra.mxu0 %v8964_v37  ;;  %v9021_v36 = vld [vmem:[%s11633_s11 + $0x1e0] ss:$8 sps:$4 sm:$0xff]  }
 0x83b   : > { %4006 = vmatprep.subr.bf16.mxu0 %v8969_v39  ;;  %v7925_v39 = vld [vmem:[%s11632_s10 + $0x8] sm:$0xf] }
 0x83e   : > { %4007 = vmatpush1.bf16.msra.mxu0 %v8967_v41  ;;  %v9012_v41 = vld [vmem:[%s11633_s11 + $0x170] ss:$8 sps:$4 sm:$0xff]  }
 0x83f   : > { %4008 = vmatprep.subr.bf16.mxu0 %v8975_v42  ;;  %v9020_v42 = vld [vmem:[%s11633_s11 + $0x164] ss:$8 sps:$4 sm:$0xff]  }
 0x842   : > { %4009 = vmatpush1.bf16.msra.mxu0 %v8973_v44  ;;  %v9027_v44 = vld [vmem:[%s11633_s11 + $0x1d0] ss:$8 sps:$4 sm:$0xff]  }
 0x843   : > { %4010 = vmatprep.subr.bf16.mxu0 %v8981_v40  ;;  %v9018_v40 = vld [vmem:[%s11633_s11 + $0x160] ss:$8 sps:$4 sm:$0xff]  }
 0x846   : > { %4011 = vmatpush1.bf16.msra.mxu0 %v8979_v46  ;;  %v9026_v46 = vld [vmem:[%s11633_s11 + $0x154] ss:$8 sps:$4 sm:$0xff]  }
 0x847   : > { %4012 = vmatprep.subr.bf16.mxu0 %v8987_v47  ;;  %v9024_v47 = vld [vmem:[%s11633_s11 + $0x150] ss:$8 sps:$4 sm:$0xff]  }
 0x84a   : > { %4013 = vmatpush1.bf16.msra.mxu0 %v8985_v48  ;;  %v9032_v48 = vld [vmem:[%s11633_s11 + $0x144] ss:$8 sps:$4 sm:$0xff]  }
 0x84b   : > { %4014 = vmatprep.subr.bf16.mxu0 %v8993_v49  ;;  %v9030_v49 = vld [vmem:[%s11633_s11 + $0x140] ss:$8 sps:$4 sm:$0xff]  }
 0x84e   : > { %4015 = vmatpush1.bf16.msra.mxu0 %v8991_v50  ;;  %v9033_v50 = vld [vmem:[%s11633_s11 + $0x1c0] ss:$8 sps:$4 sm:$0xff]  }
 0x84f   : > { %4016 = vmatprep.subr.bf16.mxu0 %v8999_v52  ;;  %v9035_v52 = vld [vmem:[%s11633_s11 + $0x1c4] ss:$8 sps:$4 sm:$0xff]  }
 0x852   : > { %4017 = vmatpush1.bf16.msra.mxu0 %v8997_v53  ;;  %v9038_v53 = vld [vmem:[%s11633_s11 + $0x134] ss:$8 sps:$4 sm:$0xff]  }
 0x853   : > { %4018 = vmatprep.subr.bf16.mxu0 %v9005_v55  ;;  %v9036_v55 = vld [vmem:[%s11633_s11 + $0x130] ss:$8 sps:$4 sm:$0xff]  }
 0x856   : > { %4019 = vmatpush1.bf16.msra.mxu0 %v9003_v56  ;;  %v9039_v56 = vld [vmem:[%s11633_s11 + $0x1b0] ss:$8 sps:$4 sm:$0xff]  }
 0x857   : > { %8623 = vmatprep.subr.bf16.mxu0 %v9388_v0 }
 0x8f9   : > { %v3657_v57 = vpop.f32.mrf.mxu0 }
 0x8fa   : > { %v3663_v51 = vadd.f32 %v3657_v57, %v3458_v28  ;;  %v9041_v57 = vld [vmem:[%s11633_s11 + $0x1b4] ss:$8 sps:$4 sm:$0xff]  }
 0x8fb   : > { %v3659_v59 = vpop.f32.mrf.mxu0 }
 0x8fc   : > { %v3671_v60 = vadd.f32 %v7873_v58, %v3663_v51  ;;  %v9044_v58 = vld [vmem:[%s11633_s11 + $0x124] ss:$8 sps:$4 sm:$0xff]   ;;  %v9042_v51 = vld [vmem:[%s11633_s11 + $0x120] ss:$8 sps:$4 sm:$0xff]  }
 0x8fd   : > { %v3660_v61 = vpop.f32.mrf.mxu0  ;;  %v9047_v59 = vld [vmem:[%s11633_s11 + $0x1a4] ss:$8 sps:$4 sm:$0xff]  }
 0x8fe   : > { %v3672_v62 = vmax.f32 %v3671_v60, 0.0  ;;  %v9045_v60 = vld [vmem:[%s11633_s11 + $0x1a0] ss:$8 sps:$4 sm:$0xff]   ;;  %v9050_v61 = vld [vmem:[%s11633_s11 + $0x114] ss:$8 sps:$4 sm:$0xff]  }
 0x8ff   : > { %v3661_v63 = vpop.f32.mrf.mxu0 }
 0x900   : > { %v3673_v1 = vpack.c.bf16 %v3672_v62, %v3672_v62  ;;  %v9048_v62 = vld [vmem:[%s11633_s11 + $0x110] ss:$8 sps:$4 sm:$0xff]  }
 0x901   : > { %v9051_v63 = vld [vmem:[%s11633_s11 + $0x190] ss:$8 sps:$4 sm:$0xff]  }
 0x902   : > { %v10509_v2 = vsel %vm3679_vm9, %v3673_v1, 0  ;;  %v9053_v1 = vld [vmem:[%s11633_s11 + $0x194] ss:$8 sps:$4 sm:$0xff]  }
 0x903   : > { %8606 = vmatpush3.bf16.msra.mxu1 %v10509_v2 }
 0x904   : > { %8611 = vmatprep.subr.bf16.mxu1 %v9388_v0 }
 0x906   : > { %8608 = vmatmul.mubr.msk.bf16.vlgmr.msra.gmra.mxu1 %vm3675_vm10, %v3674_v4  ;;  %v9056_v4 = vld [vmem:[%s11633_s11 + $0x104] ss:$8 sps:$4 sm:$0xff]  }
 0x907   : > { %8612 = vmatpush3.bf16.msra.mxu1 %v10509_v2  ;;  %8613 = vmatprep.mubr.msk.bf16.mxu1 %vm9389_vm0, %v9388_v0 }
 0x908   : > { %3883 = vmatprep.subr.bf16.mxu1 %v8972_v5  ;;  %v9054_v5 = vld [vmem:[%s11633_s11 + $0x100] ss:$8 sps:$4 sm:$0xff]  }
 0x90e   : > { %8614 = vmatmul.mubr.msk.bf16.vlgmr.msra.gmra.mxu1 %vm3675_vm10, %v7875_v7  ;;  %v9059_v7 = vld [vmem:[%s11633_s11 + $0x184] ss:$8 sps:$4 sm:$0xff]  }
 0x90f   : > { %3884 = vmatpush1.bf16.msra.mxu1 %v8970_v8  ;;  %3915 = vmatprep.mubr.bf16.mxu1 %v9390_v12  ;;  %v9057_v8 = vld [vmem:[%s11633_s11 + $0x180] ss:$8 sps:$4 sm:$0xff]  }
 0x910   : > { %3885 = vmatprep.subr.bf16.mxu1 %v8978_v9 }
 0x913   : > { %3886 = vmatpush1.bf16.msra.mxu1 %v8976_v45 }
 0x914   : > { %3887 = vmatprep.subr.bf16.mxu1 %v8984_v10 }
 0x917   : > { %3888 = vmatpush1.bf16.msra.mxu1 %v8982_v3 }
 0x918   : > { %3889 = vmatprep.subr.bf16.mxu1 %v8990_v6 }
 0x91b   : > { %3890 = vmatpush1.bf16.msra.mxu1 %v8988_v11 }
 0x91c   : > { %3891 = vmatprep.subr.bf16.mxu1 %v8996_v13 }
 0x91f   : > { %3892 = vmatpush1.bf16.msra.mxu1 %v8994_v14 }
 0x920   : > { %3893 = vmatprep.subr.bf16.mxu1 %v9002_v15 }
 0x923   : > { %3894 = vmatpush1.bf16.msra.mxu1 %v9000_v16 }
 0x924   : > { %3895 = vmatprep.subr.bf16.mxu1 %v9008_v17 }
 0x927   : > { %3896 = vmatpush1.bf16.msra.mxu1 %v9006_v18 }
 0x928   : > { %3897 = vmatprep.subr.bf16.mxu1 %v9011_v20 }
 0x92b   : > { %3898 = vmatpush1.bf16.msra.mxu1 %v9009_v21 }
 0x92c   : > { %8617 = vmatprep.subr.bf16.mxu1 %v9388_v0 }
 0x9c6   : > { %v3717_v22 = vpop.f32.mrf.mxu1 }
 0x9c7   : > { %v3723_v23 = vpack.c.bf16 %v3717_v22, %v3717_v22 }
 0x9c8   : > { %v8609_v26 = vpop.f32.mrf.mxu1 }
 0x9c9   : > { %4037 = vmatmul.mubr.bf16.vlgmr.msra.gmra.mxu0 %v3723_v23  ;;  %v9062_v26 = vld [vmem:[%s11633_s11 + $0x274] ss:$8 sps:$4 sm:$0xff]  }
 0x9ca   : > { %8624 = vmatpush3.bf16.msra.mxu0 %v10509_v2  ;;  %v3720_v27 = vpop.f32.mrf.mxu1  ;;  %8625 = vmatprep.mubr.msk.bf16.mxu0 %vm9389_vm0, %v9388_v0 }
 0x9cb   : > { %4374 = vmatprep.subr.bf16.mxu0 %v9017_v24 }
 0x9cc   : > { %v8610_v54 = vpop.f32.mrf.mxu1 }
 0x9ce   : > { %v3779_v28 = vpop.f32.mrf.mxu1 }
 0x9cf   : > { %v3785_v30 = vpack.c.bf16 %v3779_v28, %v3779_v28 }
 0x9d0   : > { %v8615_v33 = vpop.f32.mrf.mxu1 }
 0x9d1   : > { %3916 = vmatmul.mubr.bf16.vlgmr.msra.gmra.mxu1 %v3785_v30  ;;  %8626 = vmatmul.mubr.msk.bf16.vlgmr.msra.gmra.mxu0 %vm3675_vm10, %v7959_v29  ;;  %v7993_v29 = vld [vmem:[%s11632_s10 + $0x10] sm:$0xf]  ;;  %v9071_v33 = vld [vmem:[%s11633_s11 + $0x244] ss:$8 sps:$4 sm:$0xff]  }
 0x9d2   : > { %8618 = vmatpush3.bf16.msra.mxu1 %v10509_v2  ;;  %v3782_v35 = vpop.f32.mrf.mxu1  ;;  %8619 = vmatprep.mubr.msk.bf16.mxu1 %vm9389_vm0, %v9388_v0  ;;  %v9060_v30 = vld [vmem:[%s11633_s11 + $0x270] ss:$8 sps:$4 sm:$0xff]  }
 0x9d3   : > { %4188 = vmatprep.subr.bf16.mxu1 %v9014_v31  ;;  %4375 = vmatpush1.bf16.msra.mxu0 %v9015_v32  ;;  %v9065_v31 = vld [vmem:[%s11633_s11 + $0x264] ss:$8 sps:$4 sm:$0xff]   ;;  %v9066_v32 = vld [vmem:[%s11633_s11 + $0x250] ss:$8 sps:$4 sm:$0xff]   ;;  %v9074_v35 = vld [vmem:[%s11633_s11 + $0x234] ss:$8 sps:$4 sm:$0xff]  }
 0x9d4   : > { %v8616_v37 = vpop.f32.mrf.mxu1  ;;  %4376 = vmatprep.subr.bf16.mxu0 %v9023_v34  ;;  %4406 = vmatprep.mubr.bf16.mxu0 %v9390_v12  ;;  %v9069_v34 = vld [vmem:[%s11633_s11 + $0x240] ss:$8 sps:$4 sm:$0xff]  }
 0x9d5   : > { %v9077_v37 = vld [vmem:[%s11633_s11 + $0x224] ss:$8 sps:$4 sm:$0xff]  }
 0x9d7   : > { %4377 = vmatpush1.bf16.msra.mxu0 %v9021_v36  ;;  %v9072_v36 = vld [vmem:[%s11633_s11 + $0x230] ss:$8 sps:$4 sm:$0xff]  }
 0x9d8   : > { %4378 = vmatprep.subr.bf16.mxu0 %v9029_v38  ;;  %v9075_v38 = vld [vmem:[%s11633_s11 + $0x220] ss:$8 sps:$4 sm:$0xff]  }
 0x9d9   : > { %8620 = vmatmul.mubr.msk.bf16.vlgmr.msra.gmra.mxu1 %vm3675_vm10, %v7925_v39  ;;  %v9080_v39 = vld [vmem:[%s11633_s11 + $0x214] ss:$8 sps:$4 sm:$0xff]  }
 0x9da   : > { %4189 = vmatpush1.bf16.msra.mxu1 %v9012_v41  ;;  %4220 = vmatprep.mubr.bf16.mxu1 %v9390_v12  ;;  %v9078_v41 = vld [vmem:[%s11633_s11 + $0x210] ss:$8 sps:$4 sm:$0xff]  }
 0x9db   : > { %4190 = vmatprep.subr.bf16.mxu1 %v9020_v42  ;;  %4379 = vmatpush1.bf16.msra.mxu0 %v9027_v44  ;;  %v9081_v42 = vld [vmem:[%s11633_s11 + $0x200] ss:$8 sps:$4 sm:$0xff]   ;;  %v9083_v44 = vld [vmem:[%s11633_s11 + $0x204] ss:$8 sps:$4 sm:$0xff]  }
 0x9dc   : > { %4380 = vmatprep.subr.bf16.mxu0 %v9035_v52 }
 0x9de   : > { %4191 = vmatpush1.bf16.msra.mxu1 %v9018_v40  ;;  %v9086_v40 = vld [vmem:[%s11636_s14 + $0x74] ss:$8 sps:$4 sm:$0xff]  }
 0x9df   : > { %4192 = vmatprep.subr.bf16.mxu1 %v9026_v46  ;;  %4381 = vmatpush1.bf16.msra.mxu0 %v9033_v50 }
 0x9e0   : > { %4382 = vmatprep.subr.bf16.mxu0 %v9041_v57 }
 0x9e2   : > { %4193 = vmatpush1.bf16.msra.mxu1 %v9024_v47 }
 0x9e3   : > { %4194 = vmatprep.subr.bf16.mxu1 %v9032_v48  ;;  %4383 = vmatpush1.bf16.msra.mxu0 %v9039_v56 }
 0x9e4   : > { %4384 = vmatprep.subr.bf16.mxu0 %v9047_v59 }
 0x9e6   : > { %4195 = vmatpush1.bf16.msra.mxu1 %v9030_v49 }
 0x9e7   : > { %4196 = vmatprep.subr.bf16.mxu1 %v9038_v53  ;;  %4385 = vmatpush1.bf16.msra.mxu0 %v9045_v60  ;;  %v9084_v60 = vld [vmem:[%s11636_s14 + $0x70] ss:$8 sps:$4 sm:$0xff]  }
 0x9e8   : > { %4386 = vmatprep.subr.bf16.mxu0 %v9053_v1 }
 0x9ea   : > { %4197 = vmatpush1.bf16.msra.mxu1 %v9036_v55 }
 0x9eb   : > { %4198 = vmatprep.subr.bf16.mxu1 %v9044_v58  ;;  %4387 = vmatpush1.bf16.msra.mxu0 %v9051_v63 }
 0x9ec   : > { %4388 = vmatprep.subr.bf16.mxu0 %v9059_v7 }
 0x9ee   : > { %4199 = vmatpush1.bf16.msra.mxu1 %v9042_v51 }
 0x9ef   : > { %4200 = vmatprep.subr.bf16.mxu1 %v9050_v61  ;;  %4389 = vmatpush1.bf16.msra.mxu0 %v9057_v8  ;;  %v9090_v8 = vld [vmem:[%s11636_s14 + $0x50] ss:$8 sps:$4 sm:$0xff]  }
 0x9f2   : > { %4201 = vmatpush1.bf16.msra.mxu1 %v9048_v62  ;;  %v9089_v62 = vld [vmem:[%s11636_s14 + $0x64] ss:$8 sps:$4 sm:$0xff]  }
 0x9f3   : > { %4202 = vmatprep.subr.bf16.mxu1 %v9056_v4  ;;  %v9087_v4 = vld [vmem:[%s11636_s14 + $0x60] ss:$8 sps:$4 sm:$0xff]  }
 0x9f6   : > { %4203 = vmatpush1.bf16.msra.mxu1 %v9054_v5  ;;  %v9092_v5 = vld [vmem:[%s11636_s14 + $0x54] ss:$8 sps:$4 sm:$0xff]  }
 0x9f7   : > { %8629 = vmatprep.subr.bf16.mxu1 %v9388_v0 }
 0xa89   : > { %v4038_v9 = vpop.f32.mrf.mxu0 }
 0xa8b   : > { %v4040_v45 = vpop.f32.mrf.mxu0 }
 0xa8d   : > { %v4042_v10 = vpop.f32.mrf.mxu0 }
 0xa8e   : > { %v9098_v10 = vld [vmem:[%s11636_s14 + $0x34] ss:$8 sps:$4 sm:$0xff]  }
 0xa8f   : > { %v4043_v3 = vpop.f32.mrf.mxu0 }
 0xa90   : > { %v9096_v3 = vld [vmem:[%s11636_s14 + $0x30] ss:$8 sps:$4 sm:$0xff]  }
 0xa91   : > { %v3917_v6 = vpop.f32.mrf.mxu1  ;;  %v4270_v11 = vpop.f32.mrf.mxu0 }
 0xa92   : > { %v4039_v13 = vadd.f32 %v4038_v9, %v3917_v6  ;;  %v4276_v14 = vpack.c.bf16 %v4270_v11, %v4270_v11  ;;  %v9095_v9 = vld [vmem:[%s11636_s14 + $0x44] ss:$8 sps:$4 sm:$0xff]   ;;  %v9099_v11 = vld [vmem:[%s11636_s14 + $0x20] ss:$8 sps:$4 sm:$0xff]  }
 0xa93   : > { %v3919_v15 = vpop.f32.mrf.mxu1  ;;  %v8627_v16 = vpop.f32.mrf.mxu0  ;;  %v9101_v6 = vld [vmem:[%s11636_s14 + $0x24] ss:$8 sps:$4 sm:$0xff]  }
 0xa94   : > { %v4041_v17 = vadd.f32 %v4040_v45, %v3919_v15  ;;  %4407 = vmatmul.mubr.bf16.vlgmr.msra.gmra.mxu0 %v4276_v14  ;;  %v9093_v45 = vld [vmem:[%s11636_s14 + $0x40] ss:$8 sps:$4 sm:$0xff]   ;;  %v9102_v14 = vld [vmem:[%s11636_s14 + $0x10] ss:$8 sps:$4 sm:$0xff]   ;;  %v9107_v15 = vld [vmem:[%s11636_s14 + $0x4] ss:$8 sps:$4 sm:$0xff]  }
 0xa95   : > { %v3921_v18 = vpop.f32.mrf.mxu1  ;;  %v4273_v20 = vpop.f32.mrf.mxu0  ;;  %4669 = vmatprep.mubr.bf16.mxu0 %v9390_v12  ;;  %v9105_v16 = vld [vmem:[%s11636_s14] ss:$8 sps:$4 sm:$0xff]  }
 0xa96   : > { %v9108_v18 = vld [vmem:[%s11636_s14 + $0xd0] ss:$8 sps:$4 sm:$0xff]   ;;  %v9113_v20 = vld [vmem:[%s11636_s14 + $0xc4] ss:$8 sps:$4 sm:$0xff]  }
 0xa97   : > { %v3922_v21 = vpop.f32.mrf.mxu1  ;;  %v8628_v22 = vpop.f32.mrf.mxu0 }
 0xa98   : > { %v9111_v21 = vld [vmem:[%s11636_s14 + $0xc0] ss:$8 sps:$4 sm:$0xff]   ;;  %v9116_v22 = vld [vmem:[%s11636_s14 + $0xb4] ss:$8 sps:$4 sm:$0xff]  }
 0xa99   : > { %v4084_v23 = vpop.f32.mrf.mxu1 }
 0xa9a   : > { %v4090_v24 = vpack.c.bf16 %v4084_v23, %v4084_v23  ;;  %v9114_v23 = vld [vmem:[%s11636_s14 + $0xb0] ss:$8 sps:$4 sm:$0xff]  }
 0xa9b   : > { %v8621_v27 = vpop.f32.mrf.mxu1 }
 0xa9c   : > { %4221 = vmatmul.mubr.bf16.vlgmr.msra.gmra.mxu1 %v4090_v24  ;;  %v9119_v24 = vld [vmem:[%s11636_s14 + $0xa4] ss:$8 sps:$4 sm:$0xff]   ;;  %v9122_v27 = vld [vmem:[%s11636_s14 + $0x94] ss:$8 sps:$4 sm:$0xff]  }
 0xa9d   : > { %8630 = vmatpush3.bf16.msra.mxu1 %v10509_v2  ;;  %v4087_v54 = vpop.f32.mrf.mxu1  ;;  %8631 = vmatprep.mubr.msk.bf16.mxu1 %vm9389_vm0, %v9388_v0  ;;  %v9063_v0 = vld [vmem:[%s11633_s11 + $0x260] ss:$8 sps:$4 sm:$0xff]   ;;  %v9068_v2 = vld [vmem:[%s11633_s11 + $0x254] ss:$8 sps:$4 sm:$0xff]  }
 0xa9e   : > { %4560 = vmatprep.subr.bf16.mxu1 %v9062_v26  ;;  %v9117_v26 = vld [vmem:[%s11636_s14 + $0xa0] ss:$8 sps:$4 sm:$0xff]   ;;  %v9120_v54 = vld [vmem:[%s11636_s14 + $0x90] ss:$8 sps:$4 sm:$0xff]  }
 0xa9f   : > { %v8622_v28 = vpop.f32.mrf.mxu1 }
 0xaa0   : > { %v9125_v28 = vld [vmem:[%s11636_s14 + $0x84] ss:$8 sps:$4 sm:$0xff]  }
 0xaa4   : > { %8632 = vmatmul.mubr.msk.bf16.vlgmr.msra.gmra.mxu1 %vm3675_vm10, %v7993_v29  ;;  %v9123_v29 = vld [vmem:[%s11636_s14 + $0x80] ss:$8 sps:$4 sm:$0xff]  }
 0xaa5   : > { %4561 = vmatpush1.bf16.msra.mxu1 %v9060_v30  ;;  %4592 = vmatprep.mubr.bf16.mxu1 %v9390_v12  ;;  %v4603_v30 = vld [vmem:[%s11634_s12] sm:$0x3] }
 0xaa6   : > { %4562 = vmatprep.subr.bf16.mxu1 %v9065_v31  ;;  %v4608_v31 = vrot.slane %v4603_v30, %v9634_v19 }
 0xaa9   : > { %4563 = vmatpush1.bf16.msra.mxu1 %v9063_v0 }
 0xaaa   : > { %4564 = vmatprep.subr.bf16.mxu1 %v9068_v2 }
 0xaad   : > { %4565 = vmatpush1.bf16.msra.mxu1 %v9066_v32  ;;  %v4612_v32 = vrot.slane %v4603_v30, %v9639_v25  ;;  %v9172_v30 = vld [vmem:[%s11636_s14 + $0x234] ss:$8 sps:$4 sm:$0xff]  }
 0xaae   : > { %4566 = vmatprep.subr.bf16.mxu1 %v9071_v33 }
 0xab1   : > { %4567 = vmatpush1.bf16.msra.mxu1 %v9069_v34 }
 0xab2   : > { %4568 = vmatprep.subr.bf16.mxu1 %v9074_v35 }
 0xab5   : > { %4569 = vmatpush1.bf16.msra.mxu1 %v9072_v36 }
 0xab6   : > { %4570 = vmatprep.subr.bf16.mxu1 %v9077_v37 }
 0xab9   : > { %4571 = vmatpush1.bf16.msra.mxu1 %v9075_v38 }
 0xaba   : > { %4572 = vmatprep.subr.bf16.mxu1 %v9080_v39 }
 0xabd   : > { %4573 = vmatpush1.bf16.msra.mxu1 %v9078_v41 }
 0xabe   : > { %4574 = vmatprep.subr.bf16.mxu1 %v9083_v44 }
 0xac1   : > { %4575 = vmatpush1.bf16.msra.mxu1 %v9081_v42 }
 0xac2   : > { %5124 = vmatprep.subr.bf16.mxu1 %v9086_v40 }
 0xb54   : > { %v4408_v46 = vpop.f32.mrf.mxu0 }
 0xb56   : > { %v4410_v47 = vpop.f32.mrf.mxu0 }
 0xb58   : > { %v4412_v48 = vpop.f32.mrf.mxu0 }
 0xb59   : > { %v9129_v48 = vld [vmem:[%s11636_s14 + $0x154] ss:$8 sps:$4 sm:$0xff]  }
 0xb5a   : > { %v4413_v49 = vpop.f32.mrf.mxu0 }
 0xb5b   : > { %v9127_v49 = vld [vmem:[%s11636_s14 + $0x150] ss:$8 sps:$4 sm:$0xff]  }
 0xb5c   : > { %v4222_v50 = vpop.f32.mrf.mxu1 }
 0xb5d   : > { %v4229_v52 = vadd.f32 %v4222_v50, %v4039_v13  ;;  %v9104_v13 = vld [vmem:[%s11636_s14 + $0x14] ss:$8 sps:$4 sm:$0xff]   ;;  %v9133_v50 = vld [vmem:[%s11636_s14 + $0x144] ss:$8 sps:$4 sm:$0xff]  }
 0xb5e   : > { %v4224_v53 = vpop.f32.mrf.mxu1 }
 0xb5f   : > { %v4230_v55 = vadd.f32 %v4224_v53, %v4041_v17  ;;  %v10747_v56 = vadd.f32 %v4408_v46, %v4229_v52  ;;  %v9110_v17 = vld [vmem:[%s11636_s14 + $0xd4] ss:$8 sps:$4 sm:$0xff]   ;;  %v9131_v52 = vld [vmem:[%s11636_s14 + $0x140] ss:$8 sps:$4 sm:$0xff]  }
 0xb60   : > { %v4226_v57 = vpop.f32.mrf.mxu1  ;;  %v9136_v53 = vld [vmem:[%s11636_s14 + $0x134] ss:$8 sps:$4 sm:$0xff]  }
 0xb61   : > { %v10749_v58 = vadd.f32 %v4410_v47, %v4230_v55  ;;  %v9126_v47 = vld [vmem:[%s11635_s13] sm:$0x7f]   ;;  %v9134_v55 = vld [vmem:[%s11636_s14 + $0x130] ss:$8 sps:$4 sm:$0xff]  }
 0xb62   : > { %v4227_v51 = vpop.f32.mrf.mxu1  ;;  %v9137_v57 = vld [vmem:[%s11636_s14 + $0x120] ss:$8 sps:$4 sm:$0xff]  }
 0xb63   : > { %v9140_v51 = vld [vmem:[%s11636_s14 + $0x110] ss:$8 sps:$4 sm:$0xff]  }
 0xb64   : > { %v4456_v59 = vpop.f32.mrf.mxu1 }
 0xb65   : > { %v4462_v61 = vpack.c.bf16 %v4456_v59, %v4456_v59  ;;  %v9145_v59 = vld [vmem:[%s11636_s14 + $0x104] ss:$8 sps:$4 sm:$0xff]  }
 0xb66   : > { %v8633_v63 = vpop.f32.mrf.mxu1 }
 0xb67   : > { %4593 = vmatmul.mubr.bf16.vlgmr.msra.gmra.mxu1 %v4462_v61  ;;  %v9148_v61 = vld [vmem:[%s11636_s14 + $0xf4] ss:$8 sps:$4 sm:$0xff]   ;;  %v9151_v63 = vld [vmem:[%s11636_s14 + $0xe4] ss:$8 sps:$4 sm:$0xff]  }
 0xb68   : > { %v4459_v1 = vpop.f32.mrf.mxu1  ;;  %5125 = vmatpush1.bf16.msra.mxu1 %v9084_v60  ;;  %v9143_v60 = vld [vmem:[%s11636_s14 + $0x100] ss:$8 sps:$4 sm:$0xff]  }
 0xb69   : > { %5126 = vmatprep.subr.bf16.mxu1 %v9089_v62  ;;  %v9146_v62 = vld [vmem:[%s11636_s14 + $0xf0] ss:$8 sps:$4 sm:$0xff]   ;;  %v9149_v1 = vld [vmem:[%s11636_s14 + $0xe0] ss:$8 sps:$4 sm:$0xff]  }
 0xb6a   : > { %v8634_v7 = vpop.f32.mrf.mxu1 }
 0xb6b   : > { %v9157_v7 = vld [vmem:[%s11636_s14 + $0x1a4] ss:$8 sps:$4 sm:$0xff]  }
 0xb6c   : > { %5127 = vmatpush1.bf16.msra.mxu1 %v9087_v4  ;;  %v9154_v4 = vld [vmem:[%s11636_s14 + $0x1b4] ss:$8 sps:$4 sm:$0xff]  }
 0xb6d   : > { %5128 = vmatprep.subr.bf16.mxu1 %v9092_v5  ;;  %v9152_v5 = vld [vmem:[%s11636_s14 + $0x1b0] ss:$8 sps:$4 sm:$0xff]  }
 0xb70   : > { %5129 = vmatpush1.bf16.msra.mxu1 %v9090_v8  ;;  %v9155_v8 = vld [vmem:[%s11636_s14 + $0x1a0] ss:$8 sps:$4 sm:$0xff]  }
 0xb71   : > { %5130 = vmatprep.subr.bf16.mxu1 %v9095_v9  ;;  %v9160_v9 = vld [vmem:[%s11636_s14 + $0x194] ss:$8 sps:$4 sm:$0xff]  }
 0xb74   : > { %5131 = vmatpush1.bf16.msra.mxu1 %v9093_v45  ;;  %v9158_v45 = vld [vmem:[%s11636_s14 + $0x190] ss:$8 sps:$4 sm:$0xff]  }
 0xb75   : > { %5132 = vmatprep.subr.bf16.mxu1 %v9098_v10  ;;  %v9163_v10 = vld [vmem:[%s11636_s14 + $0x184] ss:$8 sps:$4 sm:$0xff]  }
 0xb78   : > { %5133 = vmatpush1.bf16.msra.mxu1 %v9096_v3  ;;  %v9161_v3 = vld [vmem:[%s11636_s14 + $0x180] ss:$8 sps:$4 sm:$0xff]  }
 0xb79   : > { %5134 = vmatprep.subr.bf16.mxu1 %v9101_v6  ;;  %v9166_v6 = vld [vmem:[%s11636_s14 + $0x174] ss:$8 sps:$4 sm:$0xff]  }
 0xb7c   : > { %5135 = vmatpush1.bf16.msra.mxu1 %v9099_v11  ;;  %v9164_v11 = vld [vmem:[%s11636_s14 + $0x170] ss:$8 sps:$4 sm:$0xff]  }
 0xb7d   : > { %5136 = vmatprep.subr.bf16.mxu1 %v9104_v13  ;;  %v9169_v13 = vld [vmem:[%s11636_s14 + $0x164] ss:$8 sps:$4 sm:$0xff]  }
 0xb80   : > { %5137 = vmatpush1.bf16.msra.mxu1 %v9102_v14  ;;  %v9167_v14 = vld [vmem:[%s11636_s14 + $0x160] ss:$8 sps:$4 sm:$0xff]  }
 0xb81   : > { %5138 = vmatprep.subr.bf16.mxu1 %v9107_v15 }
 0xb84   : > { %5139 = vmatpush1.bf16.msra.mxu1 %v9105_v16 }
 0xb85   : > { %5144 = vmatprep.subr.bf16.mxu1 %v9110_v17 }
 0xb88   : > { %5145 = vmatpush2.bf16.msra.mxu1 %v9108_v18 }
 0xb89   : > { %5146 = vmatprep.subr.bf16.mxu1 %v9113_v20 }
 0xb8c   : > { %5147 = vmatpush2.bf16.msra.mxu1 %v9111_v21 }
 0xb8d   : > { %5148 = vmatprep.subr.bf16.mxu1 %v9116_v22 }
 0xb90   : > { %5149 = vmatpush2.bf16.msra.mxu1 %v9114_v23  ;;  %v9216_v23 = vld [vmem:[%s11636_s14 + $0x314] ss:$8 sps:$4 sm:$0xff]  }
 0xb91   : > { %5150 = vmatprep.subr.bf16.mxu1 %v9119_v24 }
 0xb94   : > { %5151 = vmatpush2.bf16.msra.mxu1 %v9117_v26 }
 0xb95   : > { %5152 = vmatprep.subr.bf16.mxu1 %v9122_v27 }
 0xb98   : > { %5153 = vmatpush2.bf16.msra.mxu1 %v9120_v54  ;;  %v9174_v54 = vld [vmem:[%s11635_s13 + $0x18] sm:$0x7f]  }
 0xb99   : > { %5154 = vmatprep.subr.bf16.mxu1 %v9125_v28 }
 0xb9c   : > { %5155 = vmatpush2.bf16.msra.mxu1 %v9123_v29 }
 0xc27   : > { %v4594_v0 = vpop.f32.mrf.mxu1 }
 0xc28   : > { %v4601_v2 = vadd.f32 %v4594_v0, %v10747_v56  ;;  %v9139_v56 = vld [vmem:[%s11636_s14 + $0x124] ss:$8 sps:$4 sm:$0xff]  }
 0xc29   : > { %v4596_v33 = vpop.f32.mrf.mxu1  ;;  %v9219_v0 = vld [vmem:[%s11636_s14 + $0x304] ss:$8 sps:$4 sm:$0xff]  }
 0xc2a   : > { %v4615_v34 = vadd.f32 %v4608_v31, %v4601_v2  ;;  %v4602_v35 = vadd.f32 %v4596_v33, %v10749_v58  ;;  %v9142_v58 = vld [vmem:[%s11636_s14 + $0x114] ss:$8 sps:$4 sm:$0xff]   ;;  %v9214_v31 = vld [vmem:[%s11636_s14 + $0x310] ss:$8 sps:$4 sm:$0xff]   ;;  %v9217_v2 = vld [vmem:[%s11636_s14 + $0x300] ss:$8 sps:$4 sm:$0xff]  }
 0xc2b   : > { %v4598_v36 = vpop.f32.mrf.mxu1  ;;  %v9173_v33 = vld [vmem:[%s11635_s13 + $0x10] sm:$0x7f]  }
 0xc2c   : > { %v4617_v37 = vmax.f32 %v4615_v34, 0.0  ;;  %v4616_v38 = vadd.f32 %v4612_v32, %v4602_v35  ;;  %v9222_v32 = vld [vmem:[%s11636_s14 + $0x2f4] ss:$8 sps:$4 sm:$0xff]   ;;  %v9170_v34 = vld [vmem:[%s11636_s14 + $0x230] ss:$8 sps:$4 sm:$0xff]  }
 0xc2d   : > { %v4599_v39 = vpop.f32.mrf.mxu1  ;;  %v9177_v35 = vld [vmem:[%s11636_s14 + $0x224] ss:$8 sps:$4 sm:$0xff]   ;;  %v9220_v36 = vld [vmem:[%s11636_s14 + $0x2f0] ss:$8 sps:$4 sm:$0xff]  }
 0xc2e   : > { %v4618_v41 = vmax.f32 %v4616_v38, 0.0  ;;  %v4619_v42 = vpack.c.bf16 %v4617_v37, %v4617_v37  ;;  %v9225_v37 = vld [vmem:[%s11636_s14 + $0x2e4] ss:$8 sps:$4 sm:$0xff]   ;;  %v9175_v38 = vld [vmem:[%s11636_s14 + $0x220] ss:$8 sps:$4 sm:$0xff]  }
 0xc2f   : > { %v9180_v39 = vld [vmem:[%s11636_s14 + $0x214] ss:$8 sps:$4 sm:$0xff]  }
 0xc30   : > { %v4620_v44 = vpack.c.bf16 %v4618_v41, %v4618_v41  ;;  %v10843_v46 = vand.u32 %v4619_v42, %v10179_v43  ;;  %v9223_v41 = vld [vmem:[%s11636_s14 + $0x2e0] ss:$8 sps:$4 sm:$0xff]   ;;  %v9228_v42 = vld [vmem:[%s11636_s14 + $0x2d4] ss:$8 sps:$4 sm:$0xff]  }
 0xc32   : > { %v10840_v40 = vand.u32 %v4620_v44, %v10179_v43  ;;  %v9130_v43 = vld [vmem:[%s11635_s13 + $0x8] sm:$0x7f]   ;;  %v9178_v44 = vld [vmem:[%s11636_s14 + $0x210] ss:$8 sps:$4 sm:$0xff]  }
 0xc34   : > { %4651 = vmatprep.subr.bf16.mxu0 %v10840_v40  ;;  %5467 = vmatprep.subr.bf16.mxu1 %v10840_v40 }
 0xc35   : > { %4652 = vmatpush1.bf16.msra.mxu0 %v10843_v46 }
 0xc36   : > { %4735 = vmatprep.subr.bf16.mxu0 %v10840_v40 }
 0xc38   : > { %8028 = vmatmul.mubr.msk.bf16.vlgmr.msra.gmra.mxu0 %vm2633_vm8, %v9126_v47  ;;  %v9183_v47 = vld [vmem:[%s11636_s14 + $0x204] ss:$8 sps:$4 sm:$0xff]  }
 0xc39   : > { %4736 = vmatpush1.bf16.msra.mxu0 %v10843_v46  ;;  %4753 = vmatprep.mubr.bf16.mxu0 %v9390_v12 }
 0xc3a   : > { %4938 = vmatprep.subr.bf16.mxu0 %v9129_v48  ;;  %v9226_v48 = vld [vmem:[%s11636_s14 + $0x2d0] ss:$8 sps:$4 sm:$0xff]  }
 0xc40   : > { %8032 = vmatmul.mubr.msk.bf16.vlgmr.msra.gmra.mxu0 %vm2633_vm8, %v9130_v43  ;;  %v9231_v43 = vld [vmem:[%s11636_s14 + $0x2c4] ss:$8 sps:$4 sm:$0xff]  }
 0xc41   : > { %4939 = vmatpush1.bf16.msra.mxu0 %v9127_v49  ;;  %v9181_v49 = vld [vmem:[%s11636_s14 + $0x200] ss:$8 sps:$4 sm:$0xff]  }
 0xc42   : > { %4940 = vmatprep.subr.bf16.mxu0 %v9133_v50  ;;  %v9186_v50 = vld [vmem:[%s11636_s14 + $0x1f4] ss:$8 sps:$4 sm:$0xff]  }
 0xc45   : > { %4941 = vmatpush1.bf16.msra.mxu0 %v9131_v52  ;;  %v9229_v52 = vld [vmem:[%s11636_s14 + $0x2c0] ss:$8 sps:$4 sm:$0xff]  }
 0xc46   : > { %4942 = vmatprep.subr.bf16.mxu0 %v9136_v53  ;;  %v9234_v53 = vld [vmem:[%s11636_s14 + $0x2b4] ss:$8 sps:$4 sm:$0xff]  }
 0xc49   : > { %4943 = vmatpush1.bf16.msra.mxu0 %v9134_v55  ;;  %v9184_v55 = vld [vmem:[%s11636_s14 + $0x1f0] ss:$8 sps:$4 sm:$0xff]  }
 0xc4a   : > { %4944 = vmatprep.subr.bf16.mxu0 %v9139_v56  ;;  %v9189_v56 = vld [vmem:[%s11636_s14 + $0x1e4] ss:$8 sps:$4 sm:$0xff]  }
 0xc4d   : > { %4945 = vmatpush1.bf16.msra.mxu0 %v9137_v57  ;;  %v9232_v57 = vld [vmem:[%s11636_s14 + $0x2b0] ss:$8 sps:$4 sm:$0xff]  }
 0xc4e   : > { %4946 = vmatprep.subr.bf16.mxu0 %v9142_v58  ;;  %v9187_v58 = vld [vmem:[%s11636_s14 + $0x1e0] ss:$8 sps:$4 sm:$0xff]  }
 0xc51   : > { %4947 = vmatpush1.bf16.msra.mxu0 %v9140_v51  ;;  %v9192_v51 = vld [vmem:[%s11636_s14 + $0x1d4] ss:$8 sps:$4 sm:$0xff]  }
 0xc52   : > { %4948 = vmatprep.subr.bf16.mxu0 %v9145_v59  ;;  %v9190_v59 = vld [vmem:[%s11636_s14 + $0x1d0] ss:$8 sps:$4 sm:$0xff]  }
 0xc55   : > { %4949 = vmatpush1.bf16.msra.mxu0 %v9143_v60  ;;  %v9195_v60 = vld [vmem:[%s11636_s14 + $0x1c4] ss:$8 sps:$4 sm:$0xff]  }
 0xc56   : > { %4950 = vmatprep.subr.bf16.mxu0 %v9148_v61  ;;  %v9193_v61 = vld [vmem:[%s11636_s14 + $0x1c0] ss:$8 sps:$4 sm:$0xff]  }
 0xc59   : > { %4951 = vmatpush1.bf16.msra.mxu0 %v9146_v62  ;;  %v9198_v62 = vld [vmem:[%s11636_s14 + $0x294] ss:$8 sps:$4 sm:$0xff]  }
 0xc5a   : > { %4952 = vmatprep.subr.bf16.mxu0 %v9151_v63  ;;  %v9196_v63 = vld [vmem:[%s11636_s14 + $0x290] ss:$8 sps:$4 sm:$0xff]  }
 0xc5d   : > { %4953 = vmatpush1.bf16.msra.mxu0 %v9149_v1  ;;  %v9201_v1 = vld [vmem:[%s11636_s14 + $0x284] ss:$8 sps:$4 sm:$0xff]  }
 0xc5e   : > { %4958 = vmatprep.subr.bf16.mxu0 %v9154_v4  ;;  %v9199_v4 = vld [vmem:[%s11636_s14 + $0x280] ss:$8 sps:$4 sm:$0xff]  }
 0xc61   : > { %4959 = vmatpush2.bf16.msra.mxu0 %v9152_v5  ;;  %v9204_v5 = vld [vmem:[%s11636_s14 + $0x274] ss:$8 sps:$4 sm:$0xff]  }
 0xc62   : > { %4960 = vmatprep.subr.bf16.mxu0 %v9157_v7  ;;  %v9202_v7 = vld [vmem:[%s11636_s14 + $0x270] ss:$8 sps:$4 sm:$0xff]  }
 0xc65   : > { %4961 = vmatpush2.bf16.msra.mxu0 %v9155_v8  ;;  %v9207_v8 = vld [vmem:[%s11636_s14 + $0x264] ss:$8 sps:$4 sm:$0xff]  }
 0xc66   : > { %4962 = vmatprep.subr.bf16.mxu0 %v9160_v9  ;;  %v9205_v9 = vld [vmem:[%s11636_s14 + $0x260] ss:$8 sps:$4 sm:$0xff]  }
 0xc69   : > { %4963 = vmatpush2.bf16.msra.mxu0 %v9158_v45  ;;  %v9210_v45 = vld [vmem:[%s11636_s14 + $0x254] ss:$8 sps:$4 sm:$0xff]  }
 0xc6a   : > { %4964 = vmatprep.subr.bf16.mxu0 %v9163_v10  ;;  %v9208_v10 = vld [vmem:[%s11636_s14 + $0x250] ss:$8 sps:$4 sm:$0xff]  }
 0xc6d   : > { %4965 = vmatpush2.bf16.msra.mxu0 %v9161_v3  ;;  %v9213_v3 = vld [vmem:[%s11636_s14 + $0x244] ss:$8 sps:$4 sm:$0xff]  }
 0xc6e   : > { %4966 = vmatprep.subr.bf16.mxu0 %v9166_v6  ;;  %v9237_v6 = vld [vmem:[%s11636_s14 + $0x2a4] ss:$8 sps:$4 sm:$0xff]  }
 0xc71   : > { %4967 = vmatpush2.bf16.msra.mxu0 %v9164_v11  ;;  %v9235_v11 = vld [vmem:[%s11636_s14 + $0x2a0] ss:$8 sps:$4 sm:$0xff]  }
 0xc72   : > { %4968 = vmatprep.subr.bf16.mxu0 %v9169_v13  ;;  %v9211_v13 = vld [vmem:[%s11636_s14 + $0x240] ss:$8 sps:$4 sm:$0xff]  }
 0xc75   : > { %4969 = vmatpush2.bf16.msra.mxu0 %v9167_v14  ;;  %v9240_v14 = vld [vmem:[%s11636_s14 + $0x374] ss:$8 sps:$4 sm:$0xff]  }
 0xc76   : > { %5192 = vmatprep.subr.bf16.mxu0 %v10840_v40 }
 0xcf8   : > { %v4671_v15 = vpop.f32.mrf.mxu0 }
 0xcfa   : > { %v4673_v16 = vpop.f32.mrf.mxu0 }
 0xcfc   : > { %v4675_v17 = vpop.f32.mrf.mxu0 }
 0xcfd   : > { %v4680_v21 = vpack.c.bf16 %v4675_v17, %v4671_v15  ;;  %v9238_v15 = vld [vmem:[%s11636_s14 + $0x370] ss:$8 sps:$4 sm:$0xff]   ;;  %v9241_v17 = vld [vmem:[%s11636_s14 + $0x360] ss:$8 sps:$4 sm:$0xff]  }
 0xcfe   : > { %v4677_v18 = vpop.f32.mrf.mxu0 }
 0xcff   : > { %v4681_v20 = vpack.c.bf16 %v4677_v18, %v4673_v16  ;;  %v9243_v16 = vld [vmem:[%s11636_s14 + $0x364] ss:$8 sps:$4 sm:$0xff]   ;;  %v9246_v18 = vld [vmem:[%s11636_s14 + $0x354] ss:$8 sps:$4 sm:$0xff]  }
 0xd00   : > { %v4755_v22 = vpop.f32.mrf.mxu0 }
 0xd01   : > { %8118 = vmatprep.mubr.msk.bf16.mxu1 %vm1596_vm5, %v4681_v20  ;;  %v9244_v20 = vld [vmem:[%s11636_s14 + $0x350] ss:$8 sps:$4 sm:$0xff]  }
 0xd02   : > { %v4757_v24 = vpop.f32.mrf.mxu0  ;;  %5157 = vmatmul.mubr.bf16.vlgmr.msra.gmra.mxu1 %v4680_v21  ;;  %v9247_v21 = vld [vmem:[%s11636_s14 + $0x340] ss:$8 sps:$4 sm:$0xff]  }
 0xd03   : > { %5468 = vmatpush1.bf16.msra.mxu1 %v10843_v46  ;;  %5485 = vmatprep.mubr.bf16.mxu1 %v9390_v12 }
 0xd04   : > { %v4759_v26 = vpop.f32.mrf.mxu0  ;;  %5670 = vmatprep.subr.bf16.mxu1 %v9216_v23  ;;  %v9250_v23 = vld [vmem:[%s11636_s14 + $0x330] ss:$8 sps:$4 sm:$0xff]  }
 0xd05   : > { %v4764_v29 = vpack.c.bf16 %v4759_v26, %v4755_v22  ;;  %v9252_v22 = vld [vmem:[%s11636_s14 + $0x334] ss:$8 sps:$4 sm:$0xff]   ;;  %v9255_v26 = vld [vmem:[%s11636_s14 + $0x324] ss:$8 sps:$4 sm:$0xff]  }
 0xd06   : > { %v4761_v27 = vpop.f32.mrf.mxu0 }
 0xd07   : > { %v4765_v28 = vpack.c.bf16 %v4761_v27, %v4757_v24  ;;  %v9253_v24 = vld [vmem:[%s11636_s14 + $0x320] ss:$8 sps:$4 sm:$0xff]  }
 0xd09   : > { %8089 = vmatprep.mubr.msk.bf16.mxu0 %vm1596_vm5, %v4765_v28 }
 0xd0a   : > { %4971 = vmatmul.mubr.bf16.vlgmr.msra.gmra.mxu0 %v4764_v29  ;;  %8183 = vmatmul.mubr.msk.bf16.vlgmr.msra.gmra.mxu1 %vm2633_vm8, %v9174_v54 }
 0xd0b   : > { %5193 = vmatpush1.bf16.msra.mxu0 %v10843_v46  ;;  %5210 = vmatprep.mubr.bf16.mxu0 %v9390_v12 }
 0xd0c   : > { %5395 = vmatprep.subr.bf16.mxu0 %v9172_v30  ;;  %5671 = vmatpush1.bf16.msra.mxu1 %v9214_v31 }
 0xd0d   : > { %5672 = vmatprep.subr.bf16.mxu1 %v9219_v0 }
 0xd10   : > { %5673 = vmatpush1.bf16.msra.mxu1 %v9217_v2 }
 0xd11   : > { %5674 = vmatprep.subr.bf16.mxu1 %v9222_v32 }
 0xd12   : > { %8122 = vmatmul.mubr.msk.bf16.vlgmr.msra.gmra.mxu0 %vm2633_vm8, %v9173_v33 }
 0xd13   : > { %5396 = vmatpush1.bf16.msra.mxu0 %v9170_v34 }
 0xd14   : > { %5397 = vmatprep.subr.bf16.mxu0 %v9177_v35  ;;  %5675 = vmatpush1.bf16.msra.mxu1 %v9220_v36 }
 0xd15   : > { %5676 = vmatprep.subr.bf16.mxu1 %v9225_v37 }
 0xd17   : > { %5398 = vmatpush1.bf16.msra.mxu0 %v9175_v38 }
 0xd18   : > { %5399 = vmatprep.subr.bf16.mxu0 %v9180_v39  ;;  %5677 = vmatpush1.bf16.msra.mxu1 %v9223_v41 }
 0xd19   : > { %5678 = vmatprep.subr.bf16.mxu1 %v9228_v42 }
 0xd1b   : > { %5400 = vmatpush1.bf16.msra.mxu0 %v9178_v44 }
 0xd1c   : > { %5401 = vmatprep.subr.bf16.mxu0 %v9183_v47  ;;  %5679 = vmatpush1.bf16.msra.mxu1 %v9226_v48 }
 0xd1d   : > { %5680 = vmatprep.subr.bf16.mxu1 %v9231_v43 }
 0xd1f   : > { %5402 = vmatpush1.bf16.msra.mxu0 %v9181_v49 }
 0xd20   : > { %5403 = vmatprep.subr.bf16.mxu0 %v9186_v50  ;;  %5681 = vmatpush1.bf16.msra.mxu1 %v9229_v52  ;;  %v9259_v52 = vld [vmem:[%s11636_s14 + $0x3f4] ss:$8 sps:$4 sm:$0xff]  }
 0xd21   : > { %5682 = vmatprep.subr.bf16.mxu1 %v9234_v53  ;;  %v9256_v53 = vld [vmem:[%s11635_s13 + $0x20] sm:$0x7f]  }
 0xd23   : > { %5404 = vmatpush1.bf16.msra.mxu0 %v9184_v55  ;;  %v9257_v55 = vld [vmem:[%s11636_s14 + $0x3f0] ss:$8 sps:$4 sm:$0xff]  }
 0xd24   : > { %5405 = vmatprep.subr.bf16.mxu0 %v9189_v56  ;;  %5683 = vmatpush1.bf16.msra.mxu1 %v9232_v57  ;;  %v9262_v56 = vld [vmem:[%s11636_s14 + $0x3e4] ss:$8 sps:$4 sm:$0xff]   ;;  %v9265_v57 = vld [vmem:[%s11636_s14 + $0x3d4] ss:$8 sps:$4 sm:$0xff]  }
 0xd25   : > { %5684 = vmatprep.subr.bf16.mxu1 %v9237_v6  ;;  %v9287_v6 = vld [vmem:[%s11636_s14 + $0x430] ss:$8 sps:$4 sm:$0xff]  }
 0xd27   : > { %5406 = vmatpush1.bf16.msra.mxu0 %v9187_v58  ;;  %v9263_v58 = vld [vmem:[%s11636_s14 + $0x3d0] ss:$8 sps:$4 sm:$0xff]  }
 0xd28   : > { %5407 = vmatprep.subr.bf16.mxu0 %v9192_v51  ;;  %5685 = vmatpush1.bf16.msra.mxu1 %v9235_v11  ;;  %v9268_v51 = vld [vmem:[%s11636_s14 + $0x3c4] ss:$8 sps:$4 sm:$0xff]  }
 0xd29   : > { %5690 = vmatprep.subr.bf16.mxu1 %v9240_v14  ;;  %v9292_v11 = vld [vmem:[%s11636_s14 + $0x424] ss:$8 sps:$4 sm:$0xff]   ;;  %v9295_v14 = vld [vmem:[%s11636_s14 + $0x414] ss:$8 sps:$4 sm:$0xff]  }
 0xd2b   : > { %5408 = vmatpush1.bf16.msra.mxu0 %v9190_v59  ;;  %v9266_v59 = vld [vmem:[%s11636_s14 + $0x3c0] ss:$8 sps:$4 sm:$0xff]  }
 0xd2c   : > { %5409 = vmatprep.subr.bf16.mxu0 %v9195_v60  ;;  %5691 = vmatpush2.bf16.msra.mxu1 %v9238_v15  ;;  %v9271_v60 = vld [vmem:[%s11636_s14 + $0x3b4] ss:$8 sps:$4 sm:$0xff]   ;;  %v9293_v15 = vld [vmem:[%s11636_s14 + $0x410] ss:$8 sps:$4 sm:$0xff]  }
 0xd2d   : > { %5692 = vmatprep.subr.bf16.mxu1 %v9243_v16  ;;  %v9298_v16 = vld [vmem:[%s11636_s14 + $0x404] ss:$8 sps:$4 sm:$0xff]  }
 0xd2f   : > { %5410 = vmatpush1.bf16.msra.mxu0 %v9193_v61  ;;  %v9269_v61 = vld [vmem:[%s11636_s14 + $0x3b0] ss:$8 sps:$4 sm:$0xff]  }
 0xd30   : > { %5415 = vmatprep.subr.bf16.mxu0 %v9198_v62  ;;  %5693 = vmatpush2.bf16.msra.mxu1 %v9241_v17  ;;  %v9274_v62 = vld [vmem:[%s11636_s14 + $0x3a4] ss:$8 sps:$4 sm:$0xff]   ;;  %v9296_v17 = vld [vmem:[%s11636_s14 + $0x400] ss:$8 sps:$4 sm:$0xff]  }
 0xd31   : > { %5694 = vmatprep.subr.bf16.mxu1 %v9246_v18 }
 0xd33   : > { %5416 = vmatpush2.bf16.msra.mxu0 %v9196_v63  ;;  %v9272_v63 = vld [vmem:[%s11636_s14 + $0x3a0] ss:$8 sps:$4 sm:$0xff]  }
 0xd34   : > { %5417 = vmatprep.subr.bf16.mxu0 %v9201_v1  ;;  %5695 = vmatpush2.bf16.msra.mxu1 %v9244_v20  ;;  %v9277_v1 = vld [vmem:[%s11636_s14 + $0x394] ss:$8 sps:$4 sm:$0xff]  }
 0xd37   : > { %5418 = vmatpush2.bf16.msra.mxu0 %v9199_v4  ;;  %v9275_v4 = vld [vmem:[%s11636_s14 + $0x390] ss:$8 sps:$4 sm:$0xff]  }
 0xd38   : > { %5419 = vmatprep.subr.bf16.mxu0 %v9204_v5  ;;  %v9280_v5 = vld [vmem:[%s11636_s14 + $0x384] ss:$8 sps:$4 sm:$0xff]  }
 0xd3b   : > { %5420 = vmatpush2.bf16.msra.mxu0 %v9202_v7  ;;  %v9278_v7 = vld [vmem:[%s11636_s14 + $0x380] ss:$8 sps:$4 sm:$0xff]  }
 0xd3c   : > { %5421 = vmatprep.subr.bf16.mxu0 %v9207_v8  ;;  %v9283_v8 = vld [vmem:[%s11636_s14 + $0x454] ss:$8 sps:$4 sm:$0xff]  }
 0xd3f   : > { %5422 = vmatpush2.bf16.msra.mxu0 %v9205_v9  ;;  %v9281_v9 = vld [vmem:[%s11636_s14 + $0x450] ss:$8 sps:$4 sm:$0xff]  }
 0xd40   : > { %5423 = vmatprep.subr.bf16.mxu0 %v9210_v45  ;;  %v9286_v45 = vld [vmem:[%s11636_s14 + $0x444] ss:$8 sps:$4 sm:$0xff]  }
 0xd43   : > { %5424 = vmatpush2.bf16.msra.mxu0 %v9208_v10  ;;  %v9284_v10 = vld [vmem:[%s11636_s14 + $0x440] ss:$8 sps:$4 sm:$0xff]  }
 0xd44   : > { %5425 = vmatprep.subr.bf16.mxu0 %v9213_v3  ;;  %v9289_v3 = vld [vmem:[%s11636_s14 + $0x434] ss:$8 sps:$4 sm:$0xff]  }
 0xd47   : > { %5426 = vmatpush2.bf16.msra.mxu0 %v9211_v13  ;;  %v9290_v13 = vld [vmem:[%s11636_s14 + $0x420] ss:$8 sps:$4 sm:$0xff]  }
 0xd48   : > { %5742 = vmatprep.subr.bf16.mxu0 %v10840_v40  ;;  %v9249_v40 = vld [vmem:[%s11636_s14 + $0x344] ss:$8 sps:$4 sm:$0xff]  }
 0xd49   : > { %5696 = vmatprep.subr.bf16.mxu1 %v9249_v40 }
 0xd4a   : > { %5697 = vmatpush2.bf16.msra.mxu1 %v9247_v21 }
 0xd4b   : > { %5698 = vmatprep.subr.bf16.mxu1 %v9252_v22 }
 0xd4e   : > { %5699 = vmatpush2.bf16.msra.mxu1 %v9250_v23 }
 0xd4f   : > { %5700 = vmatprep.subr.bf16.mxu1 %v9255_v26 }
 0xd52   : > { %5701 = vmatpush2.bf16.msra.mxu1 %v9253_v24 }
 0xdc2   : > { %v5158_v27 = vpop.f32.mrf.mxu1 }
 0xdc4   : > { %v5160_v54 = vpop.f32.mrf.mxu1 }
 0xdc6   : > { %v5162_v28 = vpop.f32.mrf.mxu1 }
 0xdc8   : > { %v5164_v29 = vpop.f32.mrf.mxu1 }
 0xdca   : > { %v4972_v30 = vpop.f32.mrf.mxu0  ;;  %v5487_v31 = vpop.f32.mrf.mxu1 }
 0xdcb   : > { %v11127_v0 = vadd.f32 %v5158_v27, %v4972_v30 }
 0xdcc   : > { %v4974_v2 = vpop.f32.mrf.mxu0  ;;  %v5489_v32 = vpop.f32.mrf.mxu1 }
 0xdcd   : > { %v11129_v33 = vadd.f32 %v5160_v54, %v4974_v2 }
 0xdce   : > { %v4976_v34 = vpop.f32.mrf.mxu0  ;;  %v5491_v35 = vpop.f32.mrf.mxu1 }
 0xdcf   : > { %v11131_v36 = vadd.f32 %v5162_v28, %v4976_v34  ;;  %v5496_v38 = vpack.c.bf16 %v5491_v35, %v5487_v31 }
 0xdd0   : > { %v4978_v37 = vpop.f32.mrf.mxu0  ;;  %v5493_v39 = vpop.f32.mrf.mxu1 }
 0xdd1   : > { %v11133_v41 = vadd.f32 %v5164_v29, %v4978_v37  ;;  %v5497_v42 = vpack.c.bf16 %v5493_v39, %v5489_v32 }
 0xdd2   : > { %v5212_v44 = vpop.f32.mrf.mxu0 }
 0xdd3   : > { %8240 = vmatprep.mubr.msk.bf16.mxu1 %vm1596_vm5, %v5497_v42 }
 0xdd4   : > { %v5214_v47 = vpop.f32.mrf.mxu0  ;;  %5703 = vmatmul.mubr.bf16.vlgmr.msra.gmra.mxu1 %v5496_v38 }
 0xdd5   : > { %6178 = vmatprep.mubr.bf16.mxu1 %v9390_v12 }
 0xdd6   : > { %v5216_v48 = vpop.f32.mrf.mxu0 }
 0xdd7   : > { %v5221_v50 = vpack.c.bf16 %v5216_v48, %v5212_v44 }
 0xdd8   : > { %v5218_v43 = vpop.f32.mrf.mxu0 }
 0xdd9   : > { %v5222_v49 = vpack.c.bf16 %v5218_v43, %v5214_v47 }
 0xddb   : > { %8179 = vmatprep.mubr.msk.bf16.mxu0 %vm1596_vm5, %v5222_v49 }
 0xddc   : > { %5428 = vmatmul.mubr.bf16.vlgmr.msra.gmra.mxu0 %v5221_v50 }
 0xddd   : > { %5743 = vmatpush1.bf16.msra.mxu0 %v10843_v46  ;;  %5760 = vmatprep.mubr.bf16.mxu0 %v9390_v12  ;;  %v9260_v46 = vld [vmem:[%s11636_s14 + $0x3e0] ss:$8 sps:$4 sm:$0xff]  }
 0xdde   : > { %5945 = vmatprep.subr.bf16.mxu0 %v9259_v52 }
 0xde4   : > { %8244 = vmatmul.mubr.msk.bf16.vlgmr.msra.gmra.mxu0 %vm2633_vm8, %v9256_v53 }
 0xde5   : > { %5946 = vmatpush1.bf16.msra.mxu0 %v9257_v55 }
 0xde6   : > { %5947 = vmatprep.subr.bf16.mxu0 %v9262_v56 }
 0xde9   : > { %5948 = vmatpush1.bf16.msra.mxu0 %v9260_v46 }
 0xdea   : > { %5949 = vmatprep.subr.bf16.mxu0 %v9265_v57 }
 0xded   : > { %5950 = vmatpush1.bf16.msra.mxu0 %v9263_v58 }
 0xdee   : > { %5951 = vmatprep.subr.bf16.mxu0 %v9268_v51 }
 0xdf1   : > { %5952 = vmatpush1.bf16.msra.mxu0 %v9266_v59 }
 0xdf2   : > { %5953 = vmatprep.subr.bf16.mxu0 %v9271_v60 }
 0xdf5   : > { %5954 = vmatpush1.bf16.msra.mxu0 %v9269_v61  ;;  %v9299_v61 = vld [vmem:[%s11638_s16] sm:$0xff]  }
 0xdf6   : > { %5955 = vmatprep.subr.bf16.mxu0 %v9274_v62  ;;  %v9300_v62 = vld [vmem:[%s11638_s16 + $0x10] sm:$0xff]  }
 0xdf9   : > { %5956 = vmatpush1.bf16.msra.mxu0 %v9272_v63  ;;  %v9301_v63 = vld [vmem:[%s11639_s17 + $0xa8] sm:$0xff]  }
 0xdfa   : > { %5957 = vmatprep.subr.bf16.mxu0 %v9277_v1  ;;  %v9302_v1 = vld [vmem:[%s11639_s17 + $0x38] sm:$0xff]  }
 0xdfd   : > { %5958 = vmatpush1.bf16.msra.mxu0 %v9275_v4  ;;  %v9303_v4 = vld [vmem:[%s11639_s17 + $0xa0] sm:$0xff]  }
 0xdfe   : > { %5959 = vmatprep.subr.bf16.mxu0 %v9280_v5  ;;  %v9304_v5 = vld [vmem:[%s11639_s17 + $0x30] sm:$0xff]  }
 0xe01   : > { %5960 = vmatpush1.bf16.msra.mxu0 %v9278_v7  ;;  %v9305_v7 = vld [vmem:[%s11638_s16 + $0x8] sm:$0x3f]  }
 0xe02   : > { %5965 = vmatprep.subr.bf16.mxu0 %v9283_v8  ;;  %v9306_v8 = vld [vmem:[%s11638_s16 + $0x18] sm:$0x3f]  }
 0xe05   : > { %5966 = vmatpush2.bf16.msra.mxu0 %v9281_v9  ;;  %v9307_v9 = vld [vmem:[%s11639_s17 + $0x98] sm:$0xff]  }
 0xe06   : > { %5967 = vmatprep.subr.bf16.mxu0 %v9286_v45  ;;  %v9308_v45 = vld [vmem:[%s11639_s17 + $0x28] sm:$0xff]  }
 0xe09   : > { %5968 = vmatpush2.bf16.msra.mxu0 %v9284_v10  ;;  %v9309_v10 = vld [vmem:[%s11639_s17 + $0x90] sm:$0xff]  }
 0xe0a   : > { %5969 = vmatprep.subr.bf16.mxu0 %v9289_v3  ;;  %v9310_v3 = vld [vmem:[%s11639_s17 + $0x20] sm:$0xff]  }
 0xe0d   : > { %5970 = vmatpush2.bf16.msra.mxu0 %v9287_v6  ;;  %v9311_v6 = vld [vmem:[%s11639_s17 + $0x88] sm:$0xff]  }
 0xe0e   : > { %5971 = vmatprep.subr.bf16.mxu0 %v9292_v11  ;;  %v9312_v11 = vld [vmem:[%s11639_s17 + $0x18] sm:$0xff]  }
 0xe11   : > { %5972 = vmatpush2.bf16.msra.mxu0 %v9290_v13  ;;  %v9313_v13 = vld [vmem:[%s11639_s17 + $0x80] sm:$0xff]  }
 0xe12   : > { %5973 = vmatprep.subr.bf16.mxu0 %v9295_v14  ;;  %v9314_v14 = vld [vmem:[%s11639_s17 + $0x10] sm:$0xff]  }
 0xe15   : > { %5974 = vmatpush2.bf16.msra.mxu0 %v9293_v15  ;;  %v9315_v15 = vld [vmem:[%s11639_s17 + $0x78] sm:$0xff]  }
 0xe16   : > { %5975 = vmatprep.subr.bf16.mxu0 %v9298_v16  ;;  %v9316_v16 = vld [vmem:[%s11639_s17 + $0x8] sm:$0xff]  }
 0xe19   : > { %5976 = vmatpush2.bf16.msra.mxu0 %v9296_v17  ;;  %v9317_v17 = vld [vmem:[%s11639_s17 + $0x70] sm:$0xff]  }
 0xe9c   : > { %v5429_v18 = vpop.f32.mrf.mxu0 }
 0xe9d   : > { %v5438_v20 = vadd.f32 %v5429_v18, %v11127_v0  ;;  %v5704_v0 = vpop.f32.mrf.mxu1  ;;  %v9318_v18 = vld [vmem:[%s11639_s17] sm:$0xff]  }
 0xe9e   : > { %v5431_v40 = vpop.f32.mrf.mxu0 }
 0xe9f   : > { %v5439_v21 = vadd.f32 %v5431_v40, %v11129_v33  ;;  %v5706_v2 = vpop.f32.mrf.mxu1  ;;  %v5992_v33 = vld [vmem:[%s11637_s15] sm:$0x3]  ;;  %v5713_v34 = vadd.f32 %v5704_v0, %v5438_v20  ;;  %v9319_v20 = vld [vmem:[%s11639_s17 + $0xd8] sm:$0xff]   ;;  %v9320_v40 = vld [vmem:[%s11639_s17 + $0x68] sm:$0xff]  }
 0xea0   : > { %v5433_v22 = vpop.f32.mrf.mxu0  ;;  %v5997_v38 = vrot.slane %v5992_v33, %v9634_v19  ;;  %v6001_v47 = vrot.slane %v5992_v33, %v9639_v25 }
 0xea1   : > { %v5440_v23 = vadd.f32 %v5433_v22, %v11131_v36  ;;  %v5708_v32 = vpop.f32.mrf.mxu1  ;;  %v5714_v36 = vadd.f32 %v5706_v2, %v5439_v21  ;;  %v9321_v21 = vld [vmem:[%s11639_s17 + $0xd0] sm:$0xff]   ;;  %v9322_v22 = vld [vmem:[%s11639_s17 + $0x60] sm:$0xff]  }
 0xea2   : > { %v5435_v24 = vpop.f32.mrf.mxu0 }
 0xea3   : > { %v5441_v26 = vadd.f32 %v5435_v24, %v11133_v41  ;;  %v5710_v39 = vpop.f32.mrf.mxu1  ;;  %v5715_v42 = vadd.f32 %v5708_v32, %v5440_v23  ;;  %v9323_v23 = vld [vmem:[%s11639_s17 + $0xc8] sm:$0xff]   ;;  %v9324_v24 = vld [vmem:[%s11639_s17 + $0x58] sm:$0xff]  }
 0xea4   : > { %v5762_v27 = vpop.f32.mrf.mxu0 }
 0xea5   : > { %v5716_v43 = vadd.f32 %v5710_v39, %v5441_v26  ;;  %v9325_v26 = vld [vmem:[%s11639_s17 + $0xc0] sm:$0xff]  }
 0xea6   : > { %v5764_v54 = vpop.f32.mrf.mxu0 }
 0xea8   : > { %v5766_v28 = vpop.f32.mrf.mxu0 }
 0xea9   : > { %v5771_v31 = vpack.c.bf16 %v5766_v28, %v5762_v27  ;;  %v9326_v27 = vld [vmem:[%s11639_s17 + $0x50] sm:$0xff]   ;;  %v9328_v28 = vld [vmem:[%s11639_s17 + $0x48] sm:$0xff]  }
 0xeaa   : > { %v5768_v29 = vpop.f32.mrf.mxu0 }
 0xeab   : > { %v5772_v30 = vpack.c.bf16 %v5768_v29, %v5764_v54  ;;  %v9327_v54 = vld [vmem:[%s11639_s17 + $0xb8] sm:$0xff]   ;;  %v9329_v29 = vld [vmem:[%s11639_s17 + $0xb0] sm:$0xff]  }
 0xead   : > { %8301 = vmatprep.mubr.msk.bf16.mxu0 %vm1596_vm5, %v5772_v30  ;;  %v9330_v30 = vld [vmem:[%s11639_s17 + $0x40] sm:$0xff]  }
 0xeae   : > { %5978 = vmatmul.mubr.bf16.vlgmr.msra.gmra.mxu0 %v5771_v31 }
 0xeaf   : > { %6072 = vmatprep.mubr.bf16.mxu0 %v9390_v12 }
 0xf6e   : > { %v5979_v35 = vpop.f32.mrf.mxu0 }
 0xf6f   : > { %v5988_v37 = vadd.f32 %v5979_v35, %v5713_v34 }
 0xf70   : > { %v5981_v41 = vpop.f32.mrf.mxu0 }
 0xf71   : > { %v5989_v44 = vadd.f32 %v5981_v41, %v5714_v36  ;;  %v6004_v49 = vadd.f32 %v5997_v38, %v5988_v37 }
 0xf72   : > { %v5983_v48 = vpop.f32.mrf.mxu0 }
 0xf73   : > { %v5990_v50 = vadd.f32 %v5983_v48, %v5715_v42  ;;  %v6005_v53 = vadd.f32 %v6001_v47, %v5989_v44  ;;  %v6008_v46 = vmax.f32 %v6004_v49, 0.0 }
 0xf74   : > { %v5985_v52 = vpop.f32.mrf.mxu0 }
 0xf75   : > { %v6006_v55 = vadd.f32 %v5997_v38, %v5990_v50  ;;  %v5991_v56 = vadd.f32 %v5985_v52, %v5716_v43  ;;  %v6009_v51 = vmax.f32 %v6005_v53, 0.0 }
 0xf77   : > { %v6010_v57 = vmax.f32 %v6006_v55, 0.0  ;;  %v6007_v58 = vadd.f32 %v6001_v47, %v5991_v56 }
 0xf79   : > { %v6012_v59 = vpack.c.bf16 %v6010_v57, %v6008_v46  ;;  %v6011_v19 = vmax.f32 %v6007_v58, 0.0  ;;  %v9331_v57 = vld [vmem:[%s11638_s16 + $0x20] sm:$0xff]   ;;  %v9333_v58 = vld [vmem:[%s11638_s16 + $0x30] sm:$0xff]  }
 0xf7b   : > { %v11239_v60 = vpack.c.bf16 %v6011_v19, %v6009_v51  ;;  %v11246_v25 = vsel %vm1301_vm3, %v6012_v59, 0  ;;  %v9332_v51 = vld [vmem:[%s11639_s17 + $0x118] sm:$0xff]   ;;  %v9349_v59 = vld [vmem:[%s11639_s17 + $0x188] sm:$0xff]   ;;  %v9334_v19 = vld [vmem:[%s11639_s17 + $0x110] sm:$0xff]  }
 0xf7d   : > { %8304 = vmatprep.subr.msk.bf16.mxu0 %vm1301_vm3, %v11239_v60  ;;  %8313 = vmatprep.subr.msk.bf16.mxu1 %vm1301_vm3, %v11239_v60 }
 0xf7e   : > { %6055 = vmatpush1.bf16.msra.mxu0 %v11246_v25  ;;  %6161 = vmatpush1.bf16.msra.mxu1 %v11246_v25 }
 0xf7f   : > { %6322 = vmatprep.subr.bf16.mxu1 %v9390_v12  ;;  %6461 = vmatprep.subr.bf16.mxu0 %v9390_v12 }
 0xf81   : > { %8305 = vmatmul.mubr.msk.bf16.vlgmr.msra.gmra.mxu0 %vm1297_vm4, %v9299_v61  ;;  %8314 = vmatmul.mubr.msk.bf16.vlgmr.msra.gmra.mxu1 %vm1297_vm4, %v9300_v62  ;;  %v9350_v61 = vld [vmem:[%s11639_s17 + $0x180] sm:$0xff]   ;;  %v9335_v62 = vld [vmem:[%s11638_s16 + $0x28] sm:$0x3f]  }
 0xf82   : > { %6323 = vmatpush1.bf16.msra.mxu1 %v9301_v63  ;;  %6462 = vmatpush1.bf16.msra.mxu0 %v9302_v1  ;;  %v9337_v63 = vld [vmem:[%s11638_s16 + $0x38] sm:$0x3f]   ;;  %v9336_v1 = vld [vmem:[%s11639_s17 + $0x108] sm:$0xff]  }
 0xf83   : > { %6324 = vmatprep.subr.bf16.mxu1 %v9390_v12  ;;  %6463 = vmatprep.subr.bf16.mxu0 %v9390_v12 }
 0xf84   : > { %6082 = vmatprep.mubr.bf16.mxu0 %v9390_v12  ;;  %6188 = vmatprep.mubr.bf16.mxu1 %v9390_v12 }
 0xf86   : > { %6325 = vmatpush1.bf16.msra.mxu1 %v9303_v4  ;;  %6464 = vmatpush1.bf16.msra.mxu0 %v9304_v5  ;;  %v9351_v4 = vld [vmem:[%s11639_s17 + $0x178] sm:$0xff]   ;;  %v9338_v5 = vld [vmem:[%s11639_s17 + $0x100] sm:$0xff]  }
 0xf87   : > { %6326 = vmatprep.subr.bf16.mxu1 %v9390_v12  ;;  %6465 = vmatprep.subr.bf16.mxu0 %v9390_v12 }
 0xf89   : > { %8306 = vmatmul.mubr.msk.bf16.gmra.mxu0 %vm1297_vm4, %v9305_v7  ;;  %8315 = vmatmul.mubr.msk.bf16.gmra.mxu1 %vm1297_vm4, %v9306_v8  ;;  %v9352_v7 = vld [vmem:[%s11639_s17 + $0x170] sm:$0xff]   ;;  %v9339_v8 = vld [vmem:[%s11639_s17 + $0xf8] sm:$0xff]  }
 0xf8a   : > { %6327 = vmatpush1.bf16.msra.mxu1 %v9307_v9  ;;  %6466 = vmatpush1.bf16.msra.mxu0 %v9308_v45  ;;  %v9353_v9 = vld [vmem:[%s11639_s17 + $0x168] sm:$0xff]   ;;  %v9340_v45 = vld [vmem:[%s11639_s17 + $0xf0] sm:$0xff]  }
 0xf8b   : > { %6328 = vmatprep.subr.bf16.mxu1 %v9390_v12  ;;  %6467 = vmatprep.subr.bf16.mxu0 %v9390_v12 }
 0xf8e   : > { %6329 = vmatpush1.bf16.msra.mxu1 %v9309_v10  ;;  %6468 = vmatpush1.bf16.msra.mxu0 %v9310_v3  ;;  %v9354_v10 = vld [vmem:[%s11639_s17 + $0x160] sm:$0xff]   ;;  %v9341_v3 = vld [vmem:[%s11639_s17 + $0xe8] sm:$0xff]  }
 0xf8f   : > { %6330 = vmatprep.subr.bf16.mxu1 %v9390_v12  ;;  %6469 = vmatprep.subr.bf16.mxu0 %v9390_v12 }
 0xf92   : > { %6331 = vmatpush1.bf16.msra.mxu1 %v9311_v6  ;;  %6470 = vmatpush1.bf16.msra.mxu0 %v9312_v11  ;;  %v9355_v6 = vld [vmem:[%s11639_s17 + $0x158] sm:$0xff]   ;;  %v9342_v11 = vld [vmem:[%s11639_s17 + $0xe0] sm:$0xff]  }
 0xf93   : > { %6332 = vmatprep.subr.bf16.mxu1 %v9390_v12  ;;  %6471 = vmatprep.subr.bf16.mxu0 %v9390_v12 }
 0xf96   : > { %6333 = vmatpush1.bf16.msra.mxu1 %v9313_v13  ;;  %6472 = vmatpush1.bf16.msra.mxu0 %v9314_v14  ;;  %v9343_v13 = vld [vmem:[%s11639_s17 + $0x148] sm:$0xff]   ;;  %v9344_v14 = vld [vmem:[%s11639_s17 + $0x140] sm:$0xff]  }
 0xf97   : > { %6334 = vmatprep.subr.bf16.mxu1 %v9390_v12  ;;  %6473 = vmatprep.subr.bf16.mxu0 %v9390_v12 }
 0xf9a   : > { %6335 = vmatpush1.bf16.msra.mxu1 %v9315_v15  ;;  %6474 = vmatpush1.bf16.msra.mxu0 %v9316_v16  ;;  %v9345_v15 = vld [vmem:[%s11639_s17 + $0x138] sm:$0xff]   ;;  %v9346_v16 = vld [vmem:[%s11639_s17 + $0x130] sm:$0xff]  }
 0xf9b   : > { %6336 = vmatprep.subr.bf16.mxu1 %v9390_v12  ;;  %6475 = vmatprep.subr.bf16.mxu0 %v9390_v12 }
 0xf9e   : > { %6337 = vmatpush1.bf16.msra.mxu1 %v9317_v17  ;;  %6476 = vmatpush1.bf16.msra.mxu0 %v9318_v18  ;;  %v9347_v17 = vld [vmem:[%s11639_s17 + $0x128] sm:$0xff]   ;;  %v9356_v18 = vld [vmem:[%s11639_s17 + $0x150] sm:$0xff]  }
 0xf9f   : > { %6342 = vmatprep.subr.bf16.mxu1 %v9390_v12  ;;  %6481 = vmatprep.subr.bf16.mxu0 %v9390_v12 }
 0xfa2   : > { %6343 = vmatpush2.bf16.msra.mxu1 %v9319_v20  ;;  %6482 = vmatpush2.bf16.msra.mxu0 %v9320_v40  ;;  %v9348_v20 = vld [vmem:[%s11639_s17 + $0x120] sm:$0xff]   ;;  %v9357_v40 = vld [vmem:[%s11639_s17 + $0x1b8] sm:$0xff]  }
 0xfa3   : > { %6344 = vmatprep.subr.bf16.mxu1 %v9390_v12  ;;  %6483 = vmatprep.subr.bf16.mxu0 %v9390_v12 }
 0xfa6   : > { %6345 = vmatpush2.bf16.msra.mxu1 %v9321_v21  ;;  %6484 = vmatpush2.bf16.msra.mxu0 %v9322_v22  ;;  %v9358_v21 = vld [vmem:[%s11639_s17 + $0x1b0] sm:$0xff]   ;;  %v9359_v22 = vld [vmem:[%s11639_s17 + $0x1a8] sm:$0xff]  }
 0xfa7   : > { %6346 = vmatprep.subr.bf16.mxu1 %v9390_v12  ;;  %6485 = vmatprep.subr.bf16.mxu0 %v9390_v12 }
 0xfaa   : > { %6347 = vmatpush2.bf16.msra.mxu1 %v9323_v23  ;;  %6486 = vmatpush2.bf16.msra.mxu0 %v9324_v24  ;;  %v9361_v23 = vld [vmem:[%s11639_s17 + $0x198] sm:$0xff]   ;;  %v9362_v24 = vld [vmem:[%s11639_s17 + $0x190] sm:$0xff]  }
 0xfab   : > { %6348 = vmatprep.subr.bf16.mxu1 %v9390_v12  ;;  %6487 = vmatprep.subr.bf16.mxu0 %v9390_v12 }
 0xfae   : > { %6349 = vmatpush2.bf16.msra.mxu1 %v9325_v26  ;;  %6488 = vmatpush2.bf16.msra.mxu0 %v9326_v27 }
 0xfaf   : > { %6350 = vmatprep.subr.bf16.mxu1 %v9390_v12  ;;  %6489 = vmatprep.subr.bf16.mxu0 %v9390_v12 }
 0xfb2   : > { %6351 = vmatpush2.bf16.msra.mxu1 %v9327_v54  ;;  %6490 = vmatpush2.bf16.msra.mxu0 %v9328_v28 }
 0xfb3   : > { %6352 = vmatprep.subr.bf16.mxu1 %v9390_v12  ;;  %6491 = vmatprep.subr.bf16.mxu0 %v9390_v12 }
 0xfb6   : > { %6353 = vmatpush2.bf16.msra.mxu1 %v9329_v29  ;;  %6492 = vmatpush2.bf16.msra.mxu0 %v9330_v30 }
 0xfb7   : > { %8382 = vmatprep.subr.msk.bf16.mxu1 %vm1301_vm3, %v11239_v60  ;;  %8435 = vmatprep.subr.msk.bf16.mxu0 %vm1301_vm3, %v11239_v60 }
0x1041   : > { %v6074_v31 = vpop.f32.mrf.mxu0  ;;  %v6180_v0 = vpop.f32.mrf.mxu1 }
0x1043   : > { %v6076_v2 = vpop.f32.mrf.mxu0  ;;  %v6182_v32 = vpop.f32.mrf.mxu1 }
0x1045   : > { %v6078_v33 = vpop.f32.mrf.mxu0  ;;  %v6184_v34 = vpop.f32.mrf.mxu1 }
0x1046   : > { %v6093_v35 = vpack.c.bf16 %v6078_v33, %v6074_v31  ;;  %v6199_v41 = vpack.c.bf16 %v6184_v34, %v6180_v0 }
0x1047   : > { %v6080_v36 = vpop.f32.mrf.mxu0  ;;  %v6186_v37 = vpop.f32.mrf.mxu1 }
0x1048   : > { %v6094_v38 = vpack.c.bf16 %v6080_v36, %v6076_v2  ;;  %v6200_v39 = vpack.c.bf16 %v6186_v37, %v6182_v32 }
0x1049   : > { %v6084_v42 = vpop.f32.mrf.mxu0  ;;  %v6190_v44 = vpop.f32.mrf.mxu1 }
0x104a   : > { %8358 = vmatprep.mubr.msk.bf16.mxu1 %vm1596_vm5, %v6200_v39  ;;  %8374 = vmatprep.mubr.msk.bf16.mxu0 %vm1596_vm5, %v6094_v38 }
0x104b   : > { %v6086_v47 = vpop.f32.mrf.mxu0  ;;  %v6192_v48 = vpop.f32.mrf.mxu1  ;;  %6355 = vmatmul.mubr.bf16.vlgmr.msra.gmra.mxu1 %v6199_v41  ;;  %6494 = vmatmul.mubr.bf16.vlgmr.msra.gmra.mxu0 %v6093_v35 }
0x104c   : > { %6546 = vmatpush1.bf16.msra.mxu1 %v11246_v25  ;;  %6796 = vmatpush1.bf16.msra.mxu0 %v11246_v25 }
0x104d   : > { %v6088_v43 = vpop.f32.mrf.mxu0  ;;  %v6194_v49 = vpop.f32.mrf.mxu1  ;;  %6707 = vmatprep.subr.bf16.mxu1 %v9390_v12  ;;  %6957 = vmatprep.subr.bf16.mxu0 %v9390_v12 }
0x104e   : > { %v6095_v50 = vpack.c.bf16 %v6088_v43, %v6084_v42  ;;  %v6201_v46 = vpack.c.bf16 %v6194_v49, %v6190_v44 }
0x104f   : > { %v6090_v52 = vpop.f32.mrf.mxu0  ;;  %v6196_v53 = vpop.f32.mrf.mxu1 }
0x1050   : > { %v6096_v55 = vpack.c.bf16 %v6090_v52, %v6086_v47  ;;  %v6202_v56 = vpack.c.bf16 %v6196_v53, %v6192_v48 }
0x1052   : > { %8359 = vmatprep.mubr.msk.bf16.mxu1 %vm1596_vm5, %v6202_v56  ;;  %8375 = vmatprep.mubr.msk.bf16.mxu0 %vm1596_vm5, %v6096_v55 }
0x1053   : > { %6363 = vmatmul.mubr.bf16.gmra.mxu1 %v6201_v46  ;;  %6502 = vmatmul.mubr.bf16.gmra.mxu0 %v6095_v50 }
0x1054   : > { %6563 = vmatprep.mubr.bf16.mxu1 %v9390_v12  ;;  %6813 = vmatprep.mubr.bf16.mxu0 %v9390_v12 }
0x105b   : > { %8383 = vmatmul.mubr.msk.bf16.vlgmr.msra.gmra.mxu1 %vm1297_vm4, %v9331_v57  ;;  %8436 = vmatmul.mubr.msk.bf16.vlgmr.msra.gmra.mxu0 %vm1297_vm4, %v9333_v58 }
0x105c   : > { %6708 = vmatpush1.bf16.msra.mxu1 %v9332_v51  ;;  %6573 = vmatprep.mubr.bf16.mxu1 %v9390_v12 }
0x105d   : > { %6709 = vmatprep.subr.bf16.mxu1 %v9390_v12  ;;  %6823 = vmatprep.mubr.bf16.mxu0 %v9390_v12 }
0x105e   : > { %6958 = vmatpush1.bf16.msra.mxu0 %v9349_v59 }
0x105f   : > { %6959 = vmatprep.subr.bf16.mxu0 %v9390_v12 }
0x1060   : > { %6710 = vmatpush1.bf16.msra.mxu1 %v9334_v19 }
0x1061   : > { %6711 = vmatprep.subr.bf16.mxu1 %v9390_v12 }
0x1062   : > { %6960 = vmatpush1.bf16.msra.mxu0 %v9350_v61 }
0x1063   : > { %8384 = vmatmul.mubr.msk.bf16.gmra.mxu1 %vm1297_vm4, %v9335_v62  ;;  %8437 = vmatmul.mubr.msk.bf16.gmra.mxu0 %vm1297_vm4, %v9337_v63 }
0x1064   : > { %6712 = vmatpush1.bf16.msra.mxu1 %v9336_v1  ;;  %6961 = vmatprep.subr.bf16.mxu0 %v9390_v12 }
0x1065   : > { %6713 = vmatprep.subr.bf16.mxu1 %v9390_v12 }
0x1066   : > { %6962 = vmatpush1.bf16.msra.mxu0 %v9351_v4 }
0x1067   : > { %6963 = vmatprep.subr.bf16.mxu0 %v9390_v12 }
0x1068   : > { %6714 = vmatpush1.bf16.msra.mxu1 %v9338_v5 }
0x1069   : > { %6715 = vmatprep.subr.bf16.mxu1 %v9390_v12 }
0x106a   : > { %6964 = vmatpush1.bf16.msra.mxu0 %v9352_v7 }
0x106b   : > { %6965 = vmatprep.subr.bf16.mxu0 %v9390_v12 }
0x106c   : > { %6716 = vmatpush1.bf16.msra.mxu1 %v9339_v8 }
0x106d   : > { %6717 = vmatprep.subr.bf16.mxu1 %v9390_v12 }
0x106e   : > { %6966 = vmatpush1.bf16.msra.mxu0 %v9353_v9 }
0x106f   : > { %6967 = vmatprep.subr.bf16.mxu0 %v9390_v12 }
0x1070   : > { %6718 = vmatpush1.bf16.msra.mxu1 %v9340_v45  ;;  %v9365_v45 = vld [vmem:[%s11639_s17 + $0x1f8] sm:$0xff]  }
0x1071   : > { %6719 = vmatprep.subr.bf16.mxu1 %v9390_v12 }
0x1072   : > { %6968 = vmatpush1.bf16.msra.mxu0 %v9354_v10  ;;  %v9366_v10 = vld [vmem:[%s11639_s17 + $0x1f0] sm:$0xff]  }
0x1073   : > { %6969 = vmatprep.subr.bf16.mxu0 %v9390_v12 }
0x1074   : > { %6720 = vmatpush1.bf16.msra.mxu1 %v9341_v3  ;;  %v9364_v3 = vld [vmem:[%s11638_s16 + $0x48] sm:$0x3f]  }
0x1075   : > { %6721 = vmatprep.subr.bf16.mxu1 %v9390_v12 }
0x1076   : > { %6970 = vmatpush1.bf16.msra.mxu0 %v9355_v6  ;;  %v9367_v6 = vld [vmem:[%s11639_s17 + $0x1e8] sm:$0xff]  }
0x1077   : > { %6971 = vmatprep.subr.bf16.mxu0 %v9390_v12 }
0x1078   : > { %6722 = vmatpush1.bf16.msra.mxu1 %v9342_v11  ;;  %v9368_v11 = vld [vmem:[%s11639_s17 + $0x1e0] sm:$0xff]  }
0x1079   : > { %6727 = vmatprep.subr.bf16.mxu1 %v9390_v12 }
0x107a   : > { %6972 = vmatpush1.bf16.msra.mxu0 %v9356_v18  ;;  %v9374_v18 = vld [vmem:[%s11639_s17 + $0x220] sm:$0xff]  }
0x107b   : > { %6977 = vmatprep.subr.bf16.mxu0 %v9390_v12 }
0x107c   : > { %6728 = vmatpush2.bf16.msra.mxu1 %v9343_v13  ;;  %v9369_v13 = vld [vmem:[%s11639_s17 + $0x1d8] sm:$0xff]  }
0x107d   : > { %6729 = vmatprep.subr.bf16.mxu1 %v9390_v12 }
0x107e   : > { %6978 = vmatpush2.bf16.msra.mxu0 %v9357_v40  ;;  %v9376_v40 = vld [vmem:[%s11639_s17 + $0x210] sm:$0xff]  }
0x107f   : > { %6979 = vmatprep.subr.bf16.mxu0 %v9390_v12 }
0x1080   : > { %6730 = vmatpush2.bf16.msra.mxu1 %v9344_v14  ;;  %v9370_v14 = vld [vmem:[%s11639_s17 + $0x1d0] sm:$0xff]  }
0x1081   : > { %6731 = vmatprep.subr.bf16.mxu1 %v9390_v12 }
0x1082   : > { %6980 = vmatpush2.bf16.msra.mxu0 %v9358_v21  ;;  %v9377_v21 = vld [vmem:[%s11639_s17 + $0x208] sm:$0xff]  }
0x1083   : > { %6981 = vmatprep.subr.bf16.mxu0 %v9390_v12 }
0x1084   : > { %6732 = vmatpush2.bf16.msra.mxu1 %v9345_v15  ;;  %v9371_v15 = vld [vmem:[%s11639_s17 + $0x1c8] sm:$0xff]  }
0x1085   : > { %6733 = vmatprep.subr.bf16.mxu1 %v9390_v12 }
0x1086   : > { %6982 = vmatpush2.bf16.msra.mxu0 %v9359_v22  ;;  %v9378_v22 = vld [vmem:[%s11639_s17 + $0x200] sm:$0xff]  }
0x1087   : > { %6983 = vmatprep.subr.bf16.mxu0 %v9390_v12 }
0x1088   : > { %6734 = vmatpush2.bf16.msra.mxu1 %v9346_v16  ;;  %v9372_v16 = vld [vmem:[%s11639_s17 + $0x1c0] sm:$0xff]  }
0x1089   : > { %6735 = vmatprep.subr.bf16.mxu1 %v9390_v12 }
0x108c   : > { %6736 = vmatpush2.bf16.msra.mxu1 %v9347_v17  ;;  %v9373_v17 = vld [vmem:[%s11639_s17 + $0x228] sm:$0xff]  }
0x108d   : > { %6737 = vmatprep.subr.bf16.mxu1 %v9390_v12 }
0x1090   : > { %6738 = vmatpush2.bf16.msra.mxu1 %v9348_v20  ;;  %v9375_v20 = vld [vmem:[%s11639_s17 + $0x218] sm:$0xff]  }
0x1091   : > { %8488 = vmatprep.subr.msk.bf16.mxu1 %vm1301_vm3, %v11239_v60  ;;  %v9360_v60 = vld [vmem:[%s11639_s17 + $0x1a0] sm:$0xff]  }
0x1092   : > { %6984 = vmatpush2.bf16.msra.mxu0 %v9360_v60 }
0x1093   : > { %6985 = vmatprep.subr.bf16.mxu0 %v9390_v12 }
0x1096   : > { %6986 = vmatpush2.bf16.msra.mxu0 %v9361_v23 }
0x1097   : > { %6987 = vmatprep.subr.bf16.mxu0 %v9390_v12 }
0x109a   : > { %6988 = vmatpush2.bf16.msra.mxu0 %v9362_v24 }
0x110b   : > { %v6356_v26 = vpop.f32.mrf.mxu1  ;;  %v6495_v27 = vpop.f32.mrf.mxu0 }
0x110c   : > { %v11524_v54 = vadd.f32 %v6495_v27, %v6356_v26 }
0x110d   : > { %v6358_v28 = vpop.f32.mrf.mxu1  ;;  %v6497_v29 = vpop.f32.mrf.mxu0 }
0x110f   : > { %v6359_v30 = vpop.f32.mrf.mxu1  ;;  %v6498_v31 = vpop.f32.mrf.mxu0 }
0x1110   : > { %v11526_v0 = vadd.f32 %v6498_v31, %v6359_v30 }
0x1111   : > { %v6361_v2 = vpop.f32.mrf.mxu1  ;;  %v6500_v32 = vpop.f32.mrf.mxu0 }
0x1113   : > { %v6364_v33 = vpop.f32.mrf.mxu1  ;;  %v6503_v34 = vpop.f32.mrf.mxu0 }
0x1114   : > { %v11528_v35 = vadd.f32 %v6503_v34, %v6364_v33 }
0x1115   : > { %v6366_v36 = vpop.f32.mrf.mxu1  ;;  %v6505_v37 = vpop.f32.mrf.mxu0 }
0x1117   : > { %v6367_v38 = vpop.f32.mrf.mxu1  ;;  %v6506_v39 = vpop.f32.mrf.mxu0 }
0x1118   : > { %v11530_v41 = vadd.f32 %v6506_v39, %v6367_v38 }
0x1119   : > { %v6369_v42 = vpop.f32.mrf.mxu1  ;;  %v6508_v44 = vpop.f32.mrf.mxu0 }
0x111b   : > { %v6565_v47 = vpop.f32.mrf.mxu1  ;;  %v6815_v48 = vpop.f32.mrf.mxu0 }
0x111d   : > { %v6567_v43 = vpop.f32.mrf.mxu1  ;;  %v6817_v49 = vpop.f32.mrf.mxu0 }
0x111f   : > { %v6569_v50 = vpop.f32.mrf.mxu1  ;;  %v6819_v52 = vpop.f32.mrf.mxu0 }
0x1120   : > { %v6834_v55 = vpack.c.bf16 %v6819_v52, %v6815_v48  ;;  %v6584_v58 = vpack.c.bf16 %v6569_v50, %v6565_v47 }
0x1121   : > { %v6571_v53 = vpop.f32.mrf.mxu1  ;;  %v6821_v56 = vpop.f32.mrf.mxu0 }
0x1122   : > { %v6585_v46 = vpack.c.bf16 %v6571_v53, %v6567_v43  ;;  %v6835_v57 = vpack.c.bf16 %v6821_v56, %v6817_v49 }
0x1123   : > { %v6575_v51 = vpop.f32.mrf.mxu1  ;;  %v6825_v59 = vpop.f32.mrf.mxu0 }
0x1124   : > { %8427 = vmatprep.mubr.msk.bf16.mxu1 %vm1596_vm5, %v6585_v46  ;;  %8480 = vmatprep.mubr.msk.bf16.mxu0 %vm1596_vm5, %v6835_v57 }
0x1125   : > { %v6577_v19 = vpop.f32.mrf.mxu1  ;;  %6740 = vmatmul.mubr.bf16.vlgmr.msra.gmra.mxu1 %v6584_v58  ;;  %v6827_v61 = vpop.f32.mrf.mxu0  ;;  %6990 = vmatmul.mubr.bf16.vlgmr.msra.gmra.mxu0 %v6834_v55 }
0x1126   : > { %7046 = vmatpush1.bf16.msra.mxu1 %v11246_v25  ;;  %v9363_v25 = vld [vmem:[%s11638_s16 + $0x40] sm:$0xff]  }
0x1127   : > { %v6579_v62 = vpop.f32.mrf.mxu1  ;;  %v6829_v63 = vpop.f32.mrf.mxu0  ;;  %7207 = vmatprep.subr.bf16.mxu1 %v9390_v12 }
0x1128   : > { %v6836_v4 = vpack.c.bf16 %v6829_v63, %v6825_v59  ;;  %v6586_v9 = vpack.c.bf16 %v6579_v62, %v6575_v51  ;;  %v8535_v59 = vld [vmem:[%s11640_s18] ss:$0 sm:$0xff] }
0x1129   : > { %v6581_v1 = vpop.f32.mrf.mxu1  ;;  %v6831_v5 = vpop.f32.mrf.mxu0 }
0x112a   : > { %v6587_v7 = vpack.c.bf16 %v6581_v1, %v6577_v19  ;;  %v6837_v8 = vpack.c.bf16 %v6831_v5, %v6827_v61 }
0x112c   : > { %8428 = vmatprep.mubr.msk.bf16.mxu1 %vm1596_vm5, %v6587_v7  ;;  %8481 = vmatprep.mubr.msk.bf16.mxu0 %vm1596_vm5, %v6837_v8 }
0x112d   : > { %6748 = vmatmul.mubr.bf16.gmra.mxu1 %v6586_v9  ;;  %6998 = vmatmul.mubr.bf16.gmra.mxu0 %v6836_v4 }
0x112e   : > { %7063 = vmatprep.mubr.bf16.mxu1 %v9390_v12 }
0x1135   : > { %8489 = vmatmul.mubr.msk.bf16.vlgmr.msra.gmra.mxu1 %vm1297_vm4, %v9363_v25 }
0x1136   : > { %7073 = vmatprep.mubr.bf16.mxu1 %v9390_v12  ;;  %7208 = vmatpush1.bf16.msra.mxu1 %v9365_v45 }
0x1137   : > { %7209 = vmatprep.subr.bf16.mxu1 %v9390_v12 }
0x113a   : > { %7210 = vmatpush1.bf16.msra.mxu1 %v9366_v10 }
0x113b   : > { %7211 = vmatprep.subr.bf16.mxu1 %v9390_v12 }
0x113d   : > { %8490 = vmatmul.mubr.msk.bf16.gmra.mxu1 %vm1297_vm4, %v9364_v3 }
0x113e   : > { %7212 = vmatpush1.bf16.msra.mxu1 %v9367_v6 }
0x113f   : > { %7213 = vmatprep.subr.bf16.mxu1 %v9390_v12 }
0x1142   : > { %7214 = vmatpush1.bf16.msra.mxu1 %v9368_v11 }
0x1143   : > { %7215 = vmatprep.subr.bf16.mxu1 %v9390_v12 }
0x1146   : > { %7216 = vmatpush1.bf16.msra.mxu1 %v9369_v13 }
0x1147   : > { %7217 = vmatprep.subr.bf16.mxu1 %v9390_v12 }
0x114a   : > { %7218 = vmatpush1.bf16.msra.mxu1 %v9370_v14 }
0x114b   : > { %7219 = vmatprep.subr.bf16.mxu1 %v9390_v12 }
0x114e   : > { %7220 = vmatpush1.bf16.msra.mxu1 %v9371_v15 }
0x114f   : > { %7221 = vmatprep.subr.bf16.mxu1 %v9390_v12 }
0x1152   : > { %7222 = vmatpush1.bf16.msra.mxu1 %v9372_v16 }
0x1153   : > { %7227 = vmatprep.subr.bf16.mxu1 %v9390_v12 }
0x1156   : > { %7228 = vmatpush2.bf16.msra.mxu1 %v9373_v17 }
0x1157   : > { %7229 = vmatprep.subr.bf16.mxu1 %v9390_v12 }
0x115a   : > { %7230 = vmatpush2.bf16.msra.mxu1 %v9374_v18 }
0x115b   : > { %7231 = vmatprep.subr.bf16.mxu1 %v9390_v12 }
0x115e   : > { %7232 = vmatpush2.bf16.msra.mxu1 %v9375_v20 }
0x115f   : > { %7233 = vmatprep.subr.bf16.mxu1 %v9390_v12 }
0x1162   : > { %7234 = vmatpush2.bf16.msra.mxu1 %v9376_v40 }
0x1163   : > { %7235 = vmatprep.subr.bf16.mxu1 %v9390_v12 }
0x1166   : > { %7236 = vmatpush2.bf16.msra.mxu1 %v9377_v21 }
0x1167   : > { %7237 = vmatprep.subr.bf16.mxu1 %v9390_v12 }
0x116a   : > { %7238 = vmatpush2.bf16.msra.mxu1 %v9378_v22 }
0x11e5   : > { %v6741_v60 = vpop.f32.mrf.mxu1  ;;  %v6991_v23 = vpop.f32.mrf.mxu0 }
0x11e6   : > { %v6756_v24 = vadd.f32 %v6741_v60, %v11524_v54 }
0x11e7   : > { %v6743_v26 = vpop.f32.mrf.mxu1  ;;  %v6993_v27 = vpop.f32.mrf.mxu0 }
0x11e8   : > { %v7006_v28 = vadd.f32 %v6991_v23, %v6756_v24 }
0x11e9   : > { %v6744_v29 = vpop.f32.mrf.mxu1  ;;  %v6994_v30 = vpop.f32.mrf.mxu0 }
0x11ea   : > { %v6757_v31 = vadd.f32 %v6744_v29, %v11526_v0 }
0x11eb   : > { %v6746_v2 = vpop.f32.mrf.mxu1  ;;  %v6996_v32 = vpop.f32.mrf.mxu0 }
0x11ec   : > { %v7007_v33 = vadd.f32 %v6994_v30, %v6757_v31 }
0x11ed   : > { %v6749_v12 = vpop.f32.mrf.mxu1  ;;  %v6999_v34 = vpop.f32.mrf.mxu0 }
0x11ee   : > { %v6758_v36 = vadd.f32 %v6749_v12, %v11528_v35 }
0x11ef   : > { %v6751_v37 = vpop.f32.mrf.mxu1  ;;  %v7001_v38 = vpop.f32.mrf.mxu0 }
0x11f0   : > { %v7008_v39 = vadd.f32 %v6999_v34, %v6758_v36 }
0x11f1   : > { %v6752_v42 = vpop.f32.mrf.mxu1  ;;  %v7002_v44 = vpop.f32.mrf.mxu0 }
0x11f2   : > { %v6759_v54 = vadd.f32 %v6752_v42, %v11530_v41 }
0x11f3   : > { %v6754_v47 = vpop.f32.mrf.mxu1  ;;  %v7004_v48 = vpop.f32.mrf.mxu0 }
0x11f4   : > { %v7009_v43 = vadd.f32 %v7002_v44, %v6759_v54 }
0x11f5   : > { %v7065_v49 = vpop.f32.mrf.mxu1 }
0x11f7   : > { %v7067_v0 = vpop.f32.mrf.mxu1 }
0x11f9   : > { %v7069_v50 = vpop.f32.mrf.mxu1 }
0x11fa   : > { %v7084_v55 = vpack.c.bf16 %v7069_v50, %v7065_v49 }
0x11fb   : > { %v7071_v52 = vpop.f32.mrf.mxu1 }
0x11fc   : > { %v7085_v53 = vpack.c.bf16 %v7071_v52, %v7067_v0 }
0x11fd   : > { %v7075_v56 = vpop.f32.mrf.mxu1 }
0x11fe   : > { %8533 = vmatprep.mubr.msk.bf16.mxu1 %vm1596_vm5, %v7085_v53 }
0x11ff   : > { %v7077_v35 = vpop.f32.mrf.mxu1  ;;  %7240 = vmatmul.mubr.bf16.vlgmr.msra.gmra.mxu1 %v7084_v55 }
0x1201   : > { %v7079_v46 = vpop.f32.mrf.mxu1 }
0x1202   : > { %v7086_v51 = vpack.c.bf16 %v7079_v46, %v7075_v56 }
0x1203   : > { %v7081_v57 = vpop.f32.mrf.mxu1 }
0x1204   : > { %v7087_v58 = vpack.c.bf16 %v7081_v57, %v7077_v35 }
0x1206   : > { %8534 = vmatprep.mubr.msk.bf16.mxu1 %vm1596_vm5, %v7087_v58 }
0x1207   : > { %7248 = vmatmul.mubr.bf16.gmra.mxu1 %v7086_v51 }
0x12bf   : > { %v7241_v41 = vpop.f32.mrf.mxu1 }
0x12c0   : > { %v7256_v19 = vadd.f32 %v7241_v41, %v7006_v28 }
0x12c1   : > { %v7243_v61 = vpop.f32.mrf.mxu1 }
0x12c2   : > { %v7267_v62 = vadd.f32 %v8535_v59, %v7256_v19 }
0x12c3   : > { %v7244_v63 = vpop.f32.mrf.mxu1 }
0x12c4   : > { %7271 = vst.msk [vmem:[%s602_s29] sm:$0xff] %vm626_vm2, %v7267_v62  ;;  %v7257_v1 = vadd.f32 %v7244_v63, %v7007_v33 }
0x12c5   : > { %v7246_v4 = vpop.f32.mrf.mxu1 }
0x12c6   : > { %v7268_v5 = vadd.f32 %v8535_v59, %v7257_v1 }
0x12c7   : > { %v7249_v7 = vpop.f32.mrf.mxu1 }
0x12c8   : > { %7272 = vst.msk [vmem:[%s602_s29 + $0x8] sm:$0xff] %vm626_vm2, %v7268_v5  ;;  %v7258_v8 = vadd.f32 %v7249_v7, %v7008_v39 }
0x12c9   : > { %v7251_v9 = vpop.f32.mrf.mxu1 }
0x12ca   : > { %v7269_v25 = vadd.f32 %v8535_v59, %v7258_v8 }
0x12cb   : > { %v7252_v45 = vpop.f32.mrf.mxu1 }
0x12cc   : > { %7273 = vst.msk [vmem:[%s602_s29 + $0x10] sm:$0xff] %vm626_vm2, %v7269_v25  ;;  %v7259_v10 = vadd.f32 %v7252_v45, %v7009_v43 }
0x12cd   : > { %v7254_v3 = vpop.f32.mrf.mxu1 }
0x12ce   : > { %v7270_v6 = vadd.f32 %v8535_v59, %v7259_v10 }
0x12d0   : > { %7275 = vst.msk [vmem:[%s602_s29 + $0x18] sm:$0xf] %vm7274_vm11, %v7270_v6 }
0x12d1 PF: > { %s29_s0 = sadd.s32 1, %s9386_s0  }
0x12d2   : > { %p26_p4 = scmp.ge.s32.totalorder %s29_s0, 4  }
0x12d4   :  { %28 = sbr.rel (!%p26_p4) target bundleno = 5 (0x5), region = 174 }

</bundles_post_ra>
